<compile_context>
chip_gen: v7x
topology: tpu7x:2x2x1
jax: 0.10.0
libtpu: 0.0.40
codegen_flags: <defaults>
</compile_context>

<pallas_src>
import functools

import jax
import jax.numpy as jnp
from jax.experimental import pallas as pl
from jax.experimental.pallas import tpu as pltpu


# ----------------------------- in-kernel helpers -----------------------------
def _conv3x3_lane_packed(x2d, w_ref, brow_ref, C, H, W):
    """3x3 stride-1 conv with ReflectionPad2d(1), lane-packed over output channels.

    x2d:      (H, C*W) f32; input channel c occupies lanes [c*W, (c+1)*W).
    w_ref:    VMEM (9*C, C*W) f32; row (dy*3+dx)*C + ci holds w_hwio[dy,dx,ci,co]
              broadcast over lanes [co*W, (co+1)*W).
    brow_ref: VMEM (1, C*W) f32 bias row, lane-expanded over output channels.
    Returns   (H, C*W) f32; output channel co in lanes [co*W, (co+1)*W).
    """
    CW = C * W
    # Bias-initialized accumulator: one hoisted broadcast, no zeros+add-at-end.
    acc = jnp.broadcast_to(brow_ref[...].astype(jnp.float32), (H, CW))

    for ci in range(C):
        xc = x2d[:, ci * W:(ci + 1) * W]                                     # (H, W)
        # Reflect-pad along H: rows (1, 0..H-1, H-2).
        xh = jnp.concatenate([xc[1:2, :], xc, xc[H - 2:H - 1, :]], axis=0)   # (H+2, W)
        # W-shifted windows with reflection (dx = 0 / 1 / 2 taps).
        xl = jnp.concatenate([xh[:, 1:2], xh[:, :W - 1]], axis=1)            # col w-1
        xr = jnp.concatenate([xh[:, 1:], xh[:, W - 2:W - 1]], axis=1)        # col w+1
        # Replicate each window across the C output-channel lane blocks ONCE per
        # dx variant, so the per-output-channel loop becomes a single vector FMA
        # per (dy, dx, ci) tap.
        reps = tuple(jnp.concatenate([v] * C, axis=1) for v in (xl, xh, xr))  # (H+2, C*W)

        for dy in range(3):
            for dx in range(3):
                tap = (dy * 3 + dx) * C + ci
                acc = acc + reps[dx][dy:dy + H, :] * w_ref[tap:tap + 1, :]
    return acc


def _instance_norm_lane_packed(y2d, g_ref, bt_ref, C, H, W, relu, eps=1e-5):
    """Affine InstanceNorm on a lane-packed (H, C*W) slab; f32 single-pass stats.

    The big (H, C*W) reductions and the normalize/ReLU apply stay lane-packed;
    only the C per-channel scalar finishers (mean/var/rsqrt) run narrow.
    """
    CW = C * W
    inv_hw = 1.0 / float(H * W)
    rs = jnp.sum(y2d, axis=0, keepdims=True)             # (1, C*W) row sums
    rs2 = jnp.sum(y2d * y2d, axis=0, keepdims=True)      # (1, C*W) row sums of squares

    scale_blocks = []
    shift_blocks = []
    for c in range(C):
        s1 = jnp.sum(rs[:, c * W:(c + 1) * W], axis=1, keepdims=True)    # (1, 1)
        s2 = jnp.sum(rs2[:, c * W:(c + 1) * W], axis=1, keepdims=True)   # (1, 1)
        mean = s1 * inv_hw
        var = s2 * inv_hw - mean * mean                                  # biased variance
        scale = g_ref[c] * jax.lax.rsqrt(var + eps)                      # gamma * invstd
        shift = bt_ref[c] - mean * scale
        scale_blocks.append(jnp.broadcast_to(scale, (1, W)))
        shift_blocks.append(jnp.broadcast_to(shift, (1, W)))
    scale_row = jnp.concatenate(scale_blocks, axis=1)    # (1, C*W)
    shift_row = jnp.concatenate(shift_blocks, axis=1)    # (1, C*W)

    out = y2d * scale_row + shift_row                    # lane-packed apply
    if relu:
        out = jnp.maximum(out, 0.0)
    return out


# --------------------------------- kernel ------------------------------------
def _residual_block_kernel(x_ref, w1_ref, b1_ref, g1_ref, bt1_ref,
                           w2_ref, b2_ref, g2_ref, bt2_ref, o_ref,
                           *, nb, C, H, W, G):
    """x_ref/o_ref blocks: (nb, H/G, G*C*W), lane layout g*C*W + c*W + w, h = g*R + r."""
    R = H // G
    CW = C * W

    for b in range(nb):
        # Unpack the lane-dense block into the (H, C*W) compute layout
        # (static lane slices + one small sublane concat).
        if G == 1:
            x2d = x_ref[b].astype(jnp.float32)                              # (H, C*W)
        else:
            x2d = jnp.concatenate(
                [x_ref[b, :, g * CW:(g + 1) * CW] for g in range(G)],
                axis=0).astype(jnp.float32)                                 # (H, C*W)

        # conv1 -> InstanceNorm(affine) -> ReLU
        y1 = _conv3x3_lane_packed(x2d, w1_ref, b1_ref, C, H, W)
        h1 = _instance_norm_lane_packed(y1, g1_ref, bt1_ref, C, H, W, relu=True)

        # conv2 -> InstanceNorm(affine)
        y2 = _conv3x3_lane_packed(h1, w2_ref, b2_ref, C, H, W)
        out = _instance_norm_lane_packed(y2, g2_ref, bt2_ref, C, H, W, relu=False)

        # Residual add + store, directly in the packed layout: the residual is
        # re-read from the resident x block (short live ranges), and each store
        # writes a lane-dense sub-slab of o_ref (no concat repack).
        for g in range(G):
            res = x_ref[b, :, g * CW:(g + 1) * CW].astype(jnp.float32)
            o_ref[b, :, g * CW:(g + 1) * CW] = \
                (out[g * R:(g + 1) * R, :] + res).astype(o_ref.dtype)


# --------------------------------- wrapper ------------------------------------
def _pick_row_group(H, C, W, target_lanes=128):
    """Smallest divisor G of H with G*C*W >= target_lanes (1 if already wide)."""
    if C * W >= target_lanes:
        return 1
    for g in range(2, H + 1):
        if H % g == 0 and g * C * W >= target_lanes:
            return g
    return 1


def residual_block(x_nchw, params):
    """Pallas forward of ResidualBlock. x_nchw: (N, C, H, W); conv weights HWIO."""
    N, C, H, W = x_nchw.shape
    w1, b1, g1, bt1, w2, b2, g2, bt2 = params
    f32 = jnp.float32
    CW = C * W
    G = _pick_row_group(H, C, W)
    R = H // G
    lanes = G * CW

    # Lane-expanded parameters (built once, outside the kernel):
    #   weight row t = (dy*3+dx)*C + ci, lanes [co*W,(co+1)*W) = w_hwio[dy,dx,ci,co]
    def expand_w(w):
        return jnp.repeat(jnp.asarray(w, f32).reshape(9 * C, C), W, axis=1)

    def expand_b(b):
        return jnp.repeat(jnp.asarray(b, f32).reshape(1, C), W, axis=1)

    w1x, w2x = expand_w(w1), expand_w(w2)
    b1x, b2x = expand_b(b1), expand_b(b2)
    g1s, bt1s = jnp.asarray(g1, f32), jnp.asarray(bt1, f32)
    g2s, bt2s = jnp.asarray(g2, f32), jnp.asarray(bt2, f32)

    # Lane-dense input packing: (N,C,H,W) -> (N, R, G*C*W) with h = g*R + r and
    # lane index g*C*W + c*W + w (XLA-side layout plumbing).
    xp = jnp.transpose(x_nchw, (0, 2, 1, 3))                       # (N, H, C, W)
    xp = xp.reshape(N, G, R, C, W).transpose(0, 2, 1, 3, 4).reshape(N, R, lanes)

    # Batch blocking: at most 2 grid steps (fewer, bigger steps on 1-TC v5e/v6e;
    # 2 parallel steps keep both v7x TensorCores busy).
    if N >= 2 and N % 2 == 0:
        grid_n, nb = 2, N // 2
    else:
        grid_n, nb = N, 1

    # Generation-aware VMEM limit (double-buffered in+out blocks + params + slack).
    blk_bytes = nb * R * lanes * 4
    param_bytes = 2 * (9 * C * CW + CW) * 4
    need = 4 * blk_bytes + param_bytes + (2 << 20)
    try:
        vmem_cap = int(pltpu.get_tpu_info().vmem_capacity_bytes)
    except Exception:
        vmem_cap = 64 * 2 ** 20                                    # v7x-safe fallback
    vmem_limit = int(min(3 * vmem_cap // 4, max(8 << 20, need)))

    kernel = functools.partial(_residual_block_kernel, nb=nb, C=C, H=H, W=W, G=G)
    smem = pl.BlockSpec(memory_space=pltpu.MemorySpace.SMEM)

    out = pl.pallas_call(
        kernel,
        out_shape=jax.ShapeDtypeStruct((N, R, lanes), x_nchw.dtype),
        grid=(grid_n,),
        in_specs=[
            pl.BlockSpec((nb, R, lanes), lambda n: (n, 0, 0)),     # x (lane-dense)
            pl.BlockSpec((9 * C, CW), lambda n: (0, 0)),           # w1 (lane-expanded)
            pl.BlockSpec((1, CW), lambda n: (0, 0)),               # b1 row
            smem, smem,                                            # gamma1, beta1
            pl.BlockSpec((9 * C, CW), lambda n: (0, 0)),           # w2
            pl.BlockSpec((1, CW), lambda n: (0, 0)),               # b2 row
            smem, smem,                                            # gamma2, beta2
        ],
        out_specs=pl.BlockSpec((nb, R, lanes), lambda n: (n, 0, 0)),
        compiler_params=pltpu.CompilerParams(
            dimension_semantics=("parallel",),
            vmem_limit_bytes=vmem_limit),
    )(xp, w1x, b1x, g1s, bt1s, w2x, b2x, g2s, bt2s)

    # Undo the lane-dense packing (free XLA-side layout plumbing).
    out = out.reshape(N, R, G, C, W).transpose(0, 3, 2, 1, 4).reshape(N, C, H, W)
    return out


# --------------------------- pure-JAX reference -------------------------------
def ref_forward(x_nchw, params):
    w1, b1, g1, bt1, w2, b2, g2, bt2 = params

    def conv(x, w, b):
        xp = jnp.pad(x, ((0, 0), (1, 1), (1, 1), (0, 0)), mode='reflect')
        y = jax.lax.conv_general_dilated(
            xp, w, (1, 1), 'VALID',
            dimension_numbers=('NHWC', 'HWIO', 'NHWC'))
        return y + b[None, None, None, :]

    def inorm(y, g, bt, eps=1e-5):
        m = jnp.mean(y, axis=(1, 2), keepdims=True)
        v = jnp.mean((y - m) ** 2, axis=(1, 2), keepdims=True)
        return (y - m) * jax.lax.rsqrt(v + eps) * g[None, None, None, :] \
            + bt[None, None, None, :]

    x = jnp.transpose(x_nchw, (0, 2, 3, 1))
    h = jax.nn.relu(inorm(conv(x, w1, b1), g1, bt1))
    o = inorm(conv(h, w2, b2), g2, bt2) + x
    return jnp.transpose(o, (0, 3, 1, 2))


if __name__ == "__main__":
    N, C, H, W = 2, 4, 16, 16
    key = jax.random.PRNGKey(0)
    ks = jax.random.split(key, 9)

    x = jax.random.normal(ks[0], (N, C, H, W), jnp.float32)
    w1 = 0.1 * jax.random.normal(ks[1], (3, 3, C, C), jnp.float32)   # HWIO
    b1 = 0.1 * jax.random.normal(ks[2], (C,), jnp.float32)
    g1 = 1.0 + 0.1 * jax.random.normal(ks[3], (C,), jnp.float32)
    bt1 = 0.1 * jax.random.normal(ks[4], (C,), jnp.float32)
    w2 = 0.1 * jax.random.normal(ks[5], (3, 3, C, C), jnp.float32)   # HWIO
    b2 = 0.1 * jax.random.normal(ks[6], (C,), jnp.float32)
    g2 = 1.0 + 0.1 * jax.random.normal(ks[7], (C,), jnp.float32)
    bt2 = 0.1 * jax.random.normal(ks[8], (C,), jnp.float32)
    params = (w1, b1, g1, bt1, w2, b2, g2, bt2)

    out = residual_block(x, params)
    jax.block_until_ready(out)

    ref = ref_forward(x, params)
    assert out.shape == x.shape
    max_err = float(jnp.max(jnp.abs(out - ref)))
    assert jnp.allclose(out, ref, atol=1e-4, rtol=1e-4), max_err
    print("KERNEL_OK")
</pallas_src>

<mosaic_0001>
module attributes {stable_mosaic.version = 11 : i64} {
  func.func @_residual_block_kernel(%arg0: i32, %arg1: memref<1x8x128xf32, #tpu.memory_space<vmem>>, %arg2: memref<36x64xf32, #tpu.memory_space<vmem>>, %arg3: memref<1x64xf32, #tpu.memory_space<vmem>>, %arg4: memref<4xf32, #tpu.memory_space<smem>>, %arg5: memref<4xf32, #tpu.memory_space<smem>>, %arg6: memref<36x64xf32, #tpu.memory_space<vmem>>, %arg7: memref<1x64xf32, #tpu.memory_space<vmem>>, %arg8: memref<4xf32, #tpu.memory_space<smem>>, %arg9: memref<4xf32, #tpu.memory_space<smem>>, %arg10: memref<1x8x128xf32, #tpu.memory_space<vmem>>) attributes {dimension_semantics = [#tpu.dimension_semantics<parallel>], iteration_bounds = array<i64: 2>, scalar_prefetch = 0 : i64, scratch_operands = 0 : i64, tpu.core_type = #tpu.core_type<tc>, window_params = [{transform_indices = @transform_0, window_bounds = array<i64: 1, 8, 128>}, {pipeline_mode = #tpu.pipeline_mode<synchronous>, transform_indices = @transform_1, window_bounds = array<i64: 36, 64>}, {pipeline_mode = #tpu.pipeline_mode<synchronous>, transform_indices = @transform_2, window_bounds = array<i64: 1, 64>}, {transform_indices = @transform_3, window_bounds = array<i64: 4>}, {transform_indices = @transform_4, window_bounds = array<i64: 4>}, {pipeline_mode = #tpu.pipeline_mode<synchronous>, transform_indices = @transform_5, window_bounds = array<i64: 36, 64>}, {pipeline_mode = #tpu.pipeline_mode<synchronous>, transform_indices = @transform_6, window_bounds = array<i64: 1, 64>}, {transform_indices = @transform_7, window_bounds = array<i64: 4>}, {transform_indices = @transform_8, window_bounds = array<i64: 4>}, {transform_indices = @transform_9, window_bounds = array<i64: 1, 8, 128>}]} {
    %c0 = arith.constant 0 : index
    %c0_0 = arith.constant 0 : index
    %c0_1 = arith.constant 0 : index
    %0 = vector.load %arg1[%c0, %c0_0, %c0_1] : memref<1x8x128xf32, #tpu.memory_space<vmem>>, vector<1x8x64xf32>
    %1 = vector.shape_cast %0 : vector<1x8x64xf32> to vector<8x64xf32>
    %c0_2 = arith.constant 0 : index
    %c0_3 = arith.constant 0 : index
    %c64 = arith.constant 64 : index
    %2 = vector.load %arg1[%c0_2, %c0_3, %c64] : memref<1x8x128xf32, #tpu.memory_space<vmem>>, vector<1x8x64xf32>
    %3 = vector.shape_cast %2 : vector<1x8x64xf32> to vector<8x64xf32>
    %4 = tpu.concatenate %1, %3 in 0 : vector<8x64xf32>, vector<8x64xf32> -> vector<16x64xf32>
    %c0_4 = arith.constant 0 : index
    %c0_5 = arith.constant 0 : index
    %5 = vector.load %arg3[%c0_4, %c0_5] : memref<1x64xf32, #tpu.memory_space<vmem>>, vector<1x64xf32>
    %6 = vector.shape_cast %5 : vector<1x64xf32> to vector<1x64xf32>
    %7 = vector.broadcast %6 : vector<1x64xf32> to vector<16x64xf32>
    %8 = vector.extract_strided_slice %4 {offsets = [0, 0], sizes = [16, 16], strides = [1, 1]} : vector<16x64xf32> to vector<16x16xf32>
    %9 = vector.extract_strided_slice %8 {offsets = [1, 0], sizes = [1, 16], strides = [1, 1]} : vector<16x16xf32> to vector<1x16xf32>
    %10 = vector.extract_strided_slice %8 {offsets = [14, 0], sizes = [1, 16], strides = [1, 1]} : vector<16x16xf32> to vector<1x16xf32>
    %11 = tpu.concatenate %9, %8, %10 in 0 : vector<1x16xf32>, vector<16x16xf32>, vector<1x16xf32> -> vector<18x16xf32>
    %12 = vector.extract_strided_slice %11 {offsets = [0, 1], sizes = [18, 1], strides = [1, 1]} : vector<18x16xf32> to vector<18x1xf32>
    %13 = vector.extract_strided_slice %11 {offsets = [0, 0], sizes = [18, 15], strides = [1, 1]} : vector<18x16xf32> to vector<18x15xf32>
    %14 = tpu.concatenate %12, %13 in 1 : vector<18x1xf32>, vector<18x15xf32> -> vector<18x16xf32>
    %15 = vector.extract_strided_slice %11 {offsets = [0, 1], sizes = [18, 15], strides = [1, 1]} : vector<18x16xf32> to vector<18x15xf32>
    %16 = vector.extract_strided_slice %11 {offsets = [0, 14], sizes = [18, 1], strides = [1, 1]} : vector<18x16xf32> to vector<18x1xf32>
    %17 = tpu.concatenate %15, %16 in 1 : vector<18x15xf32>, vector<18x1xf32> -> vector<18x16xf32>
    %18 = tpu.concatenate %14, %14, %14, %14 in 1 : vector<18x16xf32>, vector<18x16xf32>, vector<18x16xf32>, vector<18x16xf32> -> vector<18x64xf32>
    %19 = tpu.concatenate %11, %11, %11, %11 in 1 : vector<18x16xf32>, vector<18x16xf32>, vector<18x16xf32>, vector<18x16xf32> -> vector<18x64xf32>
    %20 = tpu.concatenate %17, %17, %17, %17 in 1 : vector<18x16xf32>, vector<18x16xf32>, vector<18x16xf32>, vector<18x16xf32> -> vector<18x64xf32>
    %21 = vector.extract_strided_slice %18 {offsets = [0, 0], sizes = [16, 64], strides = [1, 1]} : vector<18x64xf32> to vector<16x64xf32>
    %c0_6 = arith.constant 0 : index
    %c0_7 = arith.constant 0 : index
    %22 = vector.load %arg2[%c0_6, %c0_7] : memref<36x64xf32, #tpu.memory_space<vmem>>, vector<1x64xf32>
    %23 = vector.broadcast %22 : vector<1x64xf32> to vector<16x64xf32>
    %24 = arith.mulf %21, %23 : vector<16x64xf32>
    %25 = arith.addf %7, %24 : vector<16x64xf32>
    %26 = vector.extract_strided_slice %19 {offsets = [0, 0], sizes = [16, 64], strides = [1, 1]} : vector<18x64xf32> to vector<16x64xf32>
    %c4 = arith.constant 4 : index
    %c0_8 = arith.constant 0 : index
    %27 = vector.load %arg2[%c4, %c0_8] : memref<36x64xf32, #tpu.memory_space<vmem>>, vector<1x64xf32>
    %28 = vector.broadcast %27 : vector<1x64xf32> to vector<16x64xf32>
    %29 = arith.mulf %26, %28 : vector<16x64xf32>
    %30 = arith.addf %25, %29 : vector<16x64xf32>
    %31 = vector.extract_strided_slice %20 {offsets = [0, 0], sizes = [16, 64], strides = [1, 1]} : vector<18x64xf32> to vector<16x64xf32>
    %c8 = arith.constant 8 : index
    %c0_9 = arith.constant 0 : index
    %32 = vector.load %arg2[%c8, %c0_9] : memref<36x64xf32, #tpu.memory_space<vmem>>, vector<1x64xf32>
    %33 = vector.broadcast %32 : vector<1x64xf32> to vector<16x64xf32>
    %34 = arith.mulf %31, %33 : vector<16x64xf32>
    %35 = arith.addf %30, %34 : vector<16x64xf32>
    %36 = vector.extract_strided_slice %18 {offsets = [1, 0], sizes = [16, 64], strides = [1, 1]} : vector<18x64xf32> to vector<16x64xf32>
    %c12 = arith.constant 12 : index
    %c0_10 = arith.constant 0 : index
    %37 = vector.load %arg2[%c12, %c0_10] : memref<36x64xf32, #tpu.memory_space<vmem>>, vector<1x64xf32>
    %38 = vector.broadcast %37 : vector<1x64xf32> to vector<16x64xf32>
    %39 = arith.mulf %36, %38 : vector<16x64xf32>
    %40 = arith.addf %35, %39 : vector<16x64xf32>
    %41 = vector.extract_strided_slice %19 {offsets = [1, 0], sizes = [16, 64], strides = [1, 1]} : vector<18x64xf32> to vector<16x64xf32>
    %c16 = arith.constant 16 : index
    %c0_11 = arith.constant 0 : index
    %42 = vector.load %arg2[%c16, %c0_11] : memref<36x64xf32, #tpu.memory_space<vmem>>, vector<1x64xf32>
    %43 = vector.broadcast %42 : vector<1x64xf32> to vector<16x64xf32>
    %44 = arith.mulf %41, %43 : vector<16x64xf32>
    %45 = arith.addf %40, %44 : vector<16x64xf32>
    %46 = vector.extract_strided_slice %20 {offsets = [1, 0], sizes = [16, 64], strides = [1, 1]} : vector<18x64xf32> to vector<16x64xf32>
    %c20 = arith.constant 20 : index
    %c0_12 = arith.constant 0 : index
    %47 = vector.load %arg2[%c20, %c0_12] : memref<36x64xf32, #tpu.memory_space<vmem>>, vector<1x64xf32>
    %48 = vector.broadcast %47 : vector<1x64xf32> to vector<16x64xf32>
    %49 = arith.mulf %46, %48 : vector<16x64xf32>
    %50 = arith.addf %45, %49 : vector<16x64xf32>
    %51 = vector.extract_strided_slice %18 {offsets = [2, 0], sizes = [16, 64], strides = [1, 1]} : vector<18x64xf32> to vector<16x64xf32>
    %c24 = arith.constant 24 : index
    %c0_13 = arith.constant 0 : index
    %52 = vector.load %arg2[%c24, %c0_13] : memref<36x64xf32, #tpu.memory_space<vmem>>, vector<1x64xf32>
    %53 = vector.broadcast %52 : vector<1x64xf32> to vector<16x64xf32>
    %54 = arith.mulf %51, %53 : vector<16x64xf32>
    %55 = arith.addf %50, %54 : vector<16x64xf32>
    %56 = vector.extract_strided_slice %19 {offsets = [2, 0], sizes = [16, 64], strides = [1, 1]} : vector<18x64xf32> to vector<16x64xf32>
    %c28 = arith.constant 28 : index
    %c0_14 = arith.constant 0 : index
    %57 = vector.load %arg2[%c28, %c0_14] : memref<36x64xf32, #tpu.memory_space<vmem>>, vector<1x64xf32>
    %58 = vector.broadcast %57 : vector<1x64xf32> to vector<16x64xf32>
    %59 = arith.mulf %56, %58 : vector<16x64xf32>
    %60 = arith.addf %55, %59 : vector<16x64xf32>
    %61 = vector.extract_strided_slice %20 {offsets = [2, 0], sizes = [16, 64], strides = [1, 1]} : vector<18x64xf32> to vector<16x64xf32>
    %c32 = arith.constant 32 : index
    %c0_15 = arith.constant 0 : index
    %62 = vector.load %arg2[%c32, %c0_15] : memref<36x64xf32, #tpu.memory_space<vmem>>, vector<1x64xf32>
    %63 = vector.broadcast %62 : vector<1x64xf32> to vector<16x64xf32>
    %64 = arith.mulf %61, %63 : vector<16x64xf32>
    %65 = arith.addf %60, %64 : vector<16x64xf32>
    %66 = vector.extract_strided_slice %4 {offsets = [0, 16], sizes = [16, 16], strides = [1, 1]} : vector<16x64xf32> to vector<16x16xf32>
    %67 = vector.extract_strided_slice %66 {offsets = [1, 0], sizes = [1, 16], strides = [1, 1]} : vector<16x16xf32> to vector<1x16xf32>
    %68 = vector.extract_strided_slice %66 {offsets = [14, 0], sizes = [1, 16], strides = [1, 1]} : vector<16x16xf32> to vector<1x16xf32>
    %69 = tpu.concatenate %67, %66, %68 in 0 : vector<1x16xf32>, vector<16x16xf32>, vector<1x16xf32> -> vector<18x16xf32>
    %70 = vector.extract_strided_slice %69 {offsets = [0, 1], sizes = [18, 1], strides = [1, 1]} : vector<18x16xf32> to vector<18x1xf32>
    %71 = vector.extract_strided_slice %69 {offsets = [0, 0], sizes = [18, 15], strides = [1, 1]} : vector<18x16xf32> to vector<18x15xf32>
    %72 = tpu.concatenate %70, %71 in 1 : vector<18x1xf32>, vector<18x15xf32> -> vector<18x16xf32>
    %73 = vector.extract_strided_slice %69 {offsets = [0, 1], sizes = [18, 15], strides = [1, 1]} : vector<18x16xf32> to vector<18x15xf32>
    %74 = vector.extract_strided_slice %69 {offsets = [0, 14], sizes = [18, 1], strides = [1, 1]} : vector<18x16xf32> to vector<18x1xf32>
    %75 = tpu.concatenate %73, %74 in 1 : vector<18x15xf32>, vector<18x1xf32> -> vector<18x16xf32>
    %76 = tpu.concatenate %72, %72, %72, %72 in 1 : vector<18x16xf32>, vector<18x16xf32>, vector<18x16xf32>, vector<18x16xf32> -> vector<18x64xf32>
    %77 = tpu.concatenate %69, %69, %69, %69 in 1 : vector<18x16xf32>, vector<18x16xf32>, vector<18x16xf32>, vector<18x16xf32> -> vector<18x64xf32>
    %78 = tpu.concatenate %75, %75, %75, %75 in 1 : vector<18x16xf32>, vector<18x16xf32>, vector<18x16xf32>, vector<18x16xf32> -> vector<18x64xf32>
    %79 = vector.extract_strided_slice %76 {offsets = [0, 0], sizes = [16, 64], strides = [1, 1]} : vector<18x64xf32> to vector<16x64xf32>
    %c1 = arith.constant 1 : index
    %c0_16 = arith.constant 0 : index
    %80 = vector.load %arg2[%c1, %c0_16] : memref<36x64xf32, #tpu.memory_space<vmem>>, vector<1x64xf32>
    %81 = vector.broadcast %80 : vector<1x64xf32> to vector<16x64xf32>
    %82 = arith.mulf %79, %81 : vector<16x64xf32>
    %83 = arith.addf %65, %82 : vector<16x64xf32>
    %84 = vector.extract_strided_slice %77 {offsets = [0, 0], sizes = [16, 64], strides = [1, 1]} : vector<18x64xf32> to vector<16x64xf32>
    %c5 = arith.constant 5 : index
    %c0_17 = arith.constant 0 : index
    %85 = vector.load %arg2[%c5, %c0_17] : memref<36x64xf32, #tpu.memory_space<vmem>>, vector<1x64xf32>
    %86 = vector.broadcast %85 : vector<1x64xf32> to vector<16x64xf32>
    %87 = arith.mulf %84, %86 : vector<16x64xf32>
    %88 = arith.addf %83, %87 : vector<16x64xf32>
    %89 = vector.extract_strided_slice %78 {offsets = [0, 0], sizes = [16, 64], strides = [1, 1]} : vector<18x64xf32> to vector<16x64xf32>
    %c9 = arith.constant 9 : index
    %c0_18 = arith.constant 0 : index
    %90 = vector.load %arg2[%c9, %c0_18] : memref<36x64xf32, #tpu.memory_space<vmem>>, vector<1x64xf32>
    %91 = vector.broadcast %90 : vector<1x64xf32> to vector<16x64xf32>
    %92 = arith.mulf %89, %91 : vector<16x64xf32>
    %93 = arith.addf %88, %92 : vector<16x64xf32>
    %94 = vector.extract_strided_slice %76 {offsets = [1, 0], sizes = [16, 64], strides = [1, 1]} : vector<18x64xf32> to vector<16x64xf32>
    %c13 = arith.constant 13 : index
    %c0_19 = arith.constant 0 : index
    %95 = vector.load %arg2[%c13, %c0_19] : memref<36x64xf32, #tpu.memory_space<vmem>>, vector<1x64xf32>
    %96 = vector.broadcast %95 : vector<1x64xf32> to vector<16x64xf32>
    %97 = arith.mulf %94, %96 : vector<16x64xf32>
    %98 = arith.addf %93, %97 : vector<16x64xf32>
    %99 = vector.extract_strided_slice %77 {offsets = [1, 0], sizes = [16, 64], strides = [1, 1]} : vector<18x64xf32> to vector<16x64xf32>
    %c17 = arith.constant 17 : index
    %c0_20 = arith.constant 0 : index
    %100 = vector.load %arg2[%c17, %c0_20] : memref<36x64xf32, #tpu.memory_space<vmem>>, vector<1x64xf32>
    %101 = vector.broadcast %100 : vector<1x64xf32> to vector<16x64xf32>
    %102 = arith.mulf %99, %101 : vector<16x64xf32>
    %103 = arith.addf %98, %102 : vector<16x64xf32>
    %104 = vector.extract_strided_slice %78 {offsets = [1, 0], sizes = [16, 64], strides = [1, 1]} : vector<18x64xf32> to vector<16x64xf32>
    %c21 = arith.constant 21 : index
    %c0_21 = arith.constant 0 : index
    %105 = vector.load %arg2[%c21, %c0_21] : memref<36x64xf32, #tpu.memory_space<vmem>>, vector<1x64xf32>
    %106 = vector.broadcast %105 : vector<1x64xf32> to vector<16x64xf32>
    %107 = arith.mulf %104, %106 : vector<16x64xf32>
    %108 = arith.addf %103, %107 : vector<16x64xf32>
    %109 = vector.extract_strided_slice %76 {offsets = [2, 0], sizes = [16, 64], strides = [1, 1]} : vector<18x64xf32> to vector<16x64xf32>
    %c25 = arith.constant 25 : index
    %c0_22 = arith.constant 0 : index
    %110 = vector.load %arg2[%c25, %c0_22] : memref<36x64xf32, #tpu.memory_space<vmem>>, vector<1x64xf32>
    %111 = vector.broadcast %110 : vector<1x64xf32> to vector<16x64xf32>
    %112 = arith.mulf %109, %111 : vector<16x64xf32>
    %113 = arith.addf %108, %112 : vector<16x64xf32>
    %114 = vector.extract_strided_slice %77 {offsets = [2, 0], sizes = [16, 64], strides = [1, 1]} : vector<18x64xf32> to vector<16x64xf32>
    %c29 = arith.constant 29 : index
    %c0_23 = arith.constant 0 : index
    %115 = vector.load %arg2[%c29, %c0_23] : memref<36x64xf32, #tpu.memory_space<vmem>>, vector<1x64xf32>
    %116 = vector.broadcast %115 : vector<1x64xf32> to vector<16x64xf32>
    %117 = arith.mulf %114, %116 : vector<16x64xf32>
    %118 = arith.addf %113, %117 : vector<16x64xf32>
    %119 = vector.extract_strided_slice %78 {offsets = [2, 0], sizes = [16, 64], strides = [1, 1]} : vector<18x64xf32> to vector<16x64xf32>
    %c33 = arith.constant 33 : index
    %c0_24 = arith.constant 0 : index
    %120 = vector.load %arg2[%c33, %c0_24] : memref<36x64xf32, #tpu.memory_space<vmem>>, vector<1x64xf32>
    %121 = vector.broadcast %120 : vector<1x64xf32> to vector<16x64xf32>
    %122 = arith.mulf %119, %121 : vector<16x64xf32>
    %123 = arith.addf %118, %122 : vector<16x64xf32>
    %124 = vector.extract_strided_slice %4 {offsets = [0, 32], sizes = [16, 16], strides = [1, 1]} : vector<16x64xf32> to vector<16x16xf32>
    %125 = vector.extract_strided_slice %124 {offsets = [1, 0], sizes = [1, 16], strides = [1, 1]} : vector<16x16xf32> to vector<1x16xf32>
    %126 = vector.extract_strided_slice %124 {offsets = [14, 0], sizes = [1, 16], strides = [1, 1]} : vector<16x16xf32> to vector<1x16xf32>
    %127 = tpu.concatenate %125, %124, %126 in 0 : vector<1x16xf32>, vector<16x16xf32>, vector<1x16xf32> -> vector<18x16xf32>
    %128 = vector.extract_strided_slice %127 {offsets = [0, 1], sizes = [18, 1], strides = [1, 1]} : vector<18x16xf32> to vector<18x1xf32>
    %129 = vector.extract_strided_slice %127 {offsets = [0, 0], sizes = [18, 15], strides = [1, 1]} : vector<18x16xf32> to vector<18x15xf32>
    %130 = tpu.concatenate %128, %129 in 1 : vector<18x1xf32>, vector<18x15xf32> -> vector<18x16xf32>
    %131 = vector.extract_strided_slice %127 {offsets = [0, 1], sizes = [18, 15], strides = [1, 1]} : vector<18x16xf32> to vector<18x15xf32>
    %132 = vector.extract_strided_slice %127 {offsets = [0, 14], sizes = [18, 1], strides = [1, 1]} : vector<18x16xf32> to vector<18x1xf32>
    %133 = tpu.concatenate %131, %132 in 1 : vector<18x15xf32>, vector<18x1xf32> -> vector<18x16xf32>
    %134 = tpu.concatenate %130, %130, %130, %130 in 1 : vector<18x16xf32>, vector<18x16xf32>, vector<18x16xf32>, vector<18x16xf32> -> vector<18x64xf32>
    %135 = tpu.concatenate %127, %127, %127, %127 in 1 : vector<18x16xf32>, vector<18x16xf32>, vector<18x16xf32>, vector<18x16xf32> -> vector<18x64xf32>
    %136 = tpu.concatenate %133, %133, %133, %133 in 1 : vector<18x16xf32>, vector<18x16xf32>, vector<18x16xf32>, vector<18x16xf32> -> vector<18x64xf32>
    %137 = vector.extract_strided_slice %134 {offsets = [0, 0], sizes = [16, 64], strides = [1, 1]} : vector<18x64xf32> to vector<16x64xf32>
    %c2 = arith.constant 2 : index
    %c0_25 = arith.constant 0 : index
    %138 = vector.load %arg2[%c2, %c0_25] : memref<36x64xf32, #tpu.memory_space<vmem>>, vector<1x64xf32>
    %139 = vector.broadcast %138 : vector<1x64xf32> to vector<16x64xf32>
    %140 = arith.mulf %137, %139 : vector<16x64xf32>
    %141 = arith.addf %123, %140 : vector<16x64xf32>
    %142 = vector.extract_strided_slice %135 {offsets = [0, 0], sizes = [16, 64], strides = [1, 1]} : vector<18x64xf32> to vector<16x64xf32>
    %c6 = arith.constant 6 : index
    %c0_26 = arith.constant 0 : index
    %143 = vector.load %arg2[%c6, %c0_26] : memref<36x64xf32, #tpu.memory_space<vmem>>, vector<1x64xf32>
    %144 = vector.broadcast %143 : vector<1x64xf32> to vector<16x64xf32>
    %145 = arith.mulf %142, %144 : vector<16x64xf32>
    %146 = arith.addf %141, %145 : vector<16x64xf32>
    %147 = vector.extract_strided_slice %136 {offsets = [0, 0], sizes = [16, 64], strides = [1, 1]} : vector<18x64xf32> to vector<16x64xf32>
    %c10 = arith.constant 10 : index
    %c0_27 = arith.constant 0 : index
    %148 = vector.load %arg2[%c10, %c0_27] : memref<36x64xf32, #tpu.memory_space<vmem>>, vector<1x64xf32>
    %149 = vector.broadcast %148 : vector<1x64xf32> to vector<16x64xf32>
    %150 = arith.mulf %147, %149 : vector<16x64xf32>
    %151 = arith.addf %146, %150 : vector<16x64xf32>
    %152 = vector.extract_strided_slice %134 {offsets = [1, 0], sizes = [16, 64], strides = [1, 1]} : vector<18x64xf32> to vector<16x64xf32>
    %c14 = arith.constant 14 : index
    %c0_28 = arith.constant 0 : index
    %153 = vector.load %arg2[%c14, %c0_28] : memref<36x64xf32, #tpu.memory_space<vmem>>, vector<1x64xf32>
    %154 = vector.broadcast %153 : vector<1x64xf32> to vector<16x64xf32>
    %155 = arith.mulf %152, %154 : vector<16x64xf32>
    %156 = arith.addf %151, %155 : vector<16x64xf32>
    %157 = vector.extract_strided_slice %135 {offsets = [1, 0], sizes = [16, 64], strides = [1, 1]} : vector<18x64xf32> to vector<16x64xf32>
    %c18 = arith.constant 18 : index
    %c0_29 = arith.constant 0 : index
    %158 = vector.load %arg2[%c18, %c0_29] : memref<36x64xf32, #tpu.memory_space<vmem>>, vector<1x64xf32>
    %159 = vector.broadcast %158 : vector<1x64xf32> to vector<16x64xf32>
    %160 = arith.mulf %157, %159 : vector<16x64xf32>
    %161 = arith.addf %156, %160 : vector<16x64xf32>
    %162 = vector.extract_strided_slice %136 {offsets = [1, 0], sizes = [16, 64], strides = [1, 1]} : vector<18x64xf32> to vector<16x64xf32>
    %c22 = arith.constant 22 : index
    %c0_30 = arith.constant 0 : index
    %163 = vector.load %arg2[%c22, %c0_30] : memref<36x64xf32, #tpu.memory_space<vmem>>, vector<1x64xf32>
    %164 = vector.broadcast %163 : vector<1x64xf32> to vector<16x64xf32>
    %165 = arith.mulf %162, %164 : vector<16x64xf32>
    %166 = arith.addf %161, %165 : vector<16x64xf32>
    %167 = vector.extract_strided_slice %134 {offsets = [2, 0], sizes = [16, 64], strides = [1, 1]} : vector<18x64xf32> to vector<16x64xf32>
    %c26 = arith.constant 26 : index
    %c0_31 = arith.constant 0 : index
    %168 = vector.load %arg2[%c26, %c0_31] : memref<36x64xf32, #tpu.memory_space<vmem>>, vector<1x64xf32>
    %169 = vector.broadcast %168 : vector<1x64xf32> to vector<16x64xf32>
    %170 = arith.mulf %167, %169 : vector<16x64xf32>
    %171 = arith.addf %166, %170 : vector<16x64xf32>
    %172 = vector.extract_strided_slice %135 {offsets = [2, 0], sizes = [16, 64], strides = [1, 1]} : vector<18x64xf32> to vector<16x64xf32>
    %c30 = arith.constant 30 : index
    %c0_32 = arith.constant 0 : index
    %173 = vector.load %arg2[%c30, %c0_32] : memref<36x64xf32, #tpu.memory_space<vmem>>, vector<1x64xf32>
    %174 = vector.broadcast %173 : vector<1x64xf32> to vector<16x64xf32>
    %175 = arith.mulf %172, %174 : vector<16x64xf32>
    %176 = arith.addf %171, %175 : vector<16x64xf32>
    %177 = vector.extract_strided_slice %136 {offsets = [2, 0], sizes = [16, 64], strides = [1, 1]} : vector<18x64xf32> to vector<16x64xf32>
    %c34 = arith.constant 34 : index
    %c0_33 = arith.constant 0 : index
    %178 = vector.load %arg2[%c34, %c0_33] : memref<36x64xf32, #tpu.memory_space<vmem>>, vector<1x64xf32>
    %179 = vector.broadcast %178 : vector<1x64xf32> to vector<16x64xf32>
    %180 = arith.mulf %177, %179 : vector<16x64xf32>
    %181 = arith.addf %176, %180 : vector<16x64xf32>
    %182 = vector.extract_strided_slice %4 {offsets = [0, 48], sizes = [16, 16], strides = [1, 1]} : vector<16x64xf32> to vector<16x16xf32>
    %183 = vector.extract_strided_slice %182 {offsets = [1, 0], sizes = [1, 16], strides = [1, 1]} : vector<16x16xf32> to vector<1x16xf32>
    %184 = vector.extract_strided_slice %182 {offsets = [14, 0], sizes = [1, 16], strides = [1, 1]} : vector<16x16xf32> to vector<1x16xf32>
    %185 = tpu.concatenate %183, %182, %184 in 0 : vector<1x16xf32>, vector<16x16xf32>, vector<1x16xf32> -> vector<18x16xf32>
    %186 = vector.extract_strided_slice %185 {offsets = [0, 1], sizes = [18, 1], strides = [1, 1]} : vector<18x16xf32> to vector<18x1xf32>
    %187 = vector.extract_strided_slice %185 {offsets = [0, 0], sizes = [18, 15], strides = [1, 1]} : vector<18x16xf32> to vector<18x15xf32>
    %188 = tpu.concatenate %186, %187 in 1 : vector<18x1xf32>, vector<18x15xf32> -> vector<18x16xf32>
    %189 = vector.extract_strided_slice %185 {offsets = [0, 1], sizes = [18, 15], strides = [1, 1]} : vector<18x16xf32> to vector<18x15xf32>
    %190 = vector.extract_strided_slice %185 {offsets = [0, 14], sizes = [18, 1], strides = [1, 1]} : vector<18x16xf32> to vector<18x1xf32>
    %191 = tpu.concatenate %189, %190 in 1 : vector<18x15xf32>, vector<18x1xf32> -> vector<18x16xf32>
    %192 = tpu.concatenate %188, %188, %188, %188 in 1 : vector<18x16xf32>, vector<18x16xf32>, vector<18x16xf32>, vector<18x16xf32> -> vector<18x64xf32>
    %193 = tpu.concatenate %185, %185, %185, %185 in 1 : vector<18x16xf32>, vector<18x16xf32>, vector<18x16xf32>, vector<18x16xf32> -> vector<18x64xf32>
    %194 = tpu.concatenate %191, %191, %191, %191 in 1 : vector<18x16xf32>, vector<18x16xf32>, vector<18x16xf32>, vector<18x16xf32> -> vector<18x64xf32>
    %195 = vector.extract_strided_slice %192 {offsets = [0, 0], sizes = [16, 64], strides = [1, 1]} : vector<18x64xf32> to vector<16x64xf32>
    %c3 = arith.constant 3 : index
    %c0_34 = arith.constant 0 : index
    %196 = vector.load %arg2[%c3, %c0_34] : memref<36x64xf32, #tpu.memory_space<vmem>>, vector<1x64xf32>
    %197 = vector.broadcast %196 : vector<1x64xf32> to vector<16x64xf32>
    %198 = arith.mulf %195, %197 : vector<16x64xf32>
    %199 = arith.addf %181, %198 : vector<16x64xf32>
    %200 = vector.extract_strided_slice %193 {offsets = [0, 0], sizes = [16, 64], strides = [1, 1]} : vector<18x64xf32> to vector<16x64xf32>
    %c7 = arith.constant 7 : index
    %c0_35 = arith.constant 0 : index
    %201 = vector.load %arg2[%c7, %c0_35] : memref<36x64xf32, #tpu.memory_space<vmem>>, vector<1x64xf32>
    %202 = vector.broadcast %201 : vector<1x64xf32> to vector<16x64xf32>
    %203 = arith.mulf %200, %202 : vector<16x64xf32>
    %204 = arith.addf %199, %203 : vector<16x64xf32>
    %205 = vector.extract_strided_slice %194 {offsets = [0, 0], sizes = [16, 64], strides = [1, 1]} : vector<18x64xf32> to vector<16x64xf32>
    %c11 = arith.constant 11 : index
    %c0_36 = arith.constant 0 : index
    %206 = vector.load %arg2[%c11, %c0_36] : memref<36x64xf32, #tpu.memory_space<vmem>>, vector<1x64xf32>
    %207 = vector.broadcast %206 : vector<1x64xf32> to vector<16x64xf32>
    %208 = arith.mulf %205, %207 : vector<16x64xf32>
    %209 = arith.addf %204, %208 : vector<16x64xf32>
    %210 = vector.extract_strided_slice %192 {offsets = [1, 0], sizes = [16, 64], strides = [1, 1]} : vector<18x64xf32> to vector<16x64xf32>
    %c15 = arith.constant 15 : index
    %c0_37 = arith.constant 0 : index
    %211 = vector.load %arg2[%c15, %c0_37] : memref<36x64xf32, #tpu.memory_space<vmem>>, vector<1x64xf32>
    %212 = vector.broadcast %211 : vector<1x64xf32> to vector<16x64xf32>
    %213 = arith.mulf %210, %212 : vector<16x64xf32>
    %214 = arith.addf %209, %213 : vector<16x64xf32>
    %215 = vector.extract_strided_slice %193 {offsets = [1, 0], sizes = [16, 64], strides = [1, 1]} : vector<18x64xf32> to vector<16x64xf32>
    %c19 = arith.constant 19 : index
    %c0_38 = arith.constant 0 : index
    %216 = vector.load %arg2[%c19, %c0_38] : memref<36x64xf32, #tpu.memory_space<vmem>>, vector<1x64xf32>
    %217 = vector.broadcast %216 : vector<1x64xf32> to vector<16x64xf32>
    %218 = arith.mulf %215, %217 : vector<16x64xf32>
    %219 = arith.addf %214, %218 : vector<16x64xf32>
    %220 = vector.extract_strided_slice %194 {offsets = [1, 0], sizes = [16, 64], strides = [1, 1]} : vector<18x64xf32> to vector<16x64xf32>
    %c23 = arith.constant 23 : index
    %c0_39 = arith.constant 0 : index
    %221 = vector.load %arg2[%c23, %c0_39] : memref<36x64xf32, #tpu.memory_space<vmem>>, vector<1x64xf32>
    %222 = vector.broadcast %221 : vector<1x64xf32> to vector<16x64xf32>
    %223 = arith.mulf %220, %222 : vector<16x64xf32>
    %224 = arith.addf %219, %223 : vector<16x64xf32>
    %225 = vector.extract_strided_slice %192 {offsets = [2, 0], sizes = [16, 64], strides = [1, 1]} : vector<18x64xf32> to vector<16x64xf32>
    %c27 = arith.constant 27 : index
    %c0_40 = arith.constant 0 : index
    %226 = vector.load %arg2[%c27, %c0_40] : memref<36x64xf32, #tpu.memory_space<vmem>>, vector<1x64xf32>
    %227 = vector.broadcast %226 : vector<1x64xf32> to vector<16x64xf32>
    %228 = arith.mulf %225, %227 : vector<16x64xf32>
    %229 = arith.addf %224, %228 : vector<16x64xf32>
    %230 = vector.extract_strided_slice %193 {offsets = [2, 0], sizes = [16, 64], strides = [1, 1]} : vector<18x64xf32> to vector<16x64xf32>
    %c31 = arith.constant 31 : index
    %c0_41 = arith.constant 0 : index
    %231 = vector.load %arg2[%c31, %c0_41] : memref<36x64xf32, #tpu.memory_space<vmem>>, vector<1x64xf32>
    %232 = vector.broadcast %231 : vector<1x64xf32> to vector<16x64xf32>
    %233 = arith.mulf %230, %232 : vector<16x64xf32>
    %234 = arith.addf %229, %233 : vector<16x64xf32>
    %235 = vector.extract_strided_slice %194 {offsets = [2, 0], sizes = [16, 64], strides = [1, 1]} : vector<18x64xf32> to vector<16x64xf32>
    %c35 = arith.constant 35 : index
    %c0_42 = arith.constant 0 : index
    %236 = vector.load %arg2[%c35, %c0_42] : memref<36x64xf32, #tpu.memory_space<vmem>>, vector<1x64xf32>
    %237 = vector.broadcast %236 : vector<1x64xf32> to vector<16x64xf32>
    %238 = arith.mulf %235, %237 : vector<16x64xf32>
    %239 = arith.addf %234, %238 : vector<16x64xf32>
    %cst = arith.constant dense<0.000000e+00> : vector<64xf32>
    %240 = vector.multi_reduction <add>, %239, %cst [0] : vector<16x64xf32> to vector<64xf32>
    %241 = vector.shape_cast %240 : vector<64xf32> to vector<1x64xf32>
    %242 = arith.mulf %239, %239 : vector<16x64xf32>
    %cst_43 = arith.constant dense<0.000000e+00> : vector<64xf32>
    %243 = vector.multi_reduction <add>, %242, %cst_43 [0] : vector<16x64xf32> to vector<64xf32>
    %244 = vector.shape_cast %243 : vector<64xf32> to vector<1x64xf32>
    %245 = vector.extract_strided_slice %241 {offsets = [0, 0], sizes = [1, 16], strides = [1, 1]} : vector<1x64xf32> to vector<1x16xf32>
    %cst_44 = arith.constant dense<0.000000e+00> : vector<1xf32>
    %246 = vector.multi_reduction <add>, %245, %cst_44 [1] : vector<1x16xf32> to vector<1xf32>
    %247 = vector.shape_cast %246 : vector<1xf32> to vector<1x1xf32>
    %248 = vector.extract_strided_slice %244 {offsets = [0, 0], sizes = [1, 16], strides = [1, 1]} : vector<1x64xf32> to vector<1x16xf32>
    %cst_45 = arith.constant dense<0.000000e+00> : vector<1xf32>
    %249 = vector.multi_reduction <add>, %248, %cst_45 [1] : vector<1x16xf32> to vector<1xf32>
    %250 = vector.shape_cast %249 : vector<1xf32> to vector<1x1xf32>
    %cst_46 = arith.constant 3.906250e-03 : f32
    %251 = vector.broadcast %cst_46 : f32 to vector<1x1xf32>
    %252 = arith.mulf %247, %251 : vector<1x1xf32>
    %cst_47 = arith.constant 3.906250e-03 : f32
    %253 = vector.broadcast %cst_47 : f32 to vector<1x1xf32>
    %254 = arith.mulf %250, %253 : vector<1x1xf32>
    %255 = arith.mulf %252, %252 : vector<1x1xf32>
    %256 = arith.subf %254, %255 : vector<1x1xf32>
    %c0_48 = arith.constant 0 : index
    %257 = memref.load %arg4[%c0_48] : memref<4xf32, #tpu.memory_space<smem>>
    %cst_49 = arith.constant 9.99999974E-6 : f32
    %258 = vector.broadcast %cst_49 : f32 to vector<1x1xf32>
    %259 = arith.addf %256, %258 : vector<1x1xf32>
    %260 = math.rsqrt %259 : vector<1x1xf32>
    %261 = vector.broadcast %257 : f32 to vector<1x1xf32>
    %262 = arith.mulf %261, %260 : vector<1x1xf32>
    %c0_50 = arith.constant 0 : index
    %263 = memref.load %arg5[%c0_50] : memref<4xf32, #tpu.memory_space<smem>>
    %264 = arith.mulf %252, %262 : vector<1x1xf32>
    %265 = vector.broadcast %263 : f32 to vector<1x1xf32>
    %266 = arith.subf %265, %264 : vector<1x1xf32>
    %267 = vector.shape_cast %262 : vector<1x1xf32> to vector<1x1xf32>
    %268 = vector.broadcast %267 : vector<1x1xf32> to vector<1x16xf32>
    %269 = vector.shape_cast %266 : vector<1x1xf32> to vector<1x1xf32>
    %270 = vector.broadcast %269 : vector<1x1xf32> to vector<1x16xf32>
    %271 = vector.extract_strided_slice %241 {offsets = [0, 16], sizes = [1, 16], strides = [1, 1]} : vector<1x64xf32> to vector<1x16xf32>
    %cst_51 = arith.constant dense<0.000000e+00> : vector<1xf32>
    %272 = vector.multi_reduction <add>, %271, %cst_51 [1] : vector<1x16xf32> to vector<1xf32>
    %273 = vector.shape_cast %272 : vector<1xf32> to vector<1x1xf32>
    %274 = vector.extract_strided_slice %244 {offsets = [0, 16], sizes = [1, 16], strides = [1, 1]} : vector<1x64xf32> to vector<1x16xf32>
    %cst_52 = arith.constant dense<0.000000e+00> : vector<1xf32>
    %275 = vector.multi_reduction <add>, %274, %cst_52 [1] : vector<1x16xf32> to vector<1xf32>
    %276 = vector.shape_cast %275 : vector<1xf32> to vector<1x1xf32>
    %cst_53 = arith.constant 3.906250e-03 : f32
    %277 = vector.broadcast %cst_53 : f32 to vector<1x1xf32>
    %278 = arith.mulf %273, %277 : vector<1x1xf32>
    %cst_54 = arith.constant 3.906250e-03 : f32
    %279 = vector.broadcast %cst_54 : f32 to vector<1x1xf32>
    %280 = arith.mulf %276, %279 : vector<1x1xf32>
    %281 = arith.mulf %278, %278 : vector<1x1xf32>
    %282 = arith.subf %280, %281 : vector<1x1xf32>
    %c1_55 = arith.constant 1 : index
    %283 = memref.load %arg4[%c1_55] : memref<4xf32, #tpu.memory_space<smem>>
    %cst_56 = arith.constant 9.99999974E-6 : f32
    %284 = vector.broadcast %cst_56 : f32 to vector<1x1xf32>
    %285 = arith.addf %282, %284 : vector<1x1xf32>
    %286 = math.rsqrt %285 : vector<1x1xf32>
    %287 = vector.broadcast %283 : f32 to vector<1x1xf32>
    %288 = arith.mulf %287, %286 : vector<1x1xf32>
    %c1_57 = arith.constant 1 : index
    %289 = memref.load %arg5[%c1_57] : memref<4xf32, #tpu.memory_space<smem>>
    %290 = arith.mulf %278, %288 : vector<1x1xf32>
    %291 = vector.broadcast %289 : f32 to vector<1x1xf32>
    %292 = arith.subf %291, %290 : vector<1x1xf32>
    %293 = vector.shape_cast %288 : vector<1x1xf32> to vector<1x1xf32>
    %294 = vector.broadcast %293 : vector<1x1xf32> to vector<1x16xf32>
    %295 = vector.shape_cast %292 : vector<1x1xf32> to vector<1x1xf32>
    %296 = vector.broadcast %295 : vector<1x1xf32> to vector<1x16xf32>
    %297 = vector.extract_strided_slice %241 {offsets = [0, 32], sizes = [1, 16], strides = [1, 1]} : vector<1x64xf32> to vector<1x16xf32>
    %cst_58 = arith.constant dense<0.000000e+00> : vector<1xf32>
    %298 = vector.multi_reduction <add>, %297, %cst_58 [1] : vector<1x16xf32> to vector<1xf32>
    %299 = vector.shape_cast %298 : vector<1xf32> to vector<1x1xf32>
    %300 = vector.extract_strided_slice %244 {offsets = [0, 32], sizes = [1, 16], strides = [1, 1]} : vector<1x64xf32> to vector<1x16xf32>
    %cst_59 = arith.constant dense<0.000000e+00> : vector<1xf32>
    %301 = vector.multi_reduction <add>, %300, %cst_59 [1] : vector<1x16xf32> to vector<1xf32>
    %302 = vector.shape_cast %301 : vector<1xf32> to vector<1x1xf32>
    %cst_60 = arith.constant 3.906250e-03 : f32
    %303 = vector.broadcast %cst_60 : f32 to vector<1x1xf32>
    %304 = arith.mulf %299, %303 : vector<1x1xf32>
    %cst_61 = arith.constant 3.906250e-03 : f32
    %305 = vector.broadcast %cst_61 : f32 to vector<1x1xf32>
    %306 = arith.mulf %302, %305 : vector<1x1xf32>
    %307 = arith.mulf %304, %304 : vector<1x1xf32>
    %308 = arith.subf %306, %307 : vector<1x1xf32>
    %c2_62 = arith.constant 2 : index
    %309 = memref.load %arg4[%c2_62] : memref<4xf32, #tpu.memory_space<smem>>
    %cst_63 = arith.constant 9.99999974E-6 : f32
    %310 = vector.broadcast %cst_63 : f32 to vector<1x1xf32>
    %311 = arith.addf %308, %310 : vector<1x1xf32>
    %312 = math.rsqrt %311 : vector<1x1xf32>
    %313 = vector.broadcast %309 : f32 to vector<1x1xf32>
    %314 = arith.mulf %313, %312 : vector<1x1xf32>
    %c2_64 = arith.constant 2 : index
    %315 = memref.load %arg5[%c2_64] : memref<4xf32, #tpu.memory_space<smem>>
    %316 = arith.mulf %304, %314 : vector<1x1xf32>
    %317 = vector.broadcast %315 : f32 to vector<1x1xf32>
    %318 = arith.subf %317, %316 : vector<1x1xf32>
    %319 = vector.shape_cast %314 : vector<1x1xf32> to vector<1x1xf32>
    %320 = vector.broadcast %319 : vector<1x1xf32> to vector<1x16xf32>
    %321 = vector.shape_cast %318 : vector<1x1xf32> to vector<1x1xf32>
    %322 = vector.broadcast %321 : vector<1x1xf32> to vector<1x16xf32>
    %323 = vector.extract_strided_slice %241 {offsets = [0, 48], sizes = [1, 16], strides = [1, 1]} : vector<1x64xf32> to vector<1x16xf32>
    %cst_65 = arith.constant dense<0.000000e+00> : vector<1xf32>
    %324 = vector.multi_reduction <add>, %323, %cst_65 [1] : vector<1x16xf32> to vector<1xf32>
    %325 = vector.shape_cast %324 : vector<1xf32> to vector<1x1xf32>
    %326 = vector.extract_strided_slice %244 {offsets = [0, 48], sizes = [1, 16], strides = [1, 1]} : vector<1x64xf32> to vector<1x16xf32>
    %cst_66 = arith.constant dense<0.000000e+00> : vector<1xf32>
    %327 = vector.multi_reduction <add>, %326, %cst_66 [1] : vector<1x16xf32> to vector<1xf32>
    %328 = vector.shape_cast %327 : vector<1xf32> to vector<1x1xf32>
    %cst_67 = arith.constant 3.906250e-03 : f32
    %329 = vector.broadcast %cst_67 : f32 to vector<1x1xf32>
    %330 = arith.mulf %325, %329 : vector<1x1xf32>
    %cst_68 = arith.constant 3.906250e-03 : f32
    %331 = vector.broadcast %cst_68 : f32 to vector<1x1xf32>
    %332 = arith.mulf %328, %331 : vector<1x1xf32>
    %333 = arith.mulf %330, %330 : vector<1x1xf32>
    %334 = arith.subf %332, %333 : vector<1x1xf32>
    %c3_69 = arith.constant 3 : index
    %335 = memref.load %arg4[%c3_69] : memref<4xf32, #tpu.memory_space<smem>>
    %cst_70 = arith.constant 9.99999974E-6 : f32
    %336 = vector.broadcast %cst_70 : f32 to vector<1x1xf32>
    %337 = arith.addf %334, %336 : vector<1x1xf32>
    %338 = math.rsqrt %337 : vector<1x1xf32>
    %339 = vector.broadcast %335 : f32 to vector<1x1xf32>
    %340 = arith.mulf %339, %338 : vector<1x1xf32>
    %c3_71 = arith.constant 3 : index
    %341 = memref.load %arg5[%c3_71] : memref<4xf32, #tpu.memory_space<smem>>
    %342 = arith.mulf %330, %340 : vector<1x1xf32>
    %343 = vector.broadcast %341 : f32 to vector<1x1xf32>
    %344 = arith.subf %343, %342 : vector<1x1xf32>
    %345 = vector.shape_cast %340 : vector<1x1xf32> to vector<1x1xf32>
    %346 = vector.broadcast %345 : vector<1x1xf32> to vector<1x16xf32>
    %347 = vector.shape_cast %344 : vector<1x1xf32> to vector<1x1xf32>
    %348 = vector.broadcast %347 : vector<1x1xf32> to vector<1x16xf32>
    %349 = tpu.concatenate %268, %294, %320, %346 in 1 : vector<1x16xf32>, vector<1x16xf32>, vector<1x16xf32>, vector<1x16xf32> -> vector<1x64xf32>
    %350 = tpu.concatenate %270, %296, %322, %348 in 1 : vector<1x16xf32>, vector<1x16xf32>, vector<1x16xf32>, vector<1x16xf32> -> vector<1x64xf32>
    %351 = vector.broadcast %349 : vector<1x64xf32> to vector<16x64xf32>
    %352 = arith.mulf %239, %351 : vector<16x64xf32>
    %353 = vector.broadcast %350 : vector<1x64xf32> to vector<16x64xf32>
    %354 = arith.addf %352, %353 : vector<16x64xf32>
    %cst_72 = arith.constant 0.000000e+00 : f32
    %355 = vector.broadcast %cst_72 : f32 to vector<16x64xf32>
    %356 = arith.maximumf %354, %355 : vector<16x64xf32>
    %c0_73 = arith.constant 0 : index
    %c0_74 = arith.constant 0 : index
    %357 = vector.load %arg7[%c0_73, %c0_74] : memref<1x64xf32, #tpu.memory_space<vmem>>, vector<1x64xf32>
    %358 = vector.shape_cast %357 : vector<1x64xf32> to vector<1x64xf32>
    %359 = vector.broadcast %358 : vector<1x64xf32> to vector<16x64xf32>
    %360 = vector.extract_strided_slice %356 {offsets = [0, 0], sizes = [16, 16], strides = [1, 1]} : vector<16x64xf32> to vector<16x16xf32>
    %361 = vector.extract_strided_slice %360 {offsets = [1, 0], sizes = [1, 16], strides = [1, 1]} : vector<16x16xf32> to vector<1x16xf32>
    %362 = vector.extract_strided_slice %360 {offsets = [14, 0], sizes = [1, 16], strides = [1, 1]} : vector<16x16xf32> to vector<1x16xf32>
    %363 = tpu.concatenate %361, %360, %362 in 0 : vector<1x16xf32>, vector<16x16xf32>, vector<1x16xf32> -> vector<18x16xf32>
    %364 = vector.extract_strided_slice %363 {offsets = [0, 1], sizes = [18, 1], strides = [1, 1]} : vector<18x16xf32> to vector<18x1xf32>
    %365 = vector.extract_strided_slice %363 {offsets = [0, 0], sizes = [18, 15], strides = [1, 1]} : vector<18x16xf32> to vector<18x15xf32>
    %366 = tpu.concatenate %364, %365 in 1 : vector<18x1xf32>, vector<18x15xf32> -> vector<18x16xf32>
    %367 = vector.extract_strided_slice %363 {offsets = [0, 1], sizes = [18, 15], strides = [1, 1]} : vector<18x16xf32> to vector<18x15xf32>
    %368 = vector.extract_strided_slice %363 {offsets = [0, 14], sizes = [18, 1], strides = [1, 1]} : vector<18x16xf32> to vector<18x1xf32>
    %369 = tpu.concatenate %367, %368 in 1 : vector<18x15xf32>, vector<18x1xf32> -> vector<18x16xf32>
    %370 = tpu.concatenate %366, %366, %366, %366 in 1 : vector<18x16xf32>, vector<18x16xf32>, vector<18x16xf32>, vector<18x16xf32> -> vector<18x64xf32>
    %371 = tpu.concatenate %363, %363, %363, %363 in 1 : vector<18x16xf32>, vector<18x16xf32>, vector<18x16xf32>, vector<18x16xf32> -> vector<18x64xf32>
    %372 = tpu.concatenate %369, %369, %369, %369 in 1 : vector<18x16xf32>, vector<18x16xf32>, vector<18x16xf32>, vector<18x16xf32> -> vector<18x64xf32>
    %373 = vector.extract_strided_slice %370 {offsets = [0, 0], sizes = [16, 64], strides = [1, 1]} : vector<18x64xf32> to vector<16x64xf32>
    %c0_75 = arith.constant 0 : index
    %c0_76 = arith.constant 0 : index
    %374 = vector.load %arg6[%c0_75, %c0_76] : memref<36x64xf32, #tpu.memory_space<vmem>>, vector<1x64xf32>
    %375 = vector.broadcast %374 : vector<1x64xf32> to vector<16x64xf32>
    %376 = arith.mulf %373, %375 : vector<16x64xf32>
    %377 = arith.addf %359, %376 : vector<16x64xf32>
    %378 = vector.extract_strided_slice %371 {offsets = [0, 0], sizes = [16, 64], strides = [1, 1]} : vector<18x64xf32> to vector<16x64xf32>
    %c4_77 = arith.constant 4 : index
    %c0_78 = arith.constant 0 : index
    %379 = vector.load %arg6[%c4_77, %c0_78] : memref<36x64xf32, #tpu.memory_space<vmem>>, vector<1x64xf32>
    %380 = vector.broadcast %379 : vector<1x64xf32> to vector<16x64xf32>
    %381 = arith.mulf %378, %380 : vector<16x64xf32>
    %382 = arith.addf %377, %381 : vector<16x64xf32>
    %383 = vector.extract_strided_slice %372 {offsets = [0, 0], sizes = [16, 64], strides = [1, 1]} : vector<18x64xf32> to vector<16x64xf32>
    %c8_79 = arith.constant 8 : index
    %c0_80 = arith.constant 0 : index
    %384 = vector.load %arg6[%c8_79, %c0_80] : memref<36x64xf32, #tpu.memory_space<vmem>>, vector<1x64xf32>
    %385 = vector.broadcast %384 : vector<1x64xf32> to vector<16x64xf32>
    %386 = arith.mulf %383, %385 : vector<16x64xf32>
    %387 = arith.addf %382, %386 : vector<16x64xf32>
    %388 = vector.extract_strided_slice %370 {offsets = [1, 0], sizes = [16, 64], strides = [1, 1]} : vector<18x64xf32> to vector<16x64xf32>
    %c12_81 = arith.constant 12 : index
    %c0_82 = arith.constant 0 : index
    %389 = vector.load %arg6[%c12_81, %c0_82] : memref<36x64xf32, #tpu.memory_space<vmem>>, vector<1x64xf32>
    %390 = vector.broadcast %389 : vector<1x64xf32> to vector<16x64xf32>
    %391 = arith.mulf %388, %390 : vector<16x64xf32>
    %392 = arith.addf %387, %391 : vector<16x64xf32>
    %393 = vector.extract_strided_slice %371 {offsets = [1, 0], sizes = [16, 64], strides = [1, 1]} : vector<18x64xf32> to vector<16x64xf32>
    %c16_83 = arith.constant 16 : index
    %c0_84 = arith.constant 0 : index
    %394 = vector.load %arg6[%c16_83, %c0_84] : memref<36x64xf32, #tpu.memory_space<vmem>>, vector<1x64xf32>
    %395 = vector.broadcast %394 : vector<1x64xf32> to vector<16x64xf32>
    %396 = arith.mulf %393, %395 : vector<16x64xf32>
    %397 = arith.addf %392, %396 : vector<16x64xf32>
    %398 = vector.extract_strided_slice %372 {offsets = [1, 0], sizes = [16, 64], strides = [1, 1]} : vector<18x64xf32> to vector<16x64xf32>
    %c20_85 = arith.constant 20 : index
    %c0_86 = arith.constant 0 : index
    %399 = vector.load %arg6[%c20_85, %c0_86] : memref<36x64xf32, #tpu.memory_space<vmem>>, vector<1x64xf32>
    %400 = vector.broadcast %399 : vector<1x64xf32> to vector<16x64xf32>
    %401 = arith.mulf %398, %400 : vector<16x64xf32>
    %402 = arith.addf %397, %401 : vector<16x64xf32>
    %403 = vector.extract_strided_slice %370 {offsets = [2, 0], sizes = [16, 64], strides = [1, 1]} : vector<18x64xf32> to vector<16x64xf32>
    %c24_87 = arith.constant 24 : index
    %c0_88 = arith.constant 0 : index
    %404 = vector.load %arg6[%c24_87, %c0_88] : memref<36x64xf32, #tpu.memory_space<vmem>>, vector<1x64xf32>
    %405 = vector.broadcast %404 : vector<1x64xf32> to vector<16x64xf32>
    %406 = arith.mulf %403, %405 : vector<16x64xf32>
    %407 = arith.addf %402, %406 : vector<16x64xf32>
    %408 = vector.extract_strided_slice %371 {offsets = [2, 0], sizes = [16, 64], strides = [1, 1]} : vector<18x64xf32> to vector<16x64xf32>
    %c28_89 = arith.constant 28 : index
    %c0_90 = arith.constant 0 : index
    %409 = vector.load %arg6[%c28_89, %c0_90] : memref<36x64xf32, #tpu.memory_space<vmem>>, vector<1x64xf32>
    %410 = vector.broadcast %409 : vector<1x64xf32> to vector<16x64xf32>
    %411 = arith.mulf %408, %410 : vector<16x64xf32>
    %412 = arith.addf %407, %411 : vector<16x64xf32>
    %413 = vector.extract_strided_slice %372 {offsets = [2, 0], sizes = [16, 64], strides = [1, 1]} : vector<18x64xf32> to vector<16x64xf32>
    %c32_91 = arith.constant 32 : index
    %c0_92 = arith.constant 0 : index
    %414 = vector.load %arg6[%c32_91, %c0_92] : memref<36x64xf32, #tpu.memory_space<vmem>>, vector<1x64xf32>
    %415 = vector.broadcast %414 : vector<1x64xf32> to vector<16x64xf32>
    %416 = arith.mulf %413, %415 : vector<16x64xf32>
    %417 = arith.addf %412, %416 : vector<16x64xf32>
    %418 = vector.extract_strided_slice %356 {offsets = [0, 16], sizes = [16, 16], strides = [1, 1]} : vector<16x64xf32> to vector<16x16xf32>
    %419 = vector.extract_strided_slice %418 {offsets = [1, 0], sizes = [1, 16], strides = [1, 1]} : vector<16x16xf32> to vector<1x16xf32>
    %420 = vector.extract_strided_slice %418 {offsets = [14, 0], sizes = [1, 16], strides = [1, 1]} : vector<16x16xf32> to vector<1x16xf32>
    %421 = tpu.concatenate %419, %418, %420 in 0 : vector<1x16xf32>, vector<16x16xf32>, vector<1x16xf32> -> vector<18x16xf32>
    %422 = vector.extract_strided_slice %421 {offsets = [0, 1], sizes = [18, 1], strides = [1, 1]} : vector<18x16xf32> to vector<18x1xf32>
    %423 = vector.extract_strided_slice %421 {offsets = [0, 0], sizes = [18, 15], strides = [1, 1]} : vector<18x16xf32> to vector<18x15xf32>
    %424 = tpu.concatenate %422, %423 in 1 : vector<18x1xf32>, vector<18x15xf32> -> vector<18x16xf32>
    %425 = vector.extract_strided_slice %421 {offsets = [0, 1], sizes = [18, 15], strides = [1, 1]} : vector<18x16xf32> to vector<18x15xf32>
    %426 = vector.extract_strided_slice %421 {offsets = [0, 14], sizes = [18, 1], strides = [1, 1]} : vector<18x16xf32> to vector<18x1xf32>
    %427 = tpu.concatenate %425, %426 in 1 : vector<18x15xf32>, vector<18x1xf32> -> vector<18x16xf32>
    %428 = tpu.concatenate %424, %424, %424, %424 in 1 : vector<18x16xf32>, vector<18x16xf32>, vector<18x16xf32>, vector<18x16xf32> -> vector<18x64xf32>
    %429 = tpu.concatenate %421, %421, %421, %421 in 1 : vector<18x16xf32>, vector<18x16xf32>, vector<18x16xf32>, vector<18x16xf32> -> vector<18x64xf32>
    %430 = tpu.concatenate %427, %427, %427, %427 in 1 : vector<18x16xf32>, vector<18x16xf32>, vector<18x16xf32>, vector<18x16xf32> -> vector<18x64xf32>
    %431 = vector.extract_strided_slice %428 {offsets = [0, 0], sizes = [16, 64], strides = [1, 1]} : vector<18x64xf32> to vector<16x64xf32>
    %c1_93 = arith.constant 1 : index
    %c0_94 = arith.constant 0 : index
    %432 = vector.load %arg6[%c1_93, %c0_94] : memref<36x64xf32, #tpu.memory_space<vmem>>, vector<1x64xf32>
    %433 = vector.broadcast %432 : vector<1x64xf32> to vector<16x64xf32>
    %434 = arith.mulf %431, %433 : vector<16x64xf32>
    %435 = arith.addf %417, %434 : vector<16x64xf32>
    %436 = vector.extract_strided_slice %429 {offsets = [0, 0], sizes = [16, 64], strides = [1, 1]} : vector<18x64xf32> to vector<16x64xf32>
    %c5_95 = arith.constant 5 : index
    %c0_96 = arith.constant 0 : index
    %437 = vector.load %arg6[%c5_95, %c0_96] : memref<36x64xf32, #tpu.memory_space<vmem>>, vector<1x64xf32>
    %438 = vector.broadcast %437 : vector<1x64xf32> to vector<16x64xf32>
    %439 = arith.mulf %436, %438 : vector<16x64xf32>
    %440 = arith.addf %435, %439 : vector<16x64xf32>
    %441 = vector.extract_strided_slice %430 {offsets = [0, 0], sizes = [16, 64], strides = [1, 1]} : vector<18x64xf32> to vector<16x64xf32>
    %c9_97 = arith.constant 9 : index
    %c0_98 = arith.constant 0 : index
    %442 = vector.load %arg6[%c9_97, %c0_98] : memref<36x64xf32, #tpu.memory_space<vmem>>, vector<1x64xf32>
    %443 = vector.broadcast %442 : vector<1x64xf32> to vector<16x64xf32>
    %444 = arith.mulf %441, %443 : vector<16x64xf32>
    %445 = arith.addf %440, %444 : vector<16x64xf32>
    %446 = vector.extract_strided_slice %428 {offsets = [1, 0], sizes = [16, 64], strides = [1, 1]} : vector<18x64xf32> to vector<16x64xf32>
    %c13_99 = arith.constant 13 : index
    %c0_100 = arith.constant 0 : index
    %447 = vector.load %arg6[%c13_99, %c0_100] : memref<36x64xf32, #tpu.memory_space<vmem>>, vector<1x64xf32>
    %448 = vector.broadcast %447 : vector<1x64xf32> to vector<16x64xf32>
    %449 = arith.mulf %446, %448 : vector<16x64xf32>
    %450 = arith.addf %445, %449 : vector<16x64xf32>
    %451 = vector.extract_strided_slice %429 {offsets = [1, 0], sizes = [16, 64], strides = [1, 1]} : vector<18x64xf32> to vector<16x64xf32>
    %c17_101 = arith.constant 17 : index
    %c0_102 = arith.constant 0 : index
    %452 = vector.load %arg6[%c17_101, %c0_102] : memref<36x64xf32, #tpu.memory_space<vmem>>, vector<1x64xf32>
    %453 = vector.broadcast %452 : vector<1x64xf32> to vector<16x64xf32>
    %454 = arith.mulf %451, %453 : vector<16x64xf32>
    %455 = arith.addf %450, %454 : vector<16x64xf32>
    %456 = vector.extract_strided_slice %430 {offsets = [1, 0], sizes = [16, 64], strides = [1, 1]} : vector<18x64xf32> to vector<16x64xf32>
    %c21_103 = arith.constant 21 : index
    %c0_104 = arith.constant 0 : index
    %457 = vector.load %arg6[%c21_103, %c0_104] : memref<36x64xf32, #tpu.memory_space<vmem>>, vector<1x64xf32>
    %458 = vector.broadcast %457 : vector<1x64xf32> to vector<16x64xf32>
    %459 = arith.mulf %456, %458 : vector<16x64xf32>
    %460 = arith.addf %455, %459 : vector<16x64xf32>
    %461 = vector.extract_strided_slice %428 {offsets = [2, 0], sizes = [16, 64], strides = [1, 1]} : vector<18x64xf32> to vector<16x64xf32>
    %c25_105 = arith.constant 25 : index
    %c0_106 = arith.constant 0 : index
    %462 = vector.load %arg6[%c25_105, %c0_106] : memref<36x64xf32, #tpu.memory_space<vmem>>, vector<1x64xf32>
    %463 = vector.broadcast %462 : vector<1x64xf32> to vector<16x64xf32>
    %464 = arith.mulf %461, %463 : vector<16x64xf32>
    %465 = arith.addf %460, %464 : vector<16x64xf32>
    %466 = vector.extract_strided_slice %429 {offsets = [2, 0], sizes = [16, 64], strides = [1, 1]} : vector<18x64xf32> to vector<16x64xf32>
    %c29_107 = arith.constant 29 : index
    %c0_108 = arith.constant 0 : index
    %467 = vector.load %arg6[%c29_107, %c0_108] : memref<36x64xf32, #tpu.memory_space<vmem>>, vector<1x64xf32>
    %468 = vector.broadcast %467 : vector<1x64xf32> to vector<16x64xf32>
    %469 = arith.mulf %466, %468 : vector<16x64xf32>
    %470 = arith.addf %465, %469 : vector<16x64xf32>
    %471 = vector.extract_strided_slice %430 {offsets = [2, 0], sizes = [16, 64], strides = [1, 1]} : vector<18x64xf32> to vector<16x64xf32>
    %c33_109 = arith.constant 33 : index
    %c0_110 = arith.constant 0 : index
    %472 = vector.load %arg6[%c33_109, %c0_110] : memref<36x64xf32, #tpu.memory_space<vmem>>, vector<1x64xf32>
    %473 = vector.broadcast %472 : vector<1x64xf32> to vector<16x64xf32>
    %474 = arith.mulf %471, %473 : vector<16x64xf32>
    %475 = arith.addf %470, %474 : vector<16x64xf32>
    %476 = vector.extract_strided_slice %356 {offsets = [0, 32], sizes = [16, 16], strides = [1, 1]} : vector<16x64xf32> to vector<16x16xf32>
    %477 = vector.extract_strided_slice %476 {offsets = [1, 0], sizes = [1, 16], strides = [1, 1]} : vector<16x16xf32> to vector<1x16xf32>
    %478 = vector.extract_strided_slice %476 {offsets = [14, 0], sizes = [1, 16], strides = [1, 1]} : vector<16x16xf32> to vector<1x16xf32>
    %479 = tpu.concatenate %477, %476, %478 in 0 : vector<1x16xf32>, vector<16x16xf32>, vector<1x16xf32> -> vector<18x16xf32>
    %480 = vector.extract_strided_slice %479 {offsets = [0, 1], sizes = [18, 1], strides = [1, 1]} : vector<18x16xf32> to vector<18x1xf32>
    %481 = vector.extract_strided_slice %479 {offsets = [0, 0], sizes = [18, 15], strides = [1, 1]} : vector<18x16xf32> to vector<18x15xf32>
    %482 = tpu.concatenate %480, %481 in 1 : vector<18x1xf32>, vector<18x15xf32> -> vector<18x16xf32>
    %483 = vector.extract_strided_slice %479 {offsets = [0, 1], sizes = [18, 15], strides = [1, 1]} : vector<18x16xf32> to vector<18x15xf32>
    %484 = vector.extract_strided_slice %479 {offsets = [0, 14], sizes = [18, 1], strides = [1, 1]} : vector<18x16xf32> to vector<18x1xf32>
    %485 = tpu.concatenate %483, %484 in 1 : vector<18x15xf32>, vector<18x1xf32> -> vector<18x16xf32>
    %486 = tpu.concatenate %482, %482, %482, %482 in 1 : vector<18x16xf32>, vector<18x16xf32>, vector<18x16xf32>, vector<18x16xf32> -> vector<18x64xf32>
    %487 = tpu.concatenate %479, %479, %479, %479 in 1 : vector<18x16xf32>, vector<18x16xf32>, vector<18x16xf32>, vector<18x16xf32> -> vector<18x64xf32>
    %488 = tpu.concatenate %485, %485, %485, %485 in 1 : vector<18x16xf32>, vector<18x16xf32>, vector<18x16xf32>, vector<18x16xf32> -> vector<18x64xf32>
    %489 = vector.extract_strided_slice %486 {offsets = [0, 0], sizes = [16, 64], strides = [1, 1]} : vector<18x64xf32> to vector<16x64xf32>
    %c2_111 = arith.constant 2 : index
    %c0_112 = arith.constant 0 : index
    %490 = vector.load %arg6[%c2_111, %c0_112] : memref<36x64xf32, #tpu.memory_space<vmem>>, vector<1x64xf32>
    %491 = vector.broadcast %490 : vector<1x64xf32> to vector<16x64xf32>
    %492 = arith.mulf %489, %491 : vector<16x64xf32>
    %493 = arith.addf %475, %492 : vector<16x64xf32>
    %494 = vector.extract_strided_slice %487 {offsets = [0, 0], sizes = [16, 64], strides = [1, 1]} : vector<18x64xf32> to vector<16x64xf32>
    %c6_113 = arith.constant 6 : index
    %c0_114 = arith.constant 0 : index
    %495 = vector.load %arg6[%c6_113, %c0_114] : memref<36x64xf32, #tpu.memory_space<vmem>>, vector<1x64xf32>
    %496 = vector.broadcast %495 : vector<1x64xf32> to vector<16x64xf32>
    %497 = arith.mulf %494, %496 : vector<16x64xf32>
    %498 = arith.addf %493, %497 : vector<16x64xf32>
    %499 = vector.extract_strided_slice %488 {offsets = [0, 0], sizes = [16, 64], strides = [1, 1]} : vector<18x64xf32> to vector<16x64xf32>
    %c10_115 = arith.constant 10 : index
    %c0_116 = arith.constant 0 : index
    %500 = vector.load %arg6[%c10_115, %c0_116] : memref<36x64xf32, #tpu.memory_space<vmem>>, vector<1x64xf32>
    %501 = vector.broadcast %500 : vector<1x64xf32> to vector<16x64xf32>
    %502 = arith.mulf %499, %501 : vector<16x64xf32>
    %503 = arith.addf %498, %502 : vector<16x64xf32>
    %504 = vector.extract_strided_slice %486 {offsets = [1, 0], sizes = [16, 64], strides = [1, 1]} : vector<18x64xf32> to vector<16x64xf32>
    %c14_117 = arith.constant 14 : index
    %c0_118 = arith.constant 0 : index
    %505 = vector.load %arg6[%c14_117, %c0_118] : memref<36x64xf32, #tpu.memory_space<vmem>>, vector<1x64xf32>
    %506 = vector.broadcast %505 : vector<1x64xf32> to vector<16x64xf32>
    %507 = arith.mulf %504, %506 : vector<16x64xf32>
    %508 = arith.addf %503, %507 : vector<16x64xf32>
    %509 = vector.extract_strided_slice %487 {offsets = [1, 0], sizes = [16, 64], strides = [1, 1]} : vector<18x64xf32> to vector<16x64xf32>
    %c18_119 = arith.constant 18 : index
    %c0_120 = arith.constant 0 : index
    %510 = vector.load %arg6[%c18_119, %c0_120] : memref<36x64xf32, #tpu.memory_space<vmem>>, vector<1x64xf32>
    %511 = vector.broadcast %510 : vector<1x64xf32> to vector<16x64xf32>
    %512 = arith.mulf %509, %511 : vector<16x64xf32>
    %513 = arith.addf %508, %512 : vector<16x64xf32>
    %514 = vector.extract_strided_slice %488 {offsets = [1, 0], sizes = [16, 64], strides = [1, 1]} : vector<18x64xf32> to vector<16x64xf32>
    %c22_121 = arith.constant 22 : index
    %c0_122 = arith.constant 0 : index
    %515 = vector.load %arg6[%c22_121, %c0_122] : memref<36x64xf32, #tpu.memory_space<vmem>>, vector<1x64xf32>
    %516 = vector.broadcast %515 : vector<1x64xf32> to vector<16x64xf32>
    %517 = arith.mulf %514, %516 : vector<16x64xf32>
    %518 = arith.addf %513, %517 : vector<16x64xf32>
    %519 = vector.extract_strided_slice %486 {offsets = [2, 0], sizes = [16, 64], strides = [1, 1]} : vector<18x64xf32> to vector<16x64xf32>
    %c26_123 = arith.constant 26 : index
    %c0_124 = arith.constant 0 : index
    %520 = vector.load %arg6[%c26_123, %c0_124] : memref<36x64xf32, #tpu.memory_space<vmem>>, vector<1x64xf32>
    %521 = vector.broadcast %520 : vector<1x64xf32> to vector<16x64xf32>
    %522 = arith.mulf %519, %521 : vector<16x64xf32>
    %523 = arith.addf %518, %522 : vector<16x64xf32>
    %524 = vector.extract_strided_slice %487 {offsets = [2, 0], sizes = [16, 64], strides = [1, 1]} : vector<18x64xf32> to vector<16x64xf32>
    %c30_125 = arith.constant 30 : index
    %c0_126 = arith.constant 0 : index
    %525 = vector.load %arg6[%c30_125, %c0_126] : memref<36x64xf32, #tpu.memory_space<vmem>>, vector<1x64xf32>
    %526 = vector.broadcast %525 : vector<1x64xf32> to vector<16x64xf32>
    %527 = arith.mulf %524, %526 : vector<16x64xf32>
    %528 = arith.addf %523, %527 : vector<16x64xf32>
    %529 = vector.extract_strided_slice %488 {offsets = [2, 0], sizes = [16, 64], strides = [1, 1]} : vector<18x64xf32> to vector<16x64xf32>
    %c34_127 = arith.constant 34 : index
    %c0_128 = arith.constant 0 : index
    %530 = vector.load %arg6[%c34_127, %c0_128] : memref<36x64xf32, #tpu.memory_space<vmem>>, vector<1x64xf32>
    %531 = vector.broadcast %530 : vector<1x64xf32> to vector<16x64xf32>
    %532 = arith.mulf %529, %531 : vector<16x64xf32>
    %533 = arith.addf %528, %532 : vector<16x64xf32>
    %534 = vector.extract_strided_slice %356 {offsets = [0, 48], sizes = [16, 16], strides = [1, 1]} : vector<16x64xf32> to vector<16x16xf32>
    %535 = vector.extract_strided_slice %534 {offsets = [1, 0], sizes = [1, 16], strides = [1, 1]} : vector<16x16xf32> to vector<1x16xf32>
    %536 = vector.extract_strided_slice %534 {offsets = [14, 0], sizes = [1, 16], strides = [1, 1]} : vector<16x16xf32> to vector<1x16xf32>
    %537 = tpu.concatenate %535, %534, %536 in 0 : vector<1x16xf32>, vector<16x16xf32>, vector<1x16xf32> -> vector<18x16xf32>
    %538 = vector.extract_strided_slice %537 {offsets = [0, 1], sizes = [18, 1], strides = [1, 1]} : vector<18x16xf32> to vector<18x1xf32>
    %539 = vector.extract_strided_slice %537 {offsets = [0, 0], sizes = [18, 15], strides = [1, 1]} : vector<18x16xf32> to vector<18x15xf32>
    %540 = tpu.concatenate %538, %539 in 1 : vector<18x1xf32>, vector<18x15xf32> -> vector<18x16xf32>
    %541 = vector.extract_strided_slice %537 {offsets = [0, 1], sizes = [18, 15], strides = [1, 1]} : vector<18x16xf32> to vector<18x15xf32>
    %542 = vector.extract_strided_slice %537 {offsets = [0, 14], sizes = [18, 1], strides = [1, 1]} : vector<18x16xf32> to vector<18x1xf32>
    %543 = tpu.concatenate %541, %542 in 1 : vector<18x15xf32>, vector<18x1xf32> -> vector<18x16xf32>
    %544 = tpu.concatenate %540, %540, %540, %540 in 1 : vector<18x16xf32>, vector<18x16xf32>, vector<18x16xf32>, vector<18x16xf32> -> vector<18x64xf32>
    %545 = tpu.concatenate %537, %537, %537, %537 in 1 : vector<18x16xf32>, vector<18x16xf32>, vector<18x16xf32>, vector<18x16xf32> -> vector<18x64xf32>
    %546 = tpu.concatenate %543, %543, %543, %543 in 1 : vector<18x16xf32>, vector<18x16xf32>, vector<18x16xf32>, vector<18x16xf32> -> vector<18x64xf32>
    %547 = vector.extract_strided_slice %544 {offsets = [0, 0], sizes = [16, 64], strides = [1, 1]} : vector<18x64xf32> to vector<16x64xf32>
    %c3_129 = arith.constant 3 : index
    %c0_130 = arith.constant 0 : index
    %548 = vector.load %arg6[%c3_129, %c0_130] : memref<36x64xf32, #tpu.memory_space<vmem>>, vector<1x64xf32>
    %549 = vector.broadcast %548 : vector<1x64xf32> to vector<16x64xf32>
    %550 = arith.mulf %547, %549 : vector<16x64xf32>
    %551 = arith.addf %533, %550 : vector<16x64xf32>
    %552 = vector.extract_strided_slice %545 {offsets = [0, 0], sizes = [16, 64], strides = [1, 1]} : vector<18x64xf32> to vector<16x64xf32>
    %c7_131 = arith.constant 7 : index
    %c0_132 = arith.constant 0 : index
    %553 = vector.load %arg6[%c7_131, %c0_132] : memref<36x64xf32, #tpu.memory_space<vmem>>, vector<1x64xf32>
    %554 = vector.broadcast %553 : vector<1x64xf32> to vector<16x64xf32>
    %555 = arith.mulf %552, %554 : vector<16x64xf32>
    %556 = arith.addf %551, %555 : vector<16x64xf32>
    %557 = vector.extract_strided_slice %546 {offsets = [0, 0], sizes = [16, 64], strides = [1, 1]} : vector<18x64xf32> to vector<16x64xf32>
    %c11_133 = arith.constant 11 : index
    %c0_134 = arith.constant 0 : index
    %558 = vector.load %arg6[%c11_133, %c0_134] : memref<36x64xf32, #tpu.memory_space<vmem>>, vector<1x64xf32>
    %559 = vector.broadcast %558 : vector<1x64xf32> to vector<16x64xf32>
    %560 = arith.mulf %557, %559 : vector<16x64xf32>
    %561 = arith.addf %556, %560 : vector<16x64xf32>
    %562 = vector.extract_strided_slice %544 {offsets = [1, 0], sizes = [16, 64], strides = [1, 1]} : vector<18x64xf32> to vector<16x64xf32>
    %c15_135 = arith.constant 15 : index
    %c0_136 = arith.constant 0 : index
    %563 = vector.load %arg6[%c15_135, %c0_136] : memref<36x64xf32, #tpu.memory_space<vmem>>, vector<1x64xf32>
    %564 = vector.broadcast %563 : vector<1x64xf32> to vector<16x64xf32>
    %565 = arith.mulf %562, %564 : vector<16x64xf32>
    %566 = arith.addf %561, %565 : vector<16x64xf32>
    %567 = vector.extract_strided_slice %545 {offsets = [1, 0], sizes = [16, 64], strides = [1, 1]} : vector<18x64xf32> to vector<16x64xf32>
    %c19_137 = arith.constant 19 : index
    %c0_138 = arith.constant 0 : index
    %568 = vector.load %arg6[%c19_137, %c0_138] : memref<36x64xf32, #tpu.memory_space<vmem>>, vector<1x64xf32>
    %569 = vector.broadcast %568 : vector<1x64xf32> to vector<16x64xf32>
    %570 = arith.mulf %567, %569 : vector<16x64xf32>
    %571 = arith.addf %566, %570 : vector<16x64xf32>
    %572 = vector.extract_strided_slice %546 {offsets = [1, 0], sizes = [16, 64], strides = [1, 1]} : vector<18x64xf32> to vector<16x64xf32>
    %c23_139 = arith.constant 23 : index
    %c0_140 = arith.constant 0 : index
    %573 = vector.load %arg6[%c23_139, %c0_140] : memref<36x64xf32, #tpu.memory_space<vmem>>, vector<1x64xf32>
    %574 = vector.broadcast %573 : vector<1x64xf32> to vector<16x64xf32>
    %575 = arith.mulf %572, %574 : vector<16x64xf32>
    %576 = arith.addf %571, %575 : vector<16x64xf32>
    %577 = vector.extract_strided_slice %544 {offsets = [2, 0], sizes = [16, 64], strides = [1, 1]} : vector<18x64xf32> to vector<16x64xf32>
    %c27_141 = arith.constant 27 : index
    %c0_142 = arith.constant 0 : index
    %578 = vector.load %arg6[%c27_141, %c0_142] : memref<36x64xf32, #tpu.memory_space<vmem>>, vector<1x64xf32>
    %579 = vector.broadcast %578 : vector<1x64xf32> to vector<16x64xf32>
    %580 = arith.mulf %577, %579 : vector<16x64xf32>
    %581 = arith.addf %576, %580 : vector<16x64xf32>
    %582 = vector.extract_strided_slice %545 {offsets = [2, 0], sizes = [16, 64], strides = [1, 1]} : vector<18x64xf32> to vector<16x64xf32>
    %c31_143 = arith.constant 31 : index
    %c0_144 = arith.constant 0 : index
    %583 = vector.load %arg6[%c31_143, %c0_144] : memref<36x64xf32, #tpu.memory_space<vmem>>, vector<1x64xf32>
    %584 = vector.broadcast %583 : vector<1x64xf32> to vector<16x64xf32>
    %585 = arith.mulf %582, %584 : vector<16x64xf32>
    %586 = arith.addf %581, %585 : vector<16x64xf32>
    %587 = vector.extract_strided_slice %546 {offsets = [2, 0], sizes = [16, 64], strides = [1, 1]} : vector<18x64xf32> to vector<16x64xf32>
    %c35_145 = arith.constant 35 : index
    %c0_146 = arith.constant 0 : index
    %588 = vector.load %arg6[%c35_145, %c0_146] : memref<36x64xf32, #tpu.memory_space<vmem>>, vector<1x64xf32>
    %589 = vector.broadcast %588 : vector<1x64xf32> to vector<16x64xf32>
    %590 = arith.mulf %587, %589 : vector<16x64xf32>
    %591 = arith.addf %586, %590 : vector<16x64xf32>
    %cst_147 = arith.constant dense<0.000000e+00> : vector<64xf32>
    %592 = vector.multi_reduction <add>, %591, %cst_147 [0] : vector<16x64xf32> to vector<64xf32>
    %593 = vector.shape_cast %592 : vector<64xf32> to vector<1x64xf32>
    %594 = arith.mulf %591, %591 : vector<16x64xf32>
    %cst_148 = arith.constant dense<0.000000e+00> : vector<64xf32>
    %595 = vector.multi_reduction <add>, %594, %cst_148 [0] : vector<16x64xf32> to vector<64xf32>
    %596 = vector.shape_cast %595 : vector<64xf32> to vector<1x64xf32>
    %597 = vector.extract_strided_slice %593 {offsets = [0, 0], sizes = [1, 16], strides = [1, 1]} : vector<1x64xf32> to vector<1x16xf32>
    %cst_149 = arith.constant dense<0.000000e+00> : vector<1xf32>
    %598 = vector.multi_reduction <add>, %597, %cst_149 [1] : vector<1x16xf32> to vector<1xf32>
    %599 = vector.shape_cast %598 : vector<1xf32> to vector<1x1xf32>
    %600 = vector.extract_strided_slice %596 {offsets = [0, 0], sizes = [1, 16], strides = [1, 1]} : vector<1x64xf32> to vector<1x16xf32>
    %cst_150 = arith.constant dense<0.000000e+00> : vector<1xf32>
    %601 = vector.multi_reduction <add>, %600, %cst_150 [1] : vector<1x16xf32> to vector<1xf32>
    %602 = vector.shape_cast %601 : vector<1xf32> to vector<1x1xf32>
    %cst_151 = arith.constant 3.906250e-03 : f32
    %603 = vector.broadcast %cst_151 : f32 to vector<1x1xf32>
    %604 = arith.mulf %599, %603 : vector<1x1xf32>
    %cst_152 = arith.constant 3.906250e-03 : f32
    %605 = vector.broadcast %cst_152 : f32 to vector<1x1xf32>
    %606 = arith.mulf %602, %605 : vector<1x1xf32>
    %607 = arith.mulf %604, %604 : vector<1x1xf32>
    %608 = arith.subf %606, %607 : vector<1x1xf32>
    %c0_153 = arith.constant 0 : index
    %609 = memref.load %arg8[%c0_153] : memref<4xf32, #tpu.memory_space<smem>>
    %cst_154 = arith.constant 9.99999974E-6 : f32
    %610 = vector.broadcast %cst_154 : f32 to vector<1x1xf32>
    %611 = arith.addf %608, %610 : vector<1x1xf32>
    %612 = math.rsqrt %611 : vector<1x1xf32>
    %613 = vector.broadcast %609 : f32 to vector<1x1xf32>
    %614 = arith.mulf %613, %612 : vector<1x1xf32>
    %c0_155 = arith.constant 0 : index
    %615 = memref.load %arg9[%c0_155] : memref<4xf32, #tpu.memory_space<smem>>
    %616 = arith.mulf %604, %614 : vector<1x1xf32>
    %617 = vector.broadcast %615 : f32 to vector<1x1xf32>
    %618 = arith.subf %617, %616 : vector<1x1xf32>
    %619 = vector.shape_cast %614 : vector<1x1xf32> to vector<1x1xf32>
    %620 = vector.broadcast %619 : vector<1x1xf32> to vector<1x16xf32>
    %621 = vector.shape_cast %618 : vector<1x1xf32> to vector<1x1xf32>
    %622 = vector.broadcast %621 : vector<1x1xf32> to vector<1x16xf32>
    %623 = vector.extract_strided_slice %593 {offsets = [0, 16], sizes = [1, 16], strides = [1, 1]} : vector<1x64xf32> to vector<1x16xf32>
    %cst_156 = arith.constant dense<0.000000e+00> : vector<1xf32>
    %624 = vector.multi_reduction <add>, %623, %cst_156 [1] : vector<1x16xf32> to vector<1xf32>
    %625 = vector.shape_cast %624 : vector<1xf32> to vector<1x1xf32>
    %626 = vector.extract_strided_slice %596 {offsets = [0, 16], sizes = [1, 16], strides = [1, 1]} : vector<1x64xf32> to vector<1x16xf32>
    %cst_157 = arith.constant dense<0.000000e+00> : vector<1xf32>
    %627 = vector.multi_reduction <add>, %626, %cst_157 [1] : vector<1x16xf32> to vector<1xf32>
    %628 = vector.shape_cast %627 : vector<1xf32> to vector<1x1xf32>
    %cst_158 = arith.constant 3.906250e-03 : f32
    %629 = vector.broadcast %cst_158 : f32 to vector<1x1xf32>
    %630 = arith.mulf %625, %629 : vector<1x1xf32>
    %cst_159 = arith.constant 3.906250e-03 : f32
    %631 = vector.broadcast %cst_159 : f32 to vector<1x1xf32>
    %632 = arith.mulf %628, %631 : vector<1x1xf32>
    %633 = arith.mulf %630, %630 : vector<1x1xf32>
    %634 = arith.subf %632, %633 : vector<1x1xf32>
    %c1_160 = arith.constant 1 : index
    %635 = memref.load %arg8[%c1_160] : memref<4xf32, #tpu.memory_space<smem>>
    %cst_161 = arith.constant 9.99999974E-6 : f32
    %636 = vector.broadcast %cst_161 : f32 to vector<1x1xf32>
    %637 = arith.addf %634, %636 : vector<1x1xf32>
    %638 = math.rsqrt %637 : vector<1x1xf32>
    %639 = vector.broadcast %635 : f32 to vector<1x1xf32>
    %640 = arith.mulf %639, %638 : vector<1x1xf32>
    %c1_162 = arith.constant 1 : index
    %641 = memref.load %arg9[%c1_162] : memref<4xf32, #tpu.memory_space<smem>>
    %642 = arith.mulf %630, %640 : vector<1x1xf32>
    %643 = vector.broadcast %641 : f32 to vector<1x1xf32>
    %644 = arith.subf %643, %642 : vector<1x1xf32>
    %645 = vector.shape_cast %640 : vector<1x1xf32> to vector<1x1xf32>
    %646 = vector.broadcast %645 : vector<1x1xf32> to vector<1x16xf32>
    %647 = vector.shape_cast %644 : vector<1x1xf32> to vector<1x1xf32>
    %648 = vector.broadcast %647 : vector<1x1xf32> to vector<1x16xf32>
    %649 = vector.extract_strided_slice %593 {offsets = [0, 32], sizes = [1, 16], strides = [1, 1]} : vector<1x64xf32> to vector<1x16xf32>
    %cst_163 = arith.constant dense<0.000000e+00> : vector<1xf32>
    %650 = vector.multi_reduction <add>, %649, %cst_163 [1] : vector<1x16xf32> to vector<1xf32>
    %651 = vector.shape_cast %650 : vector<1xf32> to vector<1x1xf32>
    %652 = vector.extract_strided_slice %596 {offsets = [0, 32], sizes = [1, 16], strides = [1, 1]} : vector<1x64xf32> to vector<1x16xf32>
    %cst_164 = arith.constant dense<0.000000e+00> : vector<1xf32>
    %653 = vector.multi_reduction <add>, %652, %cst_164 [1] : vector<1x16xf32> to vector<1xf32>
    %654 = vector.shape_cast %653 : vector<1xf32> to vector<1x1xf32>
    %cst_165 = arith.constant 3.906250e-03 : f32
    %655 = vector.broadcast %cst_165 : f32 to vector<1x1xf32>
    %656 = arith.mulf %651, %655 : vector<1x1xf32>
    %cst_166 = arith.constant 3.906250e-03 : f32
    %657 = vector.broadcast %cst_166 : f32 to vector<1x1xf32>
    %658 = arith.mulf %654, %657 : vector<1x1xf32>
    %659 = arith.mulf %656, %656 : vector<1x1xf32>
    %660 = arith.subf %658, %659 : vector<1x1xf32>
    %c2_167 = arith.constant 2 : index
    %661 = memref.load %arg8[%c2_167] : memref<4xf32, #tpu.memory_space<smem>>
    %cst_168 = arith.constant 9.99999974E-6 : f32
    %662 = vector.broadcast %cst_168 : f32 to vector<1x1xf32>
    %663 = arith.addf %660, %662 : vector<1x1xf32>
    %664 = math.rsqrt %663 : vector<1x1xf32>
    %665 = vector.broadcast %661 : f32 to vector<1x1xf32>
    %666 = arith.mulf %665, %664 : vector<1x1xf32>
    %c2_169 = arith.constant 2 : index
    %667 = memref.load %arg9[%c2_169] : memref<4xf32, #tpu.memory_space<smem>>
    %668 = arith.mulf %656, %666 : vector<1x1xf32>
    %669 = vector.broadcast %667 : f32 to vector<1x1xf32>
    %670 = arith.subf %669, %668 : vector<1x1xf32>
    %671 = vector.shape_cast %666 : vector<1x1xf32> to vector<1x1xf32>
    %672 = vector.broadcast %671 : vector<1x1xf32> to vector<1x16xf32>
    %673 = vector.shape_cast %670 : vector<1x1xf32> to vector<1x1xf32>
    %674 = vector.broadcast %673 : vector<1x1xf32> to vector<1x16xf32>
    %675 = vector.extract_strided_slice %593 {offsets = [0, 48], sizes = [1, 16], strides = [1, 1]} : vector<1x64xf32> to vector<1x16xf32>
    %cst_170 = arith.constant dense<0.000000e+00> : vector<1xf32>
    %676 = vector.multi_reduction <add>, %675, %cst_170 [1] : vector<1x16xf32> to vector<1xf32>
    %677 = vector.shape_cast %676 : vector<1xf32> to vector<1x1xf32>
    %678 = vector.extract_strided_slice %596 {offsets = [0, 48], sizes = [1, 16], strides = [1, 1]} : vector<1x64xf32> to vector<1x16xf32>
    %cst_171 = arith.constant dense<0.000000e+00> : vector<1xf32>
    %679 = vector.multi_reduction <add>, %678, %cst_171 [1] : vector<1x16xf32> to vector<1xf32>
    %680 = vector.shape_cast %679 : vector<1xf32> to vector<1x1xf32>
    %cst_172 = arith.constant 3.906250e-03 : f32
    %681 = vector.broadcast %cst_172 : f32 to vector<1x1xf32>
    %682 = arith.mulf %677, %681 : vector<1x1xf32>
    %cst_173 = arith.constant 3.906250e-03 : f32
    %683 = vector.broadcast %cst_173 : f32 to vector<1x1xf32>
    %684 = arith.mulf %680, %683 : vector<1x1xf32>
    %685 = arith.mulf %682, %682 : vector<1x1xf32>
    %686 = arith.subf %684, %685 : vector<1x1xf32>
    %c3_174 = arith.constant 3 : index
    %687 = memref.load %arg8[%c3_174] : memref<4xf32, #tpu.memory_space<smem>>
    %cst_175 = arith.constant 9.99999974E-6 : f32
    %688 = vector.broadcast %cst_175 : f32 to vector<1x1xf32>
    %689 = arith.addf %686, %688 : vector<1x1xf32>
    %690 = math.rsqrt %689 : vector<1x1xf32>
    %691 = vector.broadcast %687 : f32 to vector<1x1xf32>
    %692 = arith.mulf %691, %690 : vector<1x1xf32>
    %c3_176 = arith.constant 3 : index
    %693 = memref.load %arg9[%c3_176] : memref<4xf32, #tpu.memory_space<smem>>
    %694 = arith.mulf %682, %692 : vector<1x1xf32>
    %695 = vector.broadcast %693 : f32 to vector<1x1xf32>
    %696 = arith.subf %695, %694 : vector<1x1xf32>
    %697 = vector.shape_cast %692 : vector<1x1xf32> to vector<1x1xf32>
    %698 = vector.broadcast %697 : vector<1x1xf32> to vector<1x16xf32>
    %699 = vector.shape_cast %696 : vector<1x1xf32> to vector<1x1xf32>
    %700 = vector.broadcast %699 : vector<1x1xf32> to vector<1x16xf32>
    %701 = tpu.concatenate %620, %646, %672, %698 in 1 : vector<1x16xf32>, vector<1x16xf32>, vector<1x16xf32>, vector<1x16xf32> -> vector<1x64xf32>
    %702 = tpu.concatenate %622, %648, %674, %700 in 1 : vector<1x16xf32>, vector<1x16xf32>, vector<1x16xf32>, vector<1x16xf32> -> vector<1x64xf32>
    %703 = vector.broadcast %701 : vector<1x64xf32> to vector<16x64xf32>
    %704 = arith.mulf %591, %703 : vector<16x64xf32>
    %705 = vector.broadcast %702 : vector<1x64xf32> to vector<16x64xf32>
    %706 = arith.addf %704, %705 : vector<16x64xf32>
    %c0_177 = arith.constant 0 : index
    %c0_178 = arith.constant 0 : index
    %c0_179 = arith.constant 0 : index
    %707 = vector.load %arg1[%c0_177, %c0_178, %c0_179] : memref<1x8x128xf32, #tpu.memory_space<vmem>>, vector<1x8x64xf32>
    %708 = vector.shape_cast %707 : vector<1x8x64xf32> to vector<8x64xf32>
    %709 = vector.extract_strided_slice %706 {offsets = [0, 0], sizes = [8, 64], strides = [1, 1]} : vector<16x64xf32> to vector<8x64xf32>
    %710 = arith.addf %709, %708 : vector<8x64xf32>
    %c0_180 = arith.constant 0 : index
    %c0_181 = arith.constant 0 : index
    %c0_182 = arith.constant 0 : index
    %711 = vector.load %arg10[%c0_180, %c0_181, %c0_182] : memref<1x8x128xf32, #tpu.memory_space<vmem>>, vector<1x8x64xf32>
    %712 = vector.shape_cast %711 : vector<1x8x64xf32> to vector<8x64xf32>
    %713 = vector.shape_cast %710 : vector<8x64xf32> to vector<1x8x64xf32>
    tpu.vector_store %arg10[%c0_180, %c0_181, %c0_182], %713 {strides = array<i32>} : memref<1x8x128xf32, #tpu.memory_space<vmem>>, vector<1x8x64xf32>,
    %c0_183 = arith.constant 0 : index
    %c0_184 = arith.constant 0 : index
    %c64_185 = arith.constant 64 : index
    %714 = vector.load %arg1[%c0_183, %c0_184, %c64_185] : memref<1x8x128xf32, #tpu.memory_space<vmem>>, vector<1x8x64xf32>
    %715 = vector.shape_cast %714 : vector<1x8x64xf32> to vector<8x64xf32>
    %716 = vector.extract_strided_slice %706 {offsets = [8, 0], sizes = [8, 64], strides = [1, 1]} : vector<16x64xf32> to vector<8x64xf32>
    %717 = arith.addf %716, %715 : vector<8x64xf32>
    %c0_186 = arith.constant 0 : index
    %c0_187 = arith.constant 0 : index
    %c64_188 = arith.constant 64 : index
    %718 = vector.load %arg10[%c0_186, %c0_187, %c64_188] : memref<1x8x128xf32, #tpu.memory_space<vmem>>, vector<1x8x64xf32>
    %719 = vector.shape_cast %718 : vector<1x8x64xf32> to vector<8x64xf32>
    %720 = vector.shape_cast %717 : vector<8x64xf32> to vector<1x8x64xf32>
    tpu.vector_store %arg10[%c0_186, %c0_187, %c64_188], %720 {strides = array<i32>} : memref<1x8x128xf32, #tpu.memory_space<vmem>>, vector<1x8x64xf32>,
    return
  }
  func.func @transform_0(%arg0: i32) -> (i32, i32, i32) {
    %c0_i32 = arith.constant 0 : i32
    %c0_i32_0 = arith.constant 0 : i32
    %c0_i32_1 = arith.constant 0 : i32
    return %arg0, %c0_i32, %c0_i32_0 : i32, i32, i32
  }
  func.func @transform_1(%arg0: i32) -> (i32, i32) {
    %c0_i32 = arith.constant 0 : i32
    %c0_i32_0 = arith.constant 0 : i32
    %c0_i32_1 = arith.constant 0 : i32
    return %c0_i32, %c0_i32_0 : i32, i32
  }
  func.func @transform_2(%arg0: i32) -> (i32, i32) {
    %c0_i32 = arith.constant 0 : i32
    %c0_i32_0 = arith.constant 0 : i32
    %c0_i32_1 = arith.constant 0 : i32
    return %c0_i32, %c0_i32_0 : i32, i32
  }
  func.func @transform_3(%arg0: i32) -> i32 {
    %c0_i32 = arith.constant 0 : i32
    %c0_i32_0 = arith.constant 0 : i32
    return %c0_i32 : i32
  }
  func.func @transform_4(%arg0: i32) -> i32 {
    %c0_i32 = arith.constant 0 : i32
    %c0_i32_0 = arith.constant 0 : i32
    return %c0_i32 : i32
  }
  func.func @transform_5(%arg0: i32) -> (i32, i32) {
    %c0_i32 = arith.constant 0 : i32
    %c0_i32_0 = arith.constant 0 : i32
    %c0_i32_1 = arith.constant 0 : i32
    return %c0_i32, %c0_i32_0 : i32, i32
  }
  func.func @transform_6(%arg0: i32) -> (i32, i32) {
    %c0_i32 = arith.constant 0 : i32
    %c0_i32_0 = arith.constant 0 : i32
    %c0_i32_1 = arith.constant 0 : i32
    return %c0_i32, %c0_i32_0 : i32, i32
  }
  func.func @transform_7(%arg0: i32) -> i32 {
    %c0_i32 = arith.constant 0 : i32
    %c0_i32_0 = arith.constant 0 : i32
    return %c0_i32 : i32
  }
  func.func @transform_8(%arg0: i32) -> i32 {
    %c0_i32 = arith.constant 0 : i32
    %c0_i32_0 = arith.constant 0 : i32
    return %c0_i32 : i32
  }
  func.func @transform_9(%arg0: i32) -> (i32, i32, i32) {
    %c0_i32 = arith.constant 0 : i32
    %c0_i32_0 = arith.constant 0 : i32
    %c0_i32_1 = arith.constant 0 : i32
    return %arg0, %c0_i32, %c0_i32_0 : i32, i32, i32
  }
}

</mosaic_0001>

<bundles_post_ra>
// kernel: tpu_custom_call.1
= control target key start
LH: loop header
LB: loop body
LE: loop exit
PB: predicated region body
PF: predicated region fallthrough
CT: control target
= control target key end

     0   :  { %s5547_s0 = inlined_call_operand.hbm [shape: f32[2,8,128], index: 0, kind: input, shape index: {}]   ;;  %s5548_s1 = inlined_call_operand.hbm [shape: f32[36,64], index: 1, kind: input, shape index: {}]   ;;  %s5549_s2 = inlined_call_operand.vmem [shape: f32[1,64], index: 2, kind: input, shape index: {}]   ;;  %s5550_s3 = inlined_call_operand.vmem [shape: f32[4], index: 3, kind: input, shape index: {}]   ;;  %s5551_s4 = inlined_call_operand.vmem [shape: f32[4], index: 4, kind: input, shape index: {}]   ;;  %s5552_s5 = inlined_call_operand.hbm [shape: f32[36,64], index: 5, kind: input, shape index: {}]   ;;  %s5553_s6 = inlined_call_operand.vmem [shape: f32[1,64], index: 6, kind: input, shape index: {}]   ;;  %s5554_s7 = inlined_call_operand.vmem [shape: f32[4], index: 7, kind: input, shape index: {}]   ;;  %s5555_s8 = inlined_call_operand.vmem [shape: f32[4], index: 8, kind: input, shape index: {}]   ;;  %s5556_s9 = inlined_call_operand.hbm [shape: f32[2,8,128], index: 9, kind: output, shape index: {}]  }
   0x1   :  { %5617 = sst [smem:[#allocation54_spill]] %s5548_s1 }
   0x2   :  { %5618 = sst [smem:[#allocation55_spill]] %s5550_s3 }
   0x3   :  { %14 = vsyncpa [#allocation3], 0 }
   0x4   :  { %16 = vsyncpa [#allocation3 + $0x1], 0 }
   0x5   :  { %17 = vsyncpa [#allocation7], 0 }
   0x6   :  { %18 = vsyncpa [#allocation5], 0 }
   0x7   :  { %19 = vsyncpa [#allocation10], 0 }
   0x8   :  { %20 = vsyncpa [#allocation14], 0 }
   0x9   :  { %21 = vsyncpa [#allocation4], 0 }
   0xa   :  { %23 = vsyncpa [#allocation4 + $0x1], 0  ;;  %s3650_s30 = smov 0   ;;  %s3652_s10 = smov 0  }
   0xb   :  { %s3654_s11 = smov 0   ;;  %s3656_s12 = smov 0  }
   0xc LB: > { %s3575_s13 = smov [#allocation6]   ;;  %s3671_s15 = sadd.s32 4294967295, %s3573_s12   ;;  %s3573_s12 = sphi %s3656_s12, %s5759_s12   ;;  %s3569_s11 = sphi %s3654_s11, %s5758_s11   ;;  %s3565_s10 = sphi %s3652_s10, %s5757_s10   ;;  %s3561_s30 = sphi %s3650_s30, %s5756_s30  }
   0xd   : > { %s266_s14 = sshll.u32 %s3575_s13, 4  ;;  %p3087_p0 = scmp.ge.s32.totalorder %s3573_s12, 1  ;;  %s3676_s14 = int_to_ptr.vmem [resolvable:$true] %s266_s14 }
   0xe   : > { %p5558_p1 = scmp.eq.s32.totalorder %s3671_s15, 0  ;;  %p254_p2 = scmp.lt.s32.totalorder %s3573_s12, 3 }
   0xf   : > { %s294_s19 = sshll.u32 %s5551_s4, 4  ;;  %s5621_s3 = sld [smem:[#allocation55_spill]]  ;;  %s3688_s19 = int_to_ptr.vmem [resolvable:$true] %s294_s19 }
  0x10   : > { %p3678_p3 = pnand %p3087_p0, %p254_p2  ;;  %s5622_s1 = sld [smem:[#allocation54_spill]] }
  0x12   : > { %s5619_s16 = scalar_select %p3678_p3, 1, 0 }
  0x13   : > { %p3224_p5 = pneg %p3678_p3 }
  0x15   : > { %p3692_p6 = pnand %p3224_p5, %p5558_p1  ;;  %s283_s23 = sshll.u32 %s5621_s3, 4  ;;  %s3699_s23 = int_to_ptr.vmem [resolvable:$true] %s283_s23 }
  0x16   : > { %s3337_s26 = scalar_lea.hbm %s5622_s1, 640 }
  0x17   : > { %p3338_p7 = scmp.ne.s32.totalorder %s5622_s1, %s3337_s26  ;;  %p3709_p8 = pneg %p3692_p6 }
  0x18   : > { %p3344_p11 = scmp.lt.u32.totalorder %s3337_s26, %s5622_s1 }
  0x19   : > { %p3340_p9 = pnand %p3709_p8, %p3338_p7 }
  0x1b   : > { %p3341_p10 = pneg %p3340_p9 }
  0x1d   : > { %p3346_p12 = pnand %p3344_p11, %p3341_p10 }
  0x1f   : > { %3349 = shalt.err (!%p3346_p12)
}
  0x20   : > { %s3350_s18 = scalar_lea.vmem %s3676_s14, 640  ;;  %p3358_p5 = scmp.lt.s32.totalorder %s3676_s14, %s3676_s14 }
  0x21   : > { %p3351_p13 = scmp.ne.s32.totalorder %s3676_s14, %s3350_s18  ;;  %p3359_p4 = scmp.lt.s32.totalorder %s3350_s18, %s3350_s18 }
  0x23   : > { %p3353_p0 = pnand %p3351_p13, %p3709_p8  ;;  %p3360_p7 = por %p3359_p4, %p3358_p5 }
  0x25   : > { %p3354_p2 = pneg %p3353_p0 }
  0x27   : > { %p3361_p9 = pnand %p3360_p7, %p3354_p2 }
  0x29   : > { %3364 = shalt.err (!%p3361_p9)
}
  0x2a   : > { %s5557_s21 = smov 128   ;;  %s3577_s22 = smov 8  }
  0x2b   : > { %3227 = dma.hbm_to_vmem [thread:$0]  (!%p3692_p6), %s5622_s1, 640, %s3676_s14, [#allocation7], %s5557_s21, %s5557_s21, %s3577_s22  }
  0x2c   : > { %s3365_s26 = scalar_lea.vmem %s3688_s19, 16  ;;  %p3373_p12 = scmp.lt.s32.totalorder %s3688_s19, %s3688_s19 }
  0x2d   : > { %p3366_p4 = scmp.ne.s32.totalorder %s3688_s19, %s3365_s26  ;;  %p3374_p13 = scmp.lt.s32.totalorder %s3365_s26, %s3365_s26 }
  0x2f   : > { %p3368_p10 = pnand %p3366_p4, %p3709_p8  ;;  %p3375_p0 = por %p3374_p13, %p3373_p12 }
  0x31   : > { %p3369_p11 = pneg %p3368_p10 }
  0x33   : > { %p3376_p2 = pnand %p3375_p0, %p3369_p11 }
  0x35   : > { %3379 = shalt.err (!%p3376_p2)
}
  0x36   : > { %s3578_s27 = smov [#allocation9]   ;;  %s3380_s14 = scalar_lea.vmem %s3699_s23, 16 }
  0x37   : > { %3233 = dma.vmem_to_smem (!%p3692_p6), %s3688_s19, 16, %s3578_s27, [#allocation10]  }
  0x38   : > { %p3381_p5 = scmp.ne.s32.totalorder %s3699_s23, %s3380_s14  ;;  %p3388_p4 = scmp.lt.s32.totalorder %s3699_s23, %s3699_s23 }
  0x39   : > { %p3389_p10 = scmp.lt.s32.totalorder %s3380_s14, %s3380_s14 }
  0x3a   : > { %p3383_p7 = pnand %p3381_p5, %p3709_p8 }
  0x3b   : > { %p3390_p12 = por %p3389_p10, %p3388_p4 }
  0x3c   : > { %p3384_p9 = pneg %p3383_p7 }
  0x3e   : > { %p3391_p11 = pnand %p3390_p12, %p3384_p9 }
  0x40   : > { %3394 = shalt.err (!%p3391_p11)
}
  0x41   : > { %s3579_s28 = smov [#allocation8]   ;;  %s3580_s13 = smov [#allocation11]  }
  0x42   : > { %3230 = dma.vmem_to_smem (!%p3692_p6), %s3699_s23, 16, %s3579_s28, [#allocation5]  }
  0x43   : > { %s304_s17 = sshll.u32 %s3580_s13, 4  ;;  %s321_s24 = sshll.u32 %s5554_s7, 4  ;;  %s305_s17 = int_to_ptr.vmem [resolvable:$true] %s304_s17  ;;  %s3754_s24 = int_to_ptr.vmem [resolvable:$true] %s321_s24 }
  0x44   : > { %s3395_s27 = scalar_lea.hbm %s5552_s5, 640 }
  0x45   : > { %p3396_p13 = scmp.ne.s32.totalorder %s5552_s5, %s3395_s27  ;;  %p3402_p5 = scmp.lt.u32.totalorder %s3395_s27, %s5552_s5 }
  0x47   : > { %p3398_p0 = pnand %p3396_p13, %p3709_p8 }
  0x49   : > { %p3399_p2 = pneg %p3398_p0 }
  0x4b   : > { %p3404_p7 = pnand %p3402_p5, %p3399_p2 }
  0x4d   : > { %3407 = shalt.err (!%p3404_p7)
}
  0x4e   : > { %s3408_s13 = scalar_lea.vmem %s305_s17, 640  ;;  %p3416_p12 = scmp.lt.s32.totalorder %s305_s17, %s305_s17 }
  0x4f   : > { %p3409_p9 = scmp.ne.s32.totalorder %s305_s17, %s3408_s13  ;;  %p3417_p11 = scmp.lt.s32.totalorder %s3408_s13, %s3408_s13 }
  0x51   : > { %p3411_p4 = pnand %p3409_p9, %p3709_p8  ;;  %p3418_p1 = por %p3417_p11, %p3416_p12 }
  0x53   : > { %p3412_p10 = pneg %p3411_p4 }
  0x55   : > { %p3419_p3 = pnand %p3418_p1, %p3412_p10 }
  0x57   : > { %3422 = shalt.err (!%p3419_p3)
}
  0x58   : > { %s5624_s21 = smov 128   ;;  %s332_s27 = sshll.u32 %s5555_s8, 4  ;;  %s333_s27 = int_to_ptr.vmem [resolvable:$true] %s332_s27 }
  0x59   : > { %3236 = dma.hbm_to_vmem [thread:$0]  (!%p3692_p6), %s5552_s5, 640, %s305_s17, [#allocation7], %s5624_s21, %s5624_s21, %s3577_s22  }
  0x5a   : > { %s3423_s14 = scalar_lea.vmem %s3754_s24, 16  ;;  %p3431_p0 = scmp.lt.s32.totalorder %s3754_s24, %s3754_s24 }
  0x5b   : > { %p3424_p1 = scmp.ne.s32.totalorder %s3754_s24, %s3423_s14  ;;  %p3432_p2 = scmp.lt.s32.totalorder %s3423_s14, %s3423_s14 }
  0x5d   : > { %p3426_p3 = pnand %p3424_p1, %p3709_p8  ;;  %p3433_p5 = por %p3432_p2, %p3431_p0 }
  0x5f   : > { %p3427_p13 = pneg %p3426_p3 }
  0x61   : > { %p3434_p7 = pnand %p3433_p5, %p3427_p13 }
  0x63   : > { %3437 = shalt.err (!%p3434_p7)
}
  0x64   : > { %s3581_s23 = smov [#allocation12]   ;;  %s3438_s22 = scalar_lea.vmem %s333_s27, 16 }
  0x65   : > { %3239 = dma.vmem_to_smem (!%p3692_p6), %s3754_s24, 16, %s3581_s23, [#allocation10]  }
  0x66   : > { %p3439_p9 = scmp.ne.s32.totalorder %s333_s27, %s3438_s22  ;;  %p3446_p12 = scmp.lt.s32.totalorder %s333_s27, %s333_s27 }
  0x67   : > { %p3447_p11 = scmp.lt.s32.totalorder %s3438_s22, %s3438_s22 }
  0x68   : > { %p3441_p4 = pnand %p3439_p9, %p3709_p8 }
  0x69   : > { %p3448_p1 = por %p3447_p11, %p3446_p12 }
  0x6a   : > { %p3442_p10 = pneg %p3441_p4 }
  0x6c   : > { %p3449_p3 = pnand %p3448_p1, %p3442_p10 }
  0x6e   : > { %3452 = shalt.err (!%p3449_p3)
}
  0x6f   : > { %s3582_s17 = smov [#allocation13]   ;;  %s3086_s29 = sadd.s32 4294967294, %s3573_s12  }
  0x70   : > { %3242 = dma.vmem_to_smem (!%p3692_p6), %s333_s27, 16, %s3582_s17, [#allocation14]  }
  0x71   : > { %s3795_s24 = sadd.s32 1, %s3573_s12   ;;  %s36_s28 = sadd.s32 1, %s3569_s11 }
  0x72   : > { %s33_s20 = ssub.s32 %s3573_s12, %s3795_s24  ;;  %p43_p13 = scmp.ne.s32.totalorder %s3569_s11, %s3565_s10 }
  0x73   : > { %p34_p8 = scmp.eq.s32.totalorder %s33_s20, 0  ;;  %p44_p0 = scmp.eq.s32.totalorder %s3573_s12, 0 }
  0x74   : > { %p49_p2 = scmp.ne.s32.totalorder %s3565_s10, %s3561_s30  ;;  %p5626_p7 = scmp.eq.s32.totalorder %s3671_s15, 0 }
  0x75   : > { %s3806_s13 = scalar_select %p34_p8, %s3569_s11, %s36_s28  }
  0x76   : > { %p3808_p5 = por %p44_p0, %p43_p13  ;;  %p3814_p6 = por %p5626_p7, %p49_p2 }
  0x77   : > { %p241_p9 = scmp.eq.s32.totalorder %s3671_s15, 1  ;;  %p247_p4 = scmp.eq.s32.totalorder %s3086_s29, 1 }
  0x78   : > { %p3257_p10 = scmp.lt.s32.totalorder %s3573_s12, 2  ;;  %s343_s18 = sand.u32 1, %s3569_s11  }
  0x79   : > { %p3821_p12 = por %p241_p9, %p43_p13  ;;  %p3825_p11 = por %p247_p4, %p49_p2 }
  0x7a   : > { %s3095_s27 = sshll.u32 %s343_s18, 3  ;;  %s3096_s14 = sshll.u32 %s3573_s12, 7 }
  0x7b   : > { %s5628_s25 = scalar_select %p3821_p12, 1, 0 }
  0x7c   : > { %s5629_s26 = scalar_select %p3825_p11, 1, 0 }
  0x7d   : > { %s3833_s17 = scalar_lea.hbm %s5547_s0, %s3096_s14  ;;  %s347_s29 = scalar_lea.vmem [#allocation2], %s3095_s27 }
  0x7e   : > { %s354_s20 = sshll.u32 %s347_s29, 4  ;;  %p3839_p1 = pnand %p3257_p10, %p3808_p5  ;;  %s3835_s20 = int_to_ptr.vmem [resolvable:$true] %s354_s20 }
  0x7f   : > { %s344_s1 = scalar_lea.sflag [#allocation3], %s343_s18  ;;  %s3453_s3 = scalar_lea.hbm %s3833_s17, 128 }
  0x80   : > { %p3454_p3 = scmp.ne.s32.totalorder %s3833_s17, %s3453_s3  ;;  %p3455_p8 = pneg %p3839_p1 }
  0x81   : > { %s3458_s23 = scalar_lea.hbm %s5547_s0, 256  ;;  %p3459_p2 = scmp.lt.u32.totalorder %s3833_s17, %s5547_s0 }
  0x82   : > { %p3456_p13 = pnand %p3455_p8, %p3454_p3  ;;  %p3460_p5 = scmp.lt.u32.totalorder %s3458_s23, %s3453_s3 }
  0x83   : > { %p3462_p9 = scmp.lt.u32.totalorder %s3453_s3, %s3833_s17 }
  0x84   : > { %p3457_p0 = pneg %p3456_p13  ;;  %p3461_p7 = por %p3460_p5, %p3459_p2 }
  0x86   : > { %p3463_p4 = por %p3462_p9, %p3461_p7 }
  0x88   : > { %p3464_p10 = pnand %p3463_p4, %p3457_p0 }
  0x8a   : > { %3467 = shalt.err (!%p3464_p10)
}
  0x8b   : > { %s3468_s18 = scalar_lea.vmem %s3835_s20, 128  ;;  %s3583_s29 = smov [#allocation2]  }
  0x8c   : > { %p3469_p3 = scmp.ne.s32.totalorder %s3835_s20, %s3468_s18  ;;  %s3473_s27 = sshll.u32 %s3583_s29, 4  ;;  %s3474_s27 = int_to_ptr.vmem [resolvable:$false] %s3473_s27 }
  0x8d   : > { %s3475_s14 = scalar_lea.vmem %s3474_s27, 256  ;;  %p3476_p12 = scmp.lt.s32.totalorder %s3835_s20, %s3474_s27 }
  0x8e   : > { %p3471_p13 = pnand %p3469_p3, %p3455_p8  ;;  %p3477_p2 = scmp.lt.s32.totalorder %s3475_s14, %s3468_s18 }
  0x90   : > { %p3472_p11 = pneg %p3471_p13  ;;  %p3478_p5 = por %p3477_p2, %p3476_p12 }
  0x92   : > { %p3479_p7 = pnand %p3478_p5, %p3472_p11 }
  0x94   : > { %3482 = shalt.err (!%p3479_p7)
}
  0x95   : > { %3246 = dma.hbm_to_vmem [thread:$0]  (!%p3839_p1), %s3833_s17, 128, %s3835_s20, %s344_s1  }
  0x96   : > { %p5631_p0 = scmp.ne.s32.totalorder %s5619_s16, 0 }
  0x98   : > { %363 = sbr.rel (%p5631_p0) target bundleno = 1884 (0x75c), region = 56 }
  0x9f   : > { %s3871_s3 = sand.u32 1, %s3565_s10  }
  0xa0   : > { %s5561_s23 = sshll.u32 %s3871_s3, 3  ;;  %s366_s21 = scalar_lea.sflag [#allocation3], %s3871_s3 }
  0xa1   : > { %s3877_s22 = scalar_lea.vmem [#allocation2], %s5561_s23 }
  0xa2   : > { %3528 = dma.done.wait (%p3814_p6), %s366_s21, 128  }
  0xa3   : > { %3530 = vsyncadd (%p3814_p6), %s366_s21, 4294967168  ;;  %p5632_p12 = scmp.eq.s32.totalorder %s3671_s15, 0 }
  0xa5   : > { %3532 = dma.done.wait (%p5632_p12), [#allocation7], 640   ;;  %p5633_p11 = pmov %p5632_p12 }
  0xa7   : > { %3534 = vsyncadd (%p5633_p11), [#allocation7], 4294966656  ;;  %p5634_p1 = pmov %p5633_p11 }
  0xa9   : > { %3536 = dma.done.wait (%p5634_p1), [#allocation5], 16   ;;  %p5635_p8 = pmov %p5634_p1 }
  0xaa   : > { %p5636_p9 = pmov %p5634_p1 }
  0xab   : > { %3538 = vsyncadd (%p5635_p8), [#allocation5], 4294967280 }
  0xac   : > { %3540 = dma.done.wait (%p5636_p9), [#allocation10], 16   ;;  %p5637_p4 = pmov %p5634_p1 }
  0xad   : > { %p5638_p6 = pmov %p5634_p1 }
  0xae   : > { %3542 = vsyncadd (%p5637_p4), [#allocation10], 4294967280 }
  0xaf   : > { %3544 = dma.done.wait (%p5638_p6), [#allocation7], 640   ;;  %p5639_p10 = pmov %p5634_p1 }
  0xb0   : > { %p5640_p3 = pmov %p5634_p1 }
  0xb1   : > { %3546 = vsyncadd (%p5639_p10), [#allocation7], 4294966656 }
  0xb2   : > { %3548 = dma.done.wait (%p5640_p3), [#allocation10], 16   ;;  %p5641_p13 = pmov %p5634_p1 }
  0xb3   : > { %p5642_p2 = pmov %p5634_p1 }
  0xb4   : > { %3550 = vsyncadd (%p5641_p13), [#allocation10], 4294967280 }
  0xb5   : > { %3552 = dma.done.wait (%p5642_p2), [#allocation14], 16   ;;  %p5643_p5 = pmov %p5634_p1 }
  0xb7   : > { %3554 = vsyncadd (%p5643_p5), [#allocation14], 4294967280 }
  0xb8   : > { %398 = sfence }
  0xb9   : > { %v429_v0 = vld [vmem:[%s3877_s22] sm:$0xff]  ;;  %vm442_vm0 = vcmask 1040384   ;;  %s5562_s1 = smov 64   ;;  %s5600_s16 = smov 32   ;;  %vm473_vm1 = vcmask 7168   ;;  %vm477_vm2 = vcmask 121856  }
  0xba   : > { %431 = vrot.lane.b32.xlu0 %v429_v0, %s5562_s1  ;;  %v440_v1 = vrot.slane %v429_v0, 1  ;;  %v443_v2 = vrot.slane %v429_v0, 7  ;;  %s3586_s19 = smov 127   ;;  %s5592_s17 = smov 95   ;;  %vm511_vm3 = vcmask 130048   ;;  %vm515_vm4 = vcmask 261120  }
  0xbb   : > { %s3588_s20 = smov 1   ;;  %s5580_s28 = smov 97   ;;  %vm519_vm5 = vcmask 392192   ;;  %vm636_vm6 = vcmask 1046528   ;;  %vm697_vm7 = vcmask 1045504   ;;  %vm1548_vm8 = vcmask 523264  }
  0xbc   : > { %v3910_v3 = vsel %vm442_vm0, %v440_v1, %v443_v2  ;;  %s3590_s18 = smov 16   ;;  %s5564_s29 = smov 96   ;;  %vm2940_vm9 = vcmask 1048064  }
  0xbd   : > { %532 = vrot.lane.b32.xlu1 %v3910_v3, %s5600_s16  ;;  %s5598_s27 = smov 48   ;;  %s5566_s14 = smov 111  }
  0xbe   : > { %455 = vrot.lane.b32.xlu0 %v3910_v3, %s3586_s19  ;;  %s5596_s21 = smov 113   ;;  %s5578_s23 = smov 79  }
  0xbf   : > { %s5568_s1 = smov 81   ;;  %p5753_p0 = scmp.ne.s32.totalorder %s5628_s25, 0 }
  0xc1   : > { %1014 = vrot.lane.b32.xlu1 %v3910_v3, %s5592_s17 }
  0xc2   : > { %464 = vrot.lane.b32.xlu0 %v3910_v3, %s3588_s20 }
  0xc5   : > { %1023 = vrot.lane.b32.xlu1 %v3910_v3, %s5580_s28 }
  0xc6   : > { %523 = vrot.lane.b32.xlu0 %v3910_v3, %s3590_s18 }
  0xc9   : > { %1077 = vrot.lane.b32.xlu1 %v3910_v3, %s5564_s29  ;;  %s5594_s29 = smov 112  }
  0xca   : > { %541 = vrot.lane.b32.xlu0 %v3910_v3, %s5598_s27 }
  0xce   : > { %747 = vrot.lane.b32.xlu0 %v3910_v3, %s5566_s14 }
  0xd2   : > { %756 = vrot.lane.b32.xlu0 %v3910_v3, %s5596_s21 }
  0xd6   : > { %1281 = vrot.lane.b32.xlu0 %v3910_v3, %s5578_s23 }
  0xda   : > { %1290 = vrot.lane.b32.xlu0 %v3910_v3, %s5568_s1 }
  0xde   : > { %810 = vrot.lane.b32.xlu0 %v3910_v3, %s5594_s29 }
 0x12c   : > { %v432_v4 = vpop.permute.xlu0 %431 }
 0x12d   : > { %v444_v5 = vrot.slane %v432_v4, 7  ;;  %v449_v6 = vrot.slane %v432_v4, 5 }
 0x12f   : > { %v3939_v7 = vsel %vm442_vm0, %v443_v2, %v444_v5  ;;  %v3942_v8 = vsel %vm442_vm0, %v444_v5, %v449_v6  ;;  %v4013_v18 = vpop.permute.xlu1 %532 }
 0x130   : > { %457 = vrot.lane.b32.xlu1 %v3939_v7, %s3586_s19  ;;  %468 = vrot.lane.b32.xlu0 %v3942_v8, %s3588_s20  ;;  %v456_v9 = vpop.permute.xlu0 %455 }
 0x133   : > { %v1015_v19 = vpop.permute.xlu1 %1014 }
 0x134   : > { %459 = vrot.lane.b32.xlu1 %v3942_v8, %s3586_s19  ;;  %527 = vrot.lane.b32.xlu0 %v3942_v8, %s3590_s18  ;;  %v465_v10 = vpop.permute.xlu0 %464 }
 0x135   : > { %v3993_v13 = vsel %vm473_vm1, %v456_v9, %v465_v10  ;;  %v4000_v15 = vsel %vm477_vm2, %v456_v9, %v465_v10 }
 0x137   : > { %v1024_v21 = vpop.permute.xlu1 %1023 }
 0x138   : > { %466 = vrot.lane.b32.xlu1 %v3939_v7, %s3588_s20  ;;  %534 = vrot.lane.b32.xlu0 %v3939_v7, %s5600_s16  ;;  %v3980_v11 = vpop.permute.xlu0 %523  ;;  %v4035_v22 = vsel %vm473_vm1, %v1015_v19, %v1024_v21  ;;  %v4053_v26 = vsel %vm477_vm2, %v1015_v19, %v1024_v21 }
 0x139   : > { %5645 = vst [vmem:[#allocation24_spill] sm:$0xff] %v4035_v22  ;;  %5647 = vst [vmem:[#allocation26_spill] sm:$0xff] %v4053_v26 }
 0x13b   : > { %v4080_v29 = vpop.permute.xlu1 %1077 }
 0x13c   : > { %525 = vrot.lane.b32.xlu1 %v3939_v7, %s3590_s18  ;;  %751 = vrot.lane.b32.xlu0 %v3942_v8, %s5566_s14  ;;  %v3986_v12 = vpop.permute.xlu0 %541  ;;  %5650 = vst [vmem:[#allocation29_spill] sm:$0xff] %v4080_v29 }
 0x140   : > { %536 = vrot.lane.b32.xlu1 %v3942_v8, %s5600_s16  ;;  %545 = vrot.lane.b32.xlu0 %v3942_v8, %s5598_s27  ;;  %v748_v14 = vpop.permute.xlu0 %747 }
 0x144   : > { %543 = vrot.lane.b32.xlu1 %v3939_v7, %s5598_s27  ;;  %1016 = vrot.lane.b32.xlu0 %v3939_v7, %s5592_s17  ;;  %v757_v16 = vpop.permute.xlu0 %756 }
 0x145   : > { %v4011_v17 = vsel %vm473_vm1, %v748_v14, %v757_v16  ;;  %v4028_v20 = vsel %vm477_vm2, %v748_v14, %v757_v16 }
 0x148   : > { %749 = vrot.lane.b32.xlu1 %v3939_v7, %s5566_s14  ;;  %1025 = vrot.lane.b32.xlu0 %v3939_v7, %s5580_s28  ;;  %s5644_s14 = smov 96   ;;  %v1282_v23 = vpop.permute.xlu0 %1281 }
 0x14c   : > { %758 = vrot.lane.b32.xlu1 %v3939_v7, %s5596_s21  ;;  %1027 = vrot.lane.b32.xlu0 %v3942_v8, %s5580_s28  ;;  %v1291_v24 = vpop.permute.xlu0 %1290  ;;  %s1579_s28 = sld [smem:[#allocation8]] }
 0x14d   : > { %v4046_v25 = vsel %vm473_vm1, %v1282_v23, %v1291_v24  ;;  %v4068_v27 = vsel %vm477_vm2, %v1282_v23, %v1291_v24 }
 0x14e   : > { %5646 = vst [vmem:[#allocation25_spill] sm:$0xff] %v4046_v25  ;;  %5648 = vst [vmem:[#allocation27_spill] sm:$0xff] %v4068_v27 }
 0x150   : > { %760 = vrot.lane.b32.xlu1 %v3942_v8, %s5596_s21  ;;  %1285 = vrot.lane.b32.xlu0 %v3942_v8, %s5578_s23  ;;  %v4078_v28 = vpop.permute.xlu0 %810  ;;  %s3146_s21 = sld [smem:[#allocation9 + $0x2]] }
 0x151   : > { %5649 = vst [vmem:[#allocation28_spill] sm:$0xff] %v4078_v28 }
 0x154   : > { %1018 = vrot.lane.b32.xlu1 %v3942_v8, %s5592_s17  ;;  %1079 = vrot.lane.b32.xlu0 %v3939_v7, %s5644_s14  ;;  %s3144_s17 = sld [smem:[#allocation9 + $0x1]] }
 0x158   : > { %1283 = vrot.lane.b32.xlu1 %v3939_v7, %s5578_s23  ;;  %1081 = vrot.lane.b32.xlu0 %v3942_v8, %s5644_s14  ;;  %s3143_s23 = sld [smem:[#allocation8 + $0x1]] }
 0x15c   : > { %1292 = vrot.lane.b32.xlu1 %v3939_v7, %s5568_s1  ;;  %493 = vrot.lane.b32.xlu0 %v3993_v13, %s5600_s16 }
 0x160   : > { %1294 = vrot.lane.b32.xlu1 %v3942_v8, %s5568_s1  ;;  %571 = vrot.lane.b32.xlu0 %v4000_v15, %s5600_s16  ;;  %s5590_s1 = smov 80  }
 0x164   : > { %812 = vrot.lane.b32.xlu1 %v3939_v7, %s5594_s29  ;;  %580 = vrot.lane.b32.xlu0 %v4000_v15, %s5598_s27 }
 0x168   : > { %814 = vrot.lane.b32.xlu1 %v3942_v8, %s5594_s29  ;;  %774 = vrot.lane.b32.xlu0 %v4011_v17, %s3590_s18 }
 0x16c   : > { %484 = vrot.lane.b32.xlu1 %v3993_v13, %s3590_s18  ;;  %783 = vrot.lane.b32.xlu0 %v4011_v17, %s5600_s16 }
 0x170   : > { %502 = vrot.lane.b32.xlu1 %v3993_v13, %s5598_s27  ;;  %792 = vrot.lane.b32.xlu0 %v4011_v17, %s5598_s27 }
 0x174   : > { %562 = vrot.lane.b32.xlu1 %v4000_v15, %s3590_s18  ;;  %831 = vrot.lane.b32.xlu0 %v4028_v20, %s3590_s18 }
 0x178   : > { %1041 = vrot.lane.b32.xlu1 %v4035_v22, %s3590_s18  ;;  %840 = vrot.lane.b32.xlu0 %v4028_v20, %s5600_s16 }
 0x17c   : > { %1050 = vrot.lane.b32.xlu1 %v4035_v22, %s5600_s16  ;;  %849 = vrot.lane.b32.xlu0 %v4028_v20, %s5598_s27 }
 0x180   : > { %1059 = vrot.lane.b32.xlu1 %v4035_v22, %s5598_s27  ;;  %1308 = vrot.lane.b32.xlu0 %v4046_v25, %s3590_s18 }
 0x184   : > { %1098 = vrot.lane.b32.xlu1 %v4053_v26, %s3590_s18  ;;  %1317 = vrot.lane.b32.xlu0 %v4046_v25, %s5600_s16 }
 0x188   : > { %1107 = vrot.lane.b32.xlu1 %v4053_v26, %s5600_s16  ;;  %1326 = vrot.lane.b32.xlu0 %v4046_v25, %s5598_s27 }
 0x18c   : > { %1116 = vrot.lane.b32.xlu1 %v4053_v26, %s5598_s27  ;;  %1344 = vrot.lane.b32.xlu0 %v3910_v3, %s5590_s1 }
 0x190   : > { %1346 = vrot.lane.b32.xlu1 %v3939_v7, %s5590_s1  ;;  %1365 = vrot.lane.b32.xlu0 %v4068_v27, %s3590_s18 }
 0x194   : > { %1348 = vrot.lane.b32.xlu1 %v3942_v8, %s5590_s1  ;;  %1374 = vrot.lane.b32.xlu0 %v4068_v27, %s5600_s16 }
 0x1a2   : > { %v458_v30 = vpop.permute.xlu1 %457  ;;  %v469_v31 = vpop.permute.xlu0 %468 }
 0x1a6   : > { %v460_v32 = vpop.permute.xlu1 %459  ;;  %v4082_v33 = vpop.permute.xlu0 %527 }
 0x1a7   : > { %v4085_v34 = vsel %vm473_vm1, %v460_v32, %v469_v31  ;;  %v4109_v42 = vsel %vm477_vm2, %v460_v32, %v469_v31 }
 0x1a8   : > { %488 = vrot.lane.b32.xlu1 %v4085_v34, %s3590_s18 }
 0x1aa   : > { %v467_v35 = vpop.permute.xlu1 %466  ;;  %v4089_v36 = vpop.permute.xlu0 %534 }
 0x1ab   : > { %v4092_v37 = vsel %vm473_vm1, %v458_v30, %v467_v35  ;;  %v4118_v45 = vsel %vm477_vm2, %v458_v30, %v467_v35 }
 0x1ac   : > { %486 = vrot.lane.b32.xlu0 %v4092_v37, %s3590_s18  ;;  %495 = vrot.lane.b32.xlu1 %v4092_v37, %s5600_s16 }
 0x1ae   : > { %v4098_v38 = vpop.permute.xlu1 %525  ;;  %v752_v39 = vpop.permute.xlu0 %751 }
 0x1b0   : > { %497 = vrot.lane.b32.xlu0 %v4085_v34, %s5600_s16  ;;  %506 = vrot.lane.b32.xlu1 %v4085_v34, %s5598_s27 }
 0x1b2   : > { %v4104_v40 = vpop.permute.xlu1 %536  ;;  %v4106_v41 = vpop.permute.xlu0 %545 }
 0x1b4   : > { %504 = vrot.lane.b32.xlu0 %v4092_v37, %s5598_s27  ;;  %566 = vrot.lane.b32.xlu1 %v4109_v42, %s3590_s18 }
 0x1b6   : > { %v4115_v43 = vpop.permute.xlu1 %543  ;;  %v1017_v44 = vpop.permute.xlu0 %1016 }
 0x1b8   : > { %564 = vrot.lane.b32.xlu0 %v4118_v45, %s3590_s18  ;;  %573 = vrot.lane.b32.xlu1 %v4118_v45, %s5600_s16 }
 0x1ba   : > { %v750_v46 = vpop.permute.xlu1 %749  ;;  %v1026_v47 = vpop.permute.xlu0 %1025 }
 0x1bb   : > { %v4168_v63 = vsel %vm473_vm1, %v1017_v44, %v1026_v47  ;;  %v4203_v16 = vsel %vm477_vm2, %v1017_v44, %v1026_v47 }
 0x1bc   : > { %575 = vrot.lane.b32.xlu0 %v4109_v42, %s5600_s16  ;;  %582 = vrot.lane.b32.xlu1 %v4118_v45, %s5598_s27  ;;  %5652 = vst [vmem:[#allocation31_spill] sm:$0xff] %v4168_v63  ;;  %5655 = vst [vmem:[#allocation34_spill] sm:$0xff] %v4203_v16 }
 0x1be   : > { %v759_v48 = vpop.permute.xlu1 %758  ;;  %v1028_v49 = vpop.permute.xlu0 %1027 }
 0x1bf   : > { %v4136_v53 = vsel %vm473_vm1, %v750_v46, %v759_v48  ;;  %v4171_v0 = vsel %vm477_vm2, %v750_v46, %v759_v48 }
 0x1c0   : > { %584 = vrot.lane.b32.xlu1 %v4109_v42, %s5598_s27  ;;  %5653 = vst [vmem:[#allocation32_spill] sm:$0xff] %v4171_v0 }
 0x1c2   : > { %v761_v50 = vpop.permute.xlu1 %760  ;;  %v4130_v51 = vpop.permute.xlu0 %1285 }
 0x1c3   : > { %v4133_v52 = vsel %vm473_vm1, %v752_v39, %v761_v50  ;;  %v4153_v58 = vsel %vm477_vm2, %v752_v39, %v761_v50 }
 0x1c4   : > { %778 = vrot.lane.b32.xlu0 %v4133_v52, %s3590_s18  ;;  %776 = vrot.lane.b32.xlu1 %v4136_v53, %s3590_s18  ;;  %5651 = vst [vmem:[#allocation30_spill] sm:$0xff] %v4153_v58 }
 0x1c6   : > { %v1019_v54 = vpop.permute.xlu1 %1018  ;;  %v4142_v55 = vpop.permute.xlu0 %1079 }
 0x1c7   : > { %v4196_v10 = vsel %vm473_vm1, %v1019_v54, %v1028_v49  ;;  %v4222_v30 = vsel %vm477_vm2, %v1019_v54, %v1028_v49 }
 0x1c8   : > { %796 = vrot.lane.b32.xlu0 %v4133_v52, %s5598_s27  ;;  %785 = vrot.lane.b32.xlu1 %v4136_v53, %s5600_s16  ;;  %5654 = vst [vmem:[#allocation33_spill] sm:$0xff] %v4196_v10  ;;  %5657 = vst [vmem:[#allocation36_spill] sm:$0xff] %v4222_v30 }
 0x1ca   : > { %v4148_v56 = vpop.permute.xlu1 %1283  ;;  %v4150_v57 = vpop.permute.xlu0 %1081 }
 0x1cc   : > { %835 = vrot.lane.b32.xlu0 %v4153_v58, %s3590_s18  ;;  %794 = vrot.lane.b32.xlu1 %v4136_v53, %s5598_s27 }
 0x1ce   : > { %v1293_v59 = vpop.permute.xlu1 %1292  ;;  %v4159_v60 = vpop.permute.xlu0 %493 }
 0x1cf   : > { %v4238_v35 = vsel %vm473_vm1, %v4148_v56, %v1293_v59 }
 0x1d0   : > { %853 = vrot.lane.b32.xlu0 %v4153_v58, %s5598_s27  ;;  %787 = vrot.lane.b32.xlu1 %v4133_v52, %s5600_s16  ;;  %5659 = vst [vmem:[#allocation38_spill] sm:$0xff] %v4238_v35 }
 0x1d2   : > { %v1295_v61 = vpop.permute.xlu1 %1294  ;;  %v4165_v62 = vpop.permute.xlu0 %571 }
 0x1d3   : > { %v4246_v44 = vsel %vm473_vm1, %v4130_v51, %v1295_v61  ;;  %v4264_v49 = vsel %vm477_vm2, %v4130_v51, %v1295_v61 }
 0x1d4   : > { %1043 = vrot.lane.b32.xlu0 %v4168_v63, %s3590_s18  ;;  %833 = vrot.lane.b32.xlu1 %v4171_v0, %s3590_s18  ;;  %5660 = vst [vmem:[#allocation39_spill] sm:$0xff] %v4246_v44  ;;  %5664 = vst [vmem:[#allocation43_spill] sm:$0xff] %v4264_v49 }
 0x1d6   : > { %v4177_v1 = vpop.permute.xlu1 %812  ;;  %v4179_v2 = vpop.permute.xlu0 %580 }
 0x1d8   : > { %1052 = vrot.lane.b32.xlu0 %v4168_v63, %s5600_s16  ;;  %842 = vrot.lane.b32.xlu1 %v4171_v0, %s5600_s16 }
 0x1da   : > { %v4185_v4 = vpop.permute.xlu1 %814  ;;  %v4187_v5 = vpop.permute.xlu0 %774 }
 0x1dc   : > { %1061 = vrot.lane.b32.xlu0 %v4168_v63, %s5598_s27  ;;  %851 = vrot.lane.b32.xlu1 %v4171_v0, %s5598_s27 }
 0x1de   : > { %v485_v6 = vpop.permute.xlu1 %484  ;;  %v4193_v9 = vpop.permute.xlu0 %783 }
 0x1df   : > { %v512_v25 = vsel %vm511_vm3, %v3993_v13, %v485_v6  ;;  %v551_v13 = vsel %vm511_vm3, %v3939_v7, %v4098_v38 }
 0x1e0   : > { %1054 = vrot.lane.b32.xlu0 %v4196_v10, %s5600_s16  ;;  %844 = vrot.lane.b32.xlu1 %v4153_v58, %s5600_s16  ;;  %v1086_v58 = vsel %vm511_vm3, %v4080_v29, %v4078_v28 }
 0x1e2   : > { %v503_v14 = vpop.permute.xlu1 %502  ;;  %v4205_v19 = vpop.permute.xlu0 %792 }
 0x1e4   : > { %1100 = vrot.lane.b32.xlu0 %v4203_v16, %s3590_s18  ;;  %1045 = vrot.lane.b32.xlu1 %v4196_v10, %s3590_s18 }
 0x1e6   : > { %v563_v21 = vpop.permute.xlu1 %562  ;;  %v4215_v23 = vpop.permute.xlu0 %831 }
 0x1e8   : > { %1109 = vrot.lane.b32.xlu0 %v4203_v16, %s5600_s16  ;;  %1063 = vrot.lane.b32.xlu1 %v4196_v10, %s5598_s27 }
 0x1ea   : > { %v4217_v24 = vpop.permute.xlu1 %1041  ;;  %v4226_v31 = vpop.permute.xlu0 %840 }
 0x1eb   : > { %5656 = vst [vmem:[#allocation35_spill] sm:$0xff] %v4217_v24 }
 0x1ec   : > { %1118 = vrot.lane.b32.xlu0 %v4203_v16, %s5598_s27  ;;  %1102 = vrot.lane.b32.xlu1 %v4222_v30, %s3590_s18 }
 0x1ee   : > { %v4232_v32 = vpop.permute.xlu1 %1050  ;;  %v4242_v39 = vpop.permute.xlu0 %849 }
 0x1ef   : > { %5658 = vst [vmem:[#allocation37_spill] sm:$0xff] %v4232_v32  ;;  %v3112_v32 = vld [vmem:[#allocation6 + $0x14] ss:$0 sm:$0xff] }
 0x1f0   : > { %1111 = vrot.lane.b32.xlu0 %v4222_v30, %s5600_s16  ;;  %1120 = vrot.lane.b32.xlu1 %v4222_v30, %s5598_s27 }
 0x1f2   : > { %v4248_v46 = vpop.permute.xlu1 %1059  ;;  %v4254_v47 = vpop.permute.xlu0 %1308 }
 0x1f3   : > { %5661 = vst [vmem:[#allocation40_spill] sm:$0xff] %v4248_v46  ;;  %5662 = vst [vmem:[#allocation41_spill] sm:$0xff] %v4254_v47 }
 0x1f4   : > { %1383 = vrot.lane.b32.xlu0 %v4068_v27, %s5598_s27  ;;  %1310 = vrot.lane.b32.xlu1 %v4238_v35, %s3590_s18  ;;  %v4276_v27 = vsel %vm477_vm2, %v4148_v56, %v1293_v59 }
 0x1f5   : > { %5667 = vst [vmem:[#allocation46_spill] sm:$0xff] %v4276_v27 }
 0x1f6   : > { %v4260_v48 = vpop.permute.xlu1 %1098  ;;  %v4270_v50 = vpop.permute.xlu0 %1317 }
 0x1f7   : > { %5663 = vst [vmem:[#allocation42_spill] sm:$0xff] %v4260_v48  ;;  %5665 = vst [vmem:[#allocation44_spill] sm:$0xff] %v4270_v50  ;;  %v4348_v48 = vld [vmem:[#allocation6 + $0x1c] ss:$0 sm:$0xff] }
 0x1f8   : > { %1312 = vrot.lane.b32.xlu0 %v4246_v44, %s3590_s18  ;;  %1319 = vrot.lane.b32.xlu1 %v4238_v35, %s5600_s16 }
 0x1fa   : > { %v4272_v54 = vpop.permute.xlu1 %1107  ;;  %v4282_v51 = vpop.permute.xlu0 %1326 }
 0x1fb   : > { %5666 = vst [vmem:[#allocation45_spill] sm:$0xff] %v4272_v54  ;;  %5668 = vst [vmem:[#allocation47_spill] sm:$0xff] %v4282_v51 }
 0x1fc   : > { %1330 = vrot.lane.b32.xlu0 %v4246_v44, %s5598_s27  ;;  %1328 = vrot.lane.b32.xlu1 %v4238_v35, %s5598_s27 }
 0x1fe   : > { %v4286_v61 = vpop.permute.xlu1 %1116 }
 0x1ff   : > { %5669 = vst [vmem:[#allocation48_spill] sm:$0xff] %v4286_v61  ;;  %v3108_v61 = vld [vmem:[#allocation6 + $0x4] ss:$0 sm:$0xff] }
 0x200   : > { %1369 = vrot.lane.b32.xlu0 %v4264_v49, %s3590_s18  ;;  %1321 = vrot.lane.b32.xlu1 %v4246_v44, %s5600_s16  ;;  %v4290_v44 = vpop.permute.xlu0 %1344 }
 0x201   : > { %5670 = vst [vmem:[#allocation49_spill] sm:$0xff] %v4290_v44 }
 0x202   : > { %v4292_v56 = vpop.permute.xlu1 %1346 }
 0x203   : > { %5671 = vst [vmem:[#allocation50_spill] sm:$0xff] %v4292_v56  ;;  %v550_v56 = vsel %vm511_vm3, %v3910_v3, %v3980_v11 }
 0x204   : > { %1387 = vrot.lane.b32.xlu0 %v4264_v49, %s5598_s27  ;;  %1367 = vrot.lane.b32.xlu1 %v4276_v27, %s3590_s18  ;;  %v4296_v59 = vpop.permute.xlu0 %1365  ;;  %v553_v30 = vsel %vm515_vm4, %v550_v56, %v4013_v18  ;;  %v3111_v56 = vld [vmem:[#allocation6 + $0x10] ss:$0 sm:$0xff] }
 0x205   : > { %5672 = vst [vmem:[#allocation51_spill] sm:$0xff] %v4296_v59  ;;  %v3107_v59 = vld [vmem:[#allocation6] ss:$0 sm:$0xff] }
 0x206   : > { %v4298_v35 = vpop.permute.xlu1 %1348 }
 0x207   : > { %5673 = vst [vmem:[#allocation52_spill] sm:$0xff] %v4298_v35 }
 0x208   : > { %1376 = vrot.lane.b32.xlu1 %v4276_v27, %s5600_s16  ;;  %v4300_v51 = vpop.permute.xlu0 %1374 }
 0x209   : > { %5674 = vst [vmem:[#allocation53_spill] sm:$0xff] %v4300_v51  ;;  %v589_v51 = vsel %vm511_vm3, %v4000_v15, %v563_v21  ;;  %v554_v15 = vsel %vm515_vm4, %v551_v13, %v4089_v36  ;;  %v3106_v21 = vld [vmem:[%s5549_s2] ss:$0 sm:$0xff] }
 0x20c   : > { %1385 = vrot.lane.b32.xlu1 %v4276_v27, %s5598_s27  ;;  %s1584_s27 = sld [smem:[#allocation9]] }
 0x210   : > { %1378 = vrot.lane.b32.xlu1 %v4264_v49, %s5600_s16  ;;  %v516_v49 = vsel %vm515_vm4, %v512_v25, %v4159_v60  ;;  %v3110_v25 = vld [vmem:[#allocation6 + $0xc] ss:$0 sm:$0xff]  ;;  %s3148_s16 = sld [smem:[#allocation9 + $0x3]] }
 0x211   : > { %v4310_v35 = vsel %vm519_vm5, %v516_v49, %v503_v14  ;;  %v592_v14 = vsel %vm515_vm4, %v589_v51, %v4165_v62  ;;  %v556_v49 = vsel %vm519_vm5, %v553_v30, %v3986_v12  ;;  %v3109_v30 = vld [vmem:[#allocation6 + $0x8] ss:$0 sm:$0xff] }
 0x212   : > { %v603_v60 = vmul.f32 %v3107_v59, %v4310_v35  ;;  %v630_v51 = vmul.f32 %v3110_v25, %v4310_v35  ;;  %v4339_v13 = vsel %vm519_vm5, %v592_v14, %v4179_v2  ;;  %v612_v63 = vmul.f32 %v3108_v61, %v556_v49 }
 0x213   : > { %v4363_v46 = vmul.f32 %v4348_v48, %v556_v49 }
 0x214   : > { %v605_v26 = vadd.f32 %v3106_v21, %v603_v60 }
 0x21a   : > { %v489_v50 = vpop.permute.xlu1 %488 }
 0x21b   : > { %v514_v10 = vsel %vm511_vm3, %v4085_v34, %v489_v50 }
 0x21e   : > { %v496_v47 = vpop.permute.xlu1 %495  ;;  %v487_v27 = vpop.permute.xlu0 %486 }
 0x21f   : > { %v513_v16 = vsel %vm511_vm3, %v4092_v37, %v487_v27  ;;  %v4333_v27 = vsel %vm519_vm5, %v554_v15, %v4115_v43 }
 0x220   : > { %v517_v54 = vsel %vm515_vm4, %v513_v16, %v496_v47  ;;  %v552_v16 = vsel %vm511_vm3, %v3942_v8, %v4082_v33  ;;  %v651_v47 = vmul.f32 %v3111_v56, %v556_v49  ;;  %v4353_v34 = vmul.f32 %v3111_v56, %v4333_v27 }
 0x221   : > { %v555_v14 = vsel %vm515_vm4, %v552_v16, %v4104_v40  ;;  %v614_v16 = vadd.f32 %v612_v63, %v605_v26  ;;  %v613_v63 = vmul.f32 %v3108_v61, %v4333_v27 }
 0x222   : > { %v507_v6 = vpop.permute.xlu1 %506  ;;  %v498_v44 = vpop.permute.xlu0 %497  ;;  %v657_v22 = vrot.slane %v651_v47, 1  ;;  %v658_v24 = vrot.slane %v4353_v34, 1 }
 0x223   : > { %v518_v43 = vsel %vm515_vm4, %v514_v10, %v498_v44  ;;  %v621_v10 = vmul.f32 %v3109_v30, %v4339_v13  ;;  %v637_v44 = vrot.slane %v630_v51, 1 }
 0x224   : > { %v659_v61 = vsel %vm636_vm6, %v657_v22, %v658_v24 }
 0x225   : > { %v623_v26 = vadd.f32 %v621_v10, %v614_v16 }
 0x226   : > { %v567_v37 = vpop.permute.xlu1 %566  ;;  %v505_v62 = vpop.permute.xlu0 %504 }
 0x227   : > { %v521_v12 = vsel %vm519_vm5, %v517_v54, %v505_v62  ;;  %v4357_v62 = vsel %vm519_vm5, %v518_v43, %v507_v6  ;;  %v558_v6 = vsel %vm519_vm5, %v555_v14, %v4106_v41  ;;  %v671_v41 = vmul.f32 %v3112_v32, %v4339_v13 }
 0x228   : > { %v631_v15 = vmul.f32 %v3110_v25, %v521_v12  ;;  %v604_v2 = vmul.f32 %v3107_v59, %v521_v12  ;;  %v819_v59 = vsel %vm511_vm3, %v4078_v28, %v3910_v3  ;;  %v632_v49 = vmul.f32 %v3110_v25, %v4357_v62 }
 0x229   : > { %v653_v47 = vmul.f32 %v3111_v56, %v558_v6 }
 0x22a   : > { %v638_v50 = vrot.slane %v631_v15, 1  ;;  %v574_v54 = vpop.permute.xlu1 %573  ;;  %v565_v60 = vpop.permute.xlu0 %564  ;;  %v606_v51 = vadd.f32 %v3106_v21, %v604_v2  ;;  %v1089_v21 = vsel %vm515_vm4, %v1086_v58, %v3910_v3  ;;  %v677_v58 = vrot.slane %v671_v41, 1  ;;  %v4400_v41 = vld [vmem:[#allocation6 + $0x11] ss:$0 sm:$0xff] }
 0x22b   : > { %v590_v15 = vsel %vm511_vm3, %v4118_v45, %v565_v60  ;;  %v822_v45 = vsel %vm515_vm4, %v819_v59, %v3980_v11  ;;  %v3113_v60 = vld [vmem:[#allocation6 + $0x18] ss:$0 sm:$0xff] }
 0x22c   : > { %v639_v43 = vsel %vm636_vm6, %v637_v44, %v638_v50  ;;  %v593_v28 = vsel %vm515_vm4, %v590_v15, %v574_v54  ;;  %v4383_v34 = vmul.f32 %v3113_v60, %v521_v12  ;;  %v615_v10 = vadd.f32 %v613_v63, %v606_v51 }
 0x22d   : > { %v644_v14 = vadd.f32 %v639_v43, %v623_v26  ;;  %v691_v16 = vmul.f32 %v3113_v60, %v4310_v35  ;;  %v640_v54 = vrot.slane %v632_v49, 1  ;;  %v591_v15 = vsel %vm511_vm3, %v4109_v42, %v567_v37 }
 0x22e   : > { %v583_v0 = vpop.permute.xlu1 %582  ;;  %v576_v25 = vpop.permute.xlu0 %575  ;;  %v4392_v12 = vmul.f32 %v4348_v48, %v4333_v27  ;;  %v699_v35 = vrot.slane %v4383_v34, 2  ;;  %v660_v49 = vrot.slane %v653_v47, 1  ;;  %v718_v27 = vrot.slane %v4363_v46, 2  ;;  %v4413_v46 = vld [vmem:[#allocation6 + $0x12] ss:$0 sm:$0xff] }
 0x22f   : > { %v596_v2 = vsel %vm519_vm5, %v593_v28, %v583_v0  ;;  %v594_v28 = vsel %vm515_vm4, %v591_v15, %v576_v25  ;;  %v664_v51 = vadd.f32 %v659_v61, %v644_v14  ;;  %v698_v25 = vrot.slane %v691_v16, 2  ;;  %v4415_v61 = vld [vmem:[#allocation6 + $0x1e] ss:$0 sm:$0xff] }
 0x230   : > { %v622_v44 = vmul.f32 %v3109_v30, %v596_v2  ;;  %v672_v59 = vmul.f32 %v3112_v32, %v596_v2  ;;  %v641_v30 = vsel %vm636_vm6, %v638_v50, %v640_v54  ;;  %v661_v47 = vsel %vm636_vm6, %v658_v24, %v660_v49 }
 0x231   : > { %v719_v34 = vrot.slane %v4392_v12, 2  ;;  %v820_v16 = vsel %vm511_vm3, %v4177_v1, %v3939_v7  ;;  %v693_v24 = vmul.f32 %v3113_v60, %v4357_v62 }
 0x232   : > { %v624_v29 = vadd.f32 %v622_v44, %v615_v10  ;;  %v678_v56 = vrot.slane %v672_v59, 1  ;;  %v585_v0 = vpop.permute.xlu1 %584  ;;  %v4403_v10 = vld [vmem:[#allocation6 + $0x1d] ss:$0 sm:$0xff]  ;;  %v3115_v44 = vld [vmem:[#allocation6 + $0x20] ss:$0 sm:$0xff] }
 0x233   : > { %v597_v22 = vsel %vm519_vm5, %v594_v28, %v585_v0  ;;  %v4411_v59 = vld [vmem:[#allocation6 + $0x6] ss:$0 sm:$0xff]  ;;  %v4421_v54 = vmul.f32 %v3115_v44, %v596_v2  ;;  %v4428_v28 = vld [vmem:[#allocation6 + $0x5] ss:$0 sm:$0xff]  ;;  %v1087_v2 = vsel %vm511_vm3, %v4142_v55, %v4177_v1 }
 0x234   : > { %v645_v43 = vadd.f32 %v641_v30, %v624_v29  ;;  %v679_v42 = vsel %vm636_vm6, %v677_v58, %v678_v56  ;;  %v673_v37 = vmul.f32 %v3112_v32, %v597_v22  ;;  %v825_v29 = vsel %vm519_vm5, %v822_v45, %v4013_v18 }
 0x235   : > { %v684_v26 = vadd.f32 %v679_v42, %v664_v51  ;;  %v1092_v32 = vsel %vm519_vm5, %v1089_v21, %v3980_v11  ;;  %v700_v18 = vsel %vm697_vm7, %v698_v25, %v699_v35  ;;  %v714_v11 = vmul.f32 %v4348_v48, %v558_v6 }
 0x236   : > { %v4398_v63 = vpop.permute.xlu0 %778  ;;  %v680_v50 = vrot.slane %v673_v37, 1  ;;  %v777_v14 = vpop.permute.xlu1 %776  ;;  %v665_v45 = vadd.f32 %v661_v47, %v645_v43  ;;  %v4431_v0 = vmul.f32 %v4400_v41, %v825_v29  ;;  %v4434_v12 = vmul.f32 %v4403_v10, %v825_v29 }
 0x237   : > { %v705_v21 = vadd.f32 %v700_v18, %v684_v26  ;;  %v732_v48 = vmul.f32 %v3115_v44, %v4339_v13  ;;  %v4441_v6 = vmul.f32 %v4411_v59, %v1092_v32  ;;  %v4444_v60 = vmul.f32 %v4413_v46, %v1092_v32 }
 0x238   : > { %v681_v15 = vsel %vm636_vm6, %v678_v56, %v680_v50  ;;  %v4447_v56 = vmul.f32 %v4415_v61, %v1092_v32  ;;  %v823_v30 = vsel %vm515_vm4, %v820_v16, %v4098_v38  ;;  %v720_v51 = vsel %vm697_vm7, %v718_v27, %v719_v34 }
 0x239   : > { %v739_v43 = vrot.slane %v4421_v54, 2  ;;  %v685_v42 = vadd.f32 %v681_v15, %v665_v45  ;;  %v881_v13 = vmul.f32 %v4428_v28, %v825_v29  ;;  %v721_v37 = vrot.slane %v714_v11, 2 }
 0x23a   : > { %v4426_v58 = vpop.permute.xlu0 %796  ;;  %v786_v62 = vpop.permute.xlu1 %785  ;;  %v1090_v49 = vsel %vm515_vm4, %v1087_v2, %v3939_v7  ;;  %v701_v26 = vrot.slane %v693_v24, 2  ;;  %v725_v25 = vadd.f32 %v720_v51, %v705_v21  ;;  %v826_v32 = vsel %vm519_vm5, %v823_v30, %v4089_v36  ;;  %v3116_v36 = vld [vmem:[#allocation6 + $0x1] ss:$0 sm:$0xff]  ;;  %v3119_v30 = vld [vmem:[#allocation6 + $0xd] ss:$0 sm:$0xff] }
 0x23b   : > { %v821_v27 = vsel %vm511_vm3, %v4185_v4, %v3942_v8  ;;  %v801_v47 = vsel %vm511_vm3, %v4011_v17, %v4187_v5  ;;  %v738_v29 = vrot.slane %v732_v48, 2  ;;  %v734_v54 = vmul.f32 %v3115_v44, %v597_v22 }
 0x23c   : > { %v804_v18 = vsel %vm515_vm4, %v801_v47, %v4193_v9  ;;  %v702_v45 = vsel %vm697_vm7, %v699_v35, %v701_v26  ;;  %v802_v11 = vsel %vm511_vm3, %v4136_v53, %v777_v14  ;;  %v925_v5 = vrot.slane %v4431_v0, 1 }
 0x23d   : > { %v807_v24 = vsel %vm519_vm5, %v804_v18, %v4205_v19  ;;  %v740_v21 = vsel %vm697_vm7, %v738_v29, %v739_v43  ;;  %v706_v15 = vadd.f32 %v702_v45, %v685_v42  ;;  %v805_v17 = vsel %vm515_vm4, %v802_v11, %v786_v62 }
 0x23e   : > { %v4456_v50 = vpop.permute.xlu0 %835  ;;  %v795_v16 = vpop.permute.xlu1 %794  ;;  %v824_v9 = vsel %vm515_vm4, %v821_v27, %v4082_v33  ;;  %v745_v2 = vadd.f32 %v740_v21, %v725_v25  ;;  %v985_v53 = vrot.slane %v4434_v12, 2  ;;  %v1192_v14 = vrot.slane %v4444_v60, 1 }
 0x23f   : > { %v808_v22 = vsel %vm519_vm5, %v805_v17, %v795_v16  ;;  %v722_v19 = vsel %vm697_vm7, %v719_v34, %v721_v37  ;;  %v4485_v44 = vmul.f32 %v4400_v41, %v826_v32  ;;  %v1093_v0 = vsel %vm519_vm5, %v1090_v49, %v4098_v38 }
 0x240   : > { %v1088_v62 = vsel %vm511_vm3, %v4150_v57, %v4185_v4  ;;  %v872_v51 = vmul.f32 %v3116_v36, %v807_v24  ;;  %v741_v42 = vrot.slane %v734_v54, 2  ;;  %v827_v12 = vsel %vm519_vm5, %v824_v9, %v4104_v40  ;;  %v3118_v54 = vld [vmem:[#allocation6 + $0x9] ss:$0 sm:$0xff]  ;;  %v3122_v9 = vld [vmem:[#allocation6 + $0x19] ss:$0 sm:$0xff] }
 0x241   : > { %v803_v34 = vsel %vm511_vm3, %v4133_v52, %v4398_v63  ;;  %v726_v37 = vadd.f32 %v722_v19, %v706_v15  ;;  %v4497_v26 = vmul.f32 %v3119_v30, %v808_v22  ;;  %v4500_v25 = vmul.f32 %v4403_v10, %v826_v32 }
 0x242   : > { %v4479_v35 = vpop.permute.xlu0 %853  ;;  %v788_v48 = vpop.permute.xlu1 %787  ;;  %v858_v38 = vsel %vm511_vm3, %v4028_v20, %v4215_v23  ;;  %v874_v49 = vadd.f32 %v872_v51, %v745_v2  ;;  %v926_v40 = vrot.slane %v4485_v44, 1  ;;  %v4510_v29 = vmul.f32 %v4413_v46, %v1093_v0 }
 0x243   : > { %v806_v27 = vsel %vm515_vm4, %v803_v34, %v788_v48  ;;  %v899_v52 = vmul.f32 %v3119_v30, %v807_v24  ;;  %v861_v63 = vsel %vm515_vm4, %v858_v38, %v4226_v31  ;;  %v921_v18 = vmul.f32 %v4400_v41, %v827_v12  ;;  %v3121_v48 = vld [vmem:[#allocation6 + $0x15] ss:$0 sm:$0xff] }
 0x244   : > { %v1091_v20 = vsel %vm515_vm4, %v1088_v62, %v3942_v8  ;;  %v864_v23 = vsel %vm519_vm5, %v861_v63, %v4242_v39  ;;  %v742_v45 = vsel %vm697_vm7, %v739_v43, %v741_v42  ;;  %v873_v21 = vmul.f32 %v3116_v36, %v808_v22 }
 0x245   : > { %v746_v11 = vadd.f32 %v742_v45, %v726_v37  ;;  %v906_v15 = vrot.slane %v4497_v26, 1  ;;  %v809_v17 = vsel %vm519_vm5, %v806_v27, %v4426_v58  ;;  %v986_v31 = vrot.slane %v4500_v25, 2 }
 0x246   : > { %v4506_v47 = vpop.permute.xlu0 %1043  ;;  %v834_v16 = vpop.permute.xlu1 %833  ;;  %v4525_v41 = vmul.f32 %v4415_v61, %v1093_v0  ;;  %v883_v2 = vadd.f32 %v881_v13, %v874_v49  ;;  %v882_v39 = vmul.f32 %v4428_v28, %v826_v32  ;;  %v1193_v43 = vrot.slane %v4510_v29, 1  ;;  %v5675_v49 = vld [vmem:[#allocation32_spill] sm:$0xff]  ;;  %v5692_v29 = vld [vmem:[#allocation25_spill] sm:$0xff] }
 0x247   : > { %v4530_v44 = vmul.f32 %v4403_v10, %v827_v12  ;;  %v905_v36 = vrot.slane %v899_v52, 1  ;;  %v4533_v58 = vmul.f32 %v4411_v59, %v1093_v0  ;;  %v928_v51 = vrot.slane %v921_v18, 1 }
 0x248   : > { %v4537_v42 = vsel %vm519_vm5, %v1091_v20, %v4082_v33  ;;  %v890_v13 = vmul.f32 %v3118_v54, %v864_v23  ;;  %v901_v34 = vmul.f32 %v3119_v30, %v809_v17  ;;  %v959_v37 = vmul.f32 %v3122_v9, %v807_v24 }
 0x249   : > { %v875_v28 = vadd.f32 %v873_v21, %v746_v11  ;;  %v907_v32 = vsel %vm636_vm6, %v905_v36, %v906_v15  ;;  %v927_v10 = vsel %vm636_vm6, %v925_v5, %v926_v40  ;;  %v939_v12 = vmul.f32 %v3121_v48, %v864_v23  ;;  %v5676_v21 = vld [vmem:[#allocation35_spill] sm:$0xff]  ;;  %v3124_v36 = vld [vmem:[#allocation6 + $0x21] ss:$0 sm:$0xff] }
 0x24a   : > { %v1053_v19 = vpop.permute.xlu0 %1052  ;;  %v843_v62 = vpop.permute.xlu1 %842  ;;  %v892_v26 = vadd.f32 %v890_v13, %v883_v2  ;;  %v4541_v38 = vmul.f32 %v3122_v9, %v808_v22  ;;  %v859_v59 = vsel %vm511_vm3, %v5675_v49, %v834_v16  ;;  %v988_v27 = vrot.slane %v4530_v44, 2 }
 0x24b   : > { %v4548_v33 = vmul.f32 %v4413_v46, %v4537_v42  ;;  %v862_v24 = vsel %vm515_vm4, %v859_v59, %v843_v62  ;;  %v987_v5 = vsel %vm697_vm7, %v985_v53, %v986_v31  ;;  %v908_v22 = vrot.slane %v901_v34, 1  ;;  %v5677_v46 = vld [vmem:[#allocation24_spill] sm:$0xff]  ;;  %v5678_v53 = vld [vmem:[#allocation30_spill] sm:$0xff] }
 0x24c   : > { %v912_v52 = vadd.f32 %v907_v32, %v892_v26  ;;  %v929_v63 = vsel %vm636_vm6, %v926_v40, %v928_v51  ;;  %v965_v18 = vrot.slane %v959_v37, 2  ;;  %v884_v20 = vadd.f32 %v882_v39, %v875_v28  ;;  %v5679_v39 = vld [vmem:[#allocation37_spill] sm:$0xff] }
 0x24d   : > { %v1068_v2 = vsel %vm511_vm3, %v5677_v46, %v5676_v21  ;;  %v945_v62 = vrot.slane %v939_v12, 1  ;;  %v966_v13 = vrot.slane %v4541_v38, 2  ;;  %v860_v34 = vsel %vm511_vm3, %v5678_v53, %v4456_v50 }
 0x24e   : > { %v1062_v0 = vpop.permute.xlu0 %1061  ;;  %v852_v30 = vpop.permute.xlu1 %851  ;;  %v961_v40 = vmul.f32 %v3122_v9, %v809_v17  ;;  %v1071_v28 = vsel %vm515_vm4, %v1068_v2, %v5679_v39  ;;  %v909_v49 = vsel %vm636_vm6, %v906_v15, %v908_v22  ;;  %v932_v59 = vadd.f32 %v927_v10, %v912_v52  ;;  %v5680_v17 = vld [vmem:[#allocation40_spill] sm:$0xff]  ;;  %v5684_v39 = vld [vmem:[#allocation33_spill] sm:$0xff] }
 0x24f   : > { %v865_v16 = vsel %vm519_vm5, %v862_v24, %v852_v30  ;;  %v999_v38 = vmul.f32 %v3124_v36, %v864_v23  ;;  %v1074_v9 = vsel %vm519_vm5, %v1071_v28, %v5680_v17  ;;  %v3125_v10 = vld [vmem:[#allocation6 + $0x2] ss:$0 sm:$0xff]  ;;  %v967_v52 = vsel %vm697_vm7, %v965_v18, %v966_v13  ;;  %v3130_v17 = vld [vmem:[#allocation6 + $0x16] ss:$0 sm:$0xff] }
 0x250   : > { %v891_v45 = vmul.f32 %v3118_v54, %v865_v16  ;;  %v940_v11 = vmul.f32 %v3121_v48, %v865_v16  ;;  %v4563_v37 = vmul.f32 %v3124_v36, %v865_v16  ;;  %v5681_v16 = vld [vmem:[#allocation31_spill] sm:$0xff]  ;;  %v968_v23 = vrot.slane %v961_v40, 2  ;;  %v3128_v40 = vld [vmem:[#allocation6 + $0xe] ss:$0 sm:$0xff] }
 0x251   : > { %v1139_v28 = vmul.f32 %v3125_v10, %v1074_v9 }
 0x252   : > { %v1055_v32 = vpop.permute.xlu0 %1054  ;;  %v893_v51 = vadd.f32 %v891_v45, %v884_v20  ;;  %v946_v26 = vrot.slane %v940_v11, 1  ;;  %v845_v54 = vpop.permute.xlu1 %844  ;;  %v1069_v20 = vsel %vm511_vm3, %v5681_v16, %v4506_v47  ;;  %v1006_v21 = vrot.slane %v4563_v37, 2  ;;  %v5683_v47 = vld [vmem:[#allocation26_spill] sm:$0xff] }
 0x253   : > { %v863_v12 = vsel %vm515_vm4, %v860_v34, %v845_v54  ;;  %v1072_v22 = vsel %vm515_vm4, %v1069_v20, %v1053_v19  ;;  %v1005_v34 = vrot.slane %v999_v38, 2  ;;  %v5685_v19 = vld [vmem:[#allocation45_spill] sm:$0xff]  ;;  %v969_v16 = vsel %vm697_vm7, %v966_v13, %v968_v23 }
 0x254   : > { %v913_v24 = vadd.f32 %v909_v49, %v893_v51  ;;  %v947_v30 = vsel %vm636_vm6, %v945_v62, %v946_v26  ;;  %v866_v50 = vsel %vm519_vm5, %v863_v12, %v4479_v35  ;;  %v1075_v2 = vsel %vm519_vm5, %v1072_v22, %v1062_v0  ;;  %v5682_v51 = vld [vmem:[#allocation42_spill] sm:$0xff]  ;;  %v3127_v12 = vld [vmem:[#allocation6 + $0xa] ss:$0 sm:$0xff] }
 0x255   : > { %v952_v45 = vadd.f32 %v947_v30, %v932_v59  ;;  %v941_v11 = vmul.f32 %v3121_v48, %v866_v50  ;;  %v1001_v53 = vmul.f32 %v3124_v36, %v866_v50  ;;  %v1125_v48 = vsel %vm511_vm3, %v5683_v47, %v5682_v51  ;;  %v5686_v36 = vld [vmem:[#allocation48_spill] sm:$0xff] }
 0x256   : > { %v1101_v15 = vpop.permute.xlu0 %1100  ;;  %v1046_v46 = vpop.permute.xlu1 %1045  ;;  %v933_v54 = vadd.f32 %v929_v63, %v913_v24  ;;  %v1128_v37 = vsel %vm515_vm4, %v1125_v48, %v5685_v19  ;;  %v1007_v30 = vsel %vm697_vm7, %v1005_v34, %v1006_v21  ;;  %v1167_v63 = vmul.f32 %v3128_v40, %v1075_v2 }
 0x257   : > { %v972_v35 = vadd.f32 %v967_v52, %v952_v45  ;;  %v948_v62 = vrot.slane %v941_v11, 1  ;;  %v1070_v18 = vsel %vm511_vm3, %v5684_v39, %v1046_v46  ;;  %v4591_v38 = vsel %vm519_vm5, %v1128_v37, %v5686_v36  ;;  %v5687_v52 = vld [vmem:[#allocation34_spill] sm:$0xff] }
 0x258   : > { %v1008_v45 = vrot.slane %v1001_v53, 2  ;;  %v1166_v11 = vmul.f32 %v3128_v40, %v1074_v9  ;;  %v1126_v22 = vsel %vm511_vm3, %v5687_v52, %v1101_v15  ;;  %v989_v13 = vsel %vm697_vm7, %v986_v31, %v988_v27 }
 0x259   : > { %v992_v49 = vadd.f32 %v987_v5, %v972_v35  ;;  %v949_v59 = vsel %vm636_vm6, %v946_v26, %v948_v62  ;;  %v1073_v5 = vsel %vm515_vm4, %v1070_v18, %v1055_v32  ;;  %v1157_v35 = vmul.f32 %v3127_v12, %v4591_v38  ;;  %v3131_v32 = vld [vmem:[#allocation6 + $0x1a] ss:$0 sm:$0xff] }
 0x25a   : > { %v1110_v0 = vpop.permute.xlu0 %1109  ;;  %v953_v24 = vadd.f32 %v949_v59, %v933_v54  ;;  %v1064_v50 = vpop.permute.xlu1 %1063  ;;  %v1206_v34 = vmul.f32 %v3130_v17, %v4591_v38  ;;  %v1173_v51 = vrot.slane %v1167_v63, 1  ;;  %v1009_v39 = vsel %vm697_vm7, %v1006_v21, %v1008_v45 }
 0x25b   : > { %v1012_v20 = vadd.f32 %v1007_v30, %v992_v49  ;;  %v1076_v46 = vsel %vm519_vm5, %v1073_v5, %v1064_v50  ;;  %v1129_v23 = vsel %vm515_vm4, %v1126_v22, %v1110_v0  ;;  %v1172_v25 = vrot.slane %v1166_v11, 1  ;;  %v5688_v49 = vld [vmem:[#allocation36_spill] sm:$0xff] }
 0x25c   : > { %v973_v26 = vadd.f32 %v969_v16, %v953_v24  ;;  %v1168_v44 = vmul.f32 %v3128_v40, %v1076_v46  ;;  %v1227_v31 = vmul.f32 %v3131_v32, %v1075_v2  ;;  %v1226_v19 = vmul.f32 %v3131_v32, %v1074_v9  ;;  %v3133_v5 = vld [vmem:[#allocation6 + $0x22] ss:$0 sm:$0xff] }
 0x25d   : > { %v1141_v62 = vadd.f32 %v1139_v28, %v1012_v20  ;;  %v1140_v28 = vmul.f32 %v3125_v10, %v1075_v2  ;;  %v1194_v0 = vsel %vm636_vm6, %v1192_v14, %v1193_v43  ;;  %v1174_v21 = vsel %vm636_vm6, %v1172_v25, %v1173_v51 }
 0x25e   : > { %v1119_v53 = vpop.permute.xlu0 %1118  ;;  %v993_v47 = vadd.f32 %v989_v13, %v973_v26  ;;  %v1103_v15 = vpop.permute.xlu1 %1102  ;;  %v1212_v2 = vrot.slane %v1206_v34, 1  ;;  %v1175_v63 = vrot.slane %v1168_v44, 1  ;;  %v1233_v50 = vrot.slane %v1227_v31, 2 }
 0x25f   : > { %v1132_v48 = vsel %vm519_vm5, %v1129_v23, %v1119_v53  ;;  %v1150_v54 = vadd.f32 %v4441_v6, %v1141_v62  ;;  %v1127_v59 = vsel %vm511_vm3, %v5688_v49, %v1103_v15  ;;  %v1253_v14 = vrot.slane %v4525_v41, 2  ;;  %v5694_v49 = vld [vmem:[#allocation47_spill] sm:$0xff] }
 0x260   : > { %v1207_v18 = vmul.f32 %v3130_v17, %v1132_v48  ;;  %v1013_v27 = vadd.f32 %v1009_v39, %v993_v47  ;;  %v1158_v20 = vmul.f32 %v3127_v12, %v1132_v48  ;;  %v1195_v45 = vrot.slane %v4548_v33, 1 }
 0x261   : > { %v1159_v37 = vadd.f32 %v1157_v35, %v1150_v54  ;;  %v1232_v26 = vrot.slane %v1226_v19, 2  ;;  %v4624_v35 = vmul.f32 %v3133_v5, %v1132_v48  ;;  %v1176_v13 = vsel %vm636_vm6, %v1173_v51, %v1175_v63  ;;  %v5690_v54 = vld [vmem:[#allocation49_spill] sm:$0xff]  ;;  %v5697_v63 = vld [vmem:[#allocation38_spill] sm:$0xff] }
 0x262   : > { %v1112_v6 = vpop.permute.xlu0 %1111  ;;  %v1142_v40 = vadd.f32 %v1140_v28, %v1013_v27  ;;  %v1213_v36 = vrot.slane %v1207_v18, 1  ;;  %v1121_v30 = vpop.permute.xlu1 %1120  ;;  %v1228_v23 = vmul.f32 %v3131_v32, %v1076_v46  ;;  %v1252_v12 = vrot.slane %v4447_v56, 2  ;;  %v5689_v56 = vld [vmem:[#allocation29_spill] sm:$0xff]  ;;  %v5693_v27 = vld [vmem:[#allocation44_spill] sm:$0xff] }
 0x263   : > { %v1130_v10 = vsel %vm515_vm4, %v1127_v59, %v1112_v6  ;;  %v1179_v9 = vadd.f32 %v1174_v21, %v1159_v37  ;;  %v1266_v41 = vmul.f32 %v3133_v5, %v4591_v38  ;;  %v1234_v33 = vsel %vm697_vm7, %v1232_v26, %v1233_v50  ;;  %v3134_v37 = vld [vmem:[#allocation6 + $0x3] ss:$0 sm:$0xff]  ;;  %v5696_v21 = vld [vmem:[#allocation50_spill] sm:$0xff] }
 0x264   : > { %v1133_v24 = vsel %vm519_vm5, %v1130_v10, %v1121_v30  ;;  %v1151_v16 = vadd.f32 %v4533_v58, %v1142_v40  ;;  %v1214_v22 = vsel %vm636_vm6, %v1212_v2, %v1213_v36  ;;  %v1248_v34 = vmul.f32 %v4415_v61, %v4537_v42  ;;  %v5691_v42 = vld [vmem:[#allocation41_spill] sm:$0xff] }
 0x265   : > { %v1208_v60 = vmul.f32 %v3130_v17, %v1133_v24  ;;  %v1199_v11 = vadd.f32 %v1194_v0, %v1179_v9  ;;  %v1196_v47 = vsel %vm636_vm6, %v1193_v43, %v1195_v45  ;;  %v1254_v51 = vsel %vm697_vm7, %v1252_v12, %v1253_v14  ;;  %v5695_v0 = vld [vmem:[#allocation28_spill] sm:$0xff] }
 0x266   : > { %v1160_v52 = vadd.f32 %v1158_v20, %v1151_v16  ;;  %v1311_v62 = vpop.permute.xlu1 %1310  ;;  %v1273_v32 = vrot.slane %v4624_v35, 2  ;;  %v1353_v38 = vsel %vm511_vm3, %v5690_v54, %v5689_v56  ;;  %v1235_v39 = vrot.slane %v1228_v23, 2  ;;  %v1384_v61 = vpop.permute.xlu0 %1383  ;;  %v3137_v35 = vld [vmem:[#allocation6 + $0xf] ss:$0 sm:$0xff]  ;;  %v3140_v56 = vld [vmem:[#allocation6 + $0x1b] ss:$0 sm:$0xff] }
 0x267   : > { %v1219_v53 = vadd.f32 %v1214_v22, %v1199_v11  ;;  %v1215_v58 = vrot.slane %v1208_v60, 1  ;;  %v1335_v43 = vsel %vm511_vm3, %v5692_v29, %v5691_v42  ;;  %v1272_v25 = vrot.slane %v1266_v41, 2  ;;  %v5701_v41 = vld [vmem:[#allocation39_spill] sm:$0xff]  ;;  %v3138_v54 = vld [vmem:[#allocation6 + $0x13] ss:$0 sm:$0xff] }
 0x268   : > { %v1180_v17 = vadd.f32 %v1176_v13, %v1160_v52  ;;  %v1255_v31 = vrot.slane %v1248_v34, 2  ;;  %v1338_v19 = vsel %vm515_vm4, %v1335_v43, %v5693_v27  ;;  %v1356_v6 = vsel %vm515_vm4, %v1353_v38, %v5695_v0  ;;  %v3135_v52 = vld [vmem:[#allocation6 + $0x7] ss:$0 sm:$0xff]  ;;  %v3139_v27 = vld [vmem:[#allocation6 + $0x17] ss:$0 sm:$0xff] }
 0x269   : > { %v1239_v15 = vadd.f32 %v1234_v33, %v1219_v53  ;;  %v1216_v18 = vsel %vm636_vm6, %v1213_v36, %v1215_v58  ;;  %v1341_v59 = vsel %vm519_vm5, %v1338_v19, %v5694_v49  ;;  %v1354_v40 = vsel %vm511_vm3, %v5696_v21, %v4142_v55  ;;  %v5700_v58 = vld [vmem:[#allocation52_spill] sm:$0xff]  ;;  %v3141_v49 = vld [vmem:[#allocation6 + $0x1f] ss:$0 sm:$0xff] }
 0x26a   : > { %v1200_v46 = vadd.f32 %v1196_v47, %v1180_v17  ;;  %v1320_v48 = vpop.permute.xlu1 %1319  ;;  %v1274_v36 = vsel %vm697_vm7, %v1272_v25, %v1273_v32  ;;  %v1236_v10 = vsel %vm697_vm7, %v1233_v50, %v1235_v39  ;;  %v1268_v9 = vmul.f32 %v3133_v5, %v1133_v24  ;;  %v1313_v11 = vpop.permute.xlu0 %1312  ;;  %v5698_v24 = vld [vmem:[#allocation51_spill] sm:$0xff]  ;;  %v5702_v47 = vld [vmem:[#allocation53_spill] sm:$0xff] }
 0x26b   : > { %v1259_v44 = vadd.f32 %v1254_v51, %v1239_v15  ;;  %v1336_v16 = vsel %vm511_vm3, %v5697_v63, %v1311_v62  ;;  %v1406_v45 = vmul.f32 %v3134_v37, %v1341_v59  ;;  %v1359_v55 = vsel %vm519_vm5, %v1356_v6, %v3910_v3  ;;  %v5699_v5 = vld [vmem:[#allocation27_spill] sm:$0xff] }
 0x26c   : > { %v1220_v28 = vadd.f32 %v1216_v18, %v1200_v46  ;;  %v1339_v20 = vsel %vm515_vm4, %v1336_v16, %v1320_v48  ;;  %v1357_v22 = vsel %vm515_vm4, %v1354_v40, %v4177_v1  ;;  %v1392_v62 = vsel %vm511_vm3, %v5699_v5, %v5698_v24  ;;  %v3136_v46 = vld [vmem:[#allocation6 + $0xb] ss:$0 sm:$0xff] }
 0x26d   : > { %v1279_v2 = vadd.f32 %v1274_v36, %v1259_v44  ;;  %v1275_v13 = vrot.slane %v1268_v9, 2  ;;  %v1256_v53 = vsel %vm697_vm7, %v1253_v14, %v1255_v31  ;;  %v1355_v12 = vsel %vm511_vm3, %v5700_v58, %v4150_v57  ;;  %v5703_v9 = vld [vmem:[#allocation46_spill] sm:$0xff]  ;;  %v3142_v58 = vld [vmem:[#allocation6 + $0x23] ss:$0 sm:$0xff] }
 0x26e   : > { %v1329_v30 = vpop.permute.xlu1 %1328  ;;  %v1240_v60 = vadd.f32 %v1236_v10, %v1220_v28  ;;  %v1337_v3 = vsel %vm511_vm3, %v5701_v41, %v1313_v11  ;;  %v1415_v1 = vmul.f32 %v3135_v52, %v1359_v55  ;;  %v1360_v34 = vsel %vm519_vm5, %v1357_v22, %v3939_v7  ;;  %v1331_v7 = vpop.permute.xlu0 %1330 }
 0x26f   : > { %v1342_v26 = vsel %vm519_vm5, %v1339_v20, %v1329_v30  ;;  %v1408_v23 = vadd.f32 %v1406_v45, %v1279_v2  ;;  %v1395_v15 = vsel %vm515_vm4, %v1392_v62, %v5702_v47  ;;  %v1433_v14 = vmul.f32 %v3137_v35, %v1341_v59 }
 0x270   : > { %v1260_v33 = vadd.f32 %v1256_v53, %v1240_v60  ;;  %v4672_v17 = vmul.f32 %v3137_v35, %v1342_v26  ;;  %v4680_v48 = vsel %vm519_vm5, %v1395_v15, %v1384_v61  ;;  %v1358_v38 = vsel %vm515_vm4, %v1355_v12, %v4185_v4 }
 0x271   : > { %v1417_v39 = vadd.f32 %v1415_v1, %v1408_v23  ;;  %v1276_v44 = vsel %vm697_vm7, %v1273_v32, %v1275_v13  ;;  %v4685_v18 = vmul.f32 %v3138_v54, %v1360_v34  ;;  %v1424_v61 = vmul.f32 %v3136_v46, %v4680_v48 }
 0x272   : > { %v1322_v50 = vpop.permute.xlu1 %1321  ;;  %v1280_v42 = vadd.f32 %v1276_v44, %v1260_v33  ;;  %v1440_v29 = vrot.slane %v4672_v17, 1  ;;  %v1439_v25 = vrot.slane %v1433_v14, 1  ;;  %v1493_v28 = vmul.f32 %v3140_v56, %v1341_v59  ;;  %v1370_v59 = vpop.permute.xlu0 %1369 }
 0x273   : > { %v1340_v51 = vsel %vm515_vm4, %v1337_v3, %v1322_v50  ;;  %v1361_v31 = vsel %vm519_vm5, %v1358_v38, %v3942_v8  ;;  %v1407_v4 = vmul.f32 %v3134_v37, %v1342_v26  ;;  %v1453_v32 = vmul.f32 %v3138_v54, %v1359_v55 }
 0x274   : > { %v1343_v43 = vsel %vm519_vm5, %v1340_v51, %v1331_v7  ;;  %v1426_v0 = vadd.f32 %v1424_v61, %v1417_v39  ;;  %v1460_v21 = vrot.slane %v4685_v18, 1  ;;  %v1441_v36 = vsel %vm636_vm6, %v1439_v25, %v1440_v29 }
 0x275   : > { %v1435_v6 = vmul.f32 %v3137_v35, %v1343_v43  ;;  %v1409_v40 = vadd.f32 %v1407_v4, %v1280_v42  ;;  %v1455_v30 = vmul.f32 %v3138_v54, %v1361_v31  ;;  %v1473_v10 = vmul.f32 %v3139_v27, %v4680_v48 }
 0x276   : > { %v1368_v57 = vpop.permute.xlu1 %1367  ;;  %v1494_v2 = vmul.f32 %v3140_v56, %v1342_v26  ;;  %v1499_v63 = vrot.slane %v1493_v28, 2  ;;  %v1513_v37 = vmul.f32 %v3141_v49, %v1359_v55  ;;  %v1416_v16 = vmul.f32 %v3135_v52, %v1360_v34  ;;  %v5704_v52 = vld [vmem:[#allocation43_spill] sm:$0xff]  ;;  %v1388_v17 = vpop.permute.xlu0 %1387 }
 0x277   : > { %v1393_v8 = vsel %vm511_vm3, %v5703_v9, %v1368_v57  ;;  %v1459_v45 = vrot.slane %v1453_v32, 1  ;;  %v1446_v11 = vadd.f32 %v1441_v36, %v1426_v0  ;;  %v1442_v22 = vrot.slane %v1435_v6, 1 }
 0x278   : > { %v1514_v35 = vmul.f32 %v3141_v49, %v1360_v34  ;;  %v1418_v24 = vadd.f32 %v1416_v16, %v1409_v40  ;;  %v1462_v26 = vrot.slane %v1455_v30, 1  ;;  %v1479_v13 = vrot.slane %v1473_v10, 1 }
 0x279   : > { %v1500_v23 = vrot.slane %v1494_v2, 2  ;;  %v1461_v53 = vsel %vm636_vm6, %v1459_v45, %v1460_v21  ;;  %v1495_v55 = vmul.f32 %v3140_v56, %v1343_v43  ;;  %v1394_v12 = vsel %vm511_vm3, %v5704_v52, %v1370_v59 }
 0x27a   : > { %v1377_v19 = vpop.permute.xlu1 %1376  ;;  %v1443_v1 = vsel %vm636_vm6, %v1440_v29, %v1442_v22  ;;  %v1466_v34 = vadd.f32 %v1461_v53, %v1446_v11  ;;  %v1520_v51 = vrot.slane %v1514_v35, 2  ;;  %v1515_v56 = vmul.f32 %v3141_v49, %v1361_v31 }
 0x27b   : > { %v1396_v20 = vsel %vm515_vm4, %v1393_v8, %v1377_v19  ;;  %v1533_v54 = vmul.f32 %v3142_v58, %v4680_v48  ;;  %v1519_v44 = vrot.slane %v1513_v37, 2  ;;  %v1501_v7 = vsel %vm697_vm7, %v1499_v63, %v1500_v23 }
 0x27c   : > { %v1502_v18 = vrot.slane %v1495_v55, 2  ;;  %v1463_v42 = vsel %vm636_vm6, %v1460_v21, %v1462_v26  ;;  %v1522_v19 = vrot.slane %v1515_v56, 2 }
 0x27d   : > { %v1521_v4 = vsel %vm697_vm7, %v1519_v44, %v1520_v51  ;;  %v1539_v32 = vrot.slane %v1533_v54, 2 }
 0x27e   : > { %v1386_v60 = vpop.permute.xlu1 %1385  ;;  %v1523_v36 = vsel %vm697_vm7, %v1520_v51, %v1522_v19 }
 0x27f   : > { %v1399_v50 = vsel %vm519_vm5, %v1396_v20, %v1386_v60 }
 0x280   : > { %v1425_v5 = vmul.f32 %v3136_v46, %v1399_v50  ;;  %v1474_v62 = vmul.f32 %v3139_v27, %v1399_v50  ;;  %v1534_v47 = vmul.f32 %v3142_v58, %v1399_v50 }
 0x282   : > { %v1427_v41 = vadd.f32 %v1425_v5, %v1418_v24  ;;  %v1480_v3 = vrot.slane %v1474_v62, 1  ;;  %v1379_v33 = vpop.permute.xlu1 %1378  ;;  %v1540_v43 = vrot.slane %v1534_v47, 2 }
 0x283   : > { %v1397_v15 = vsel %vm515_vm4, %v1394_v12, %v1379_v33 }
 0x284   : > { %v1447_v14 = vadd.f32 %v1443_v1, %v1427_v41  ;;  %v1481_v46 = vsel %vm636_vm6, %v1479_v13, %v1480_v3  ;;  %v1400_v57 = vsel %vm519_vm5, %v1397_v15, %v1388_v17  ;;  %v1541_v0 = vsel %vm697_vm7, %v1539_v32, %v1540_v43 }
 0x285   : > { %v1486_v38 = vadd.f32 %v1481_v46, %v1466_v34  ;;  %v1475_v39 = vmul.f32 %v3139_v27, %v1400_v57  ;;  %v1535_v25 = vmul.f32 %v3142_v58, %v1400_v57  ;;  %v1503_v27 = vsel %vm697_vm7, %v1500_v23, %v1502_v18 }
 0x286   : > { %v1467_v28 = vadd.f32 %v1463_v42, %v1447_v14 }
 0x287   : > { %v1506_v29 = vadd.f32 %v1501_v7, %v1486_v38  ;;  %v1482_v61 = vrot.slane %v1475_v39, 1  ;;  %v1542_v6 = vrot.slane %v1535_v25, 2 }
 0x289   : > { %v1526_v31 = vadd.f32 %v1521_v4, %v1506_v29  ;;  %v1483_v48 = vsel %vm636_vm6, %v1480_v3, %v1482_v61  ;;  %v1543_v10 = vsel %vm697_vm7, %v1540_v43, %v1542_v6 }
 0x28a   : > { %v1487_v49 = vadd.f32 %v1483_v48, %v1467_v28 }
 0x28b   : > { %v4713_v40 = vadd.f32 %v1541_v0, %v1526_v31 }
 0x28c   : > { %v1507_v21 = vadd.f32 %v1503_v27, %v1487_v49 }
 0x28d   : > { %v1558_v2 = vmul.f32 %v4713_v40, %v4713_v40  ;;  %v1549_v8 = vsel %vm1548_vm8, %v4713_v40, 0.0 }
 0x28e   : > { %v1527_v30 = vadd.f32 %v1523_v36, %v1507_v21 }
 0x28f   : > { %v1560_v16 = vsel %vm1548_vm8, %v1558_v2, 0.0  ;;  %v1609_v2 = vstv %s3143_s23  ;;  %s5714_s23 = smov 81  }
 0x290   : > { %v4719_v59 = vadd.f32 %v1543_v10, %v1527_v30 }
 0x292   : > { %v1559_v9 = vmul.f32 %v4719_v59, %v4719_v59  ;;  %v1550_v63 = vsel %vm1548_vm8, %v4719_v59, 0.0 }
 0x293   : > { %v1551_v37 = vadd.f32 %v1550_v63, %v1549_v8  ;;  %v1582_v63 = vstv %s1579_s28  ;;  %s5715_s28 = smov 80  }
 0x294   : > { %v1561_v20 = vsel %vm1548_vm8, %v1559_v9, 0.0 }
 0x295   : > { %v1552_v60 = vrot.slane %v1551_v37, 4  ;;  %v1562_v45 = vadd.f32 %v1561_v20, %v1560_v16 }
 0x297   : > { %v1553_v11 = vadd.f32 %v1552_v60, %v1551_v37  ;;  %v1563_v22 = vrot.slane %v1562_v45, 4  ;;  %v1671_v37 = vlaneseq }
 0x299   : > { %v1554_v50 = vrot.slane %v1553_v11, 2  ;;  %v1564_v24 = vadd.f32 %v1563_v22, %v1562_v45 }
 0x29b   : > { %v1555_v35 = vadd.f32 %v1554_v50, %v1553_v11  ;;  %v1565_v26 = vrot.slane %v1564_v24, 2  ;;  %v1672_v11 = vshrl.u32 %v1671_v37, 7 }
 0x29d   : > { %v1556_v5 = vrot.slane %v1555_v35, 1  ;;  %v1566_v23 = vadd.f32 %v1565_v26, %v1564_v24 }
 0x29f   : > { %v1557_v62 = vadd.f32 %v1556_v5, %v1555_v35  ;;  %v1567_v53 = vrot.slane %v1566_v23, 1  ;;  %v1613_v35 = vstv %s3144_s17  ;;  %s5709_s17 = smov 113  }
 0x2a1   : > { %1589 = vrot.lane.b32.xlu0 %v1557_v62, %s5594_s29  ;;  %v1569_v13 = vsel %vm511_vm3, %v1557_v62, 0.0  ;;  %v1568_v58 = vadd.f32 %v1567_v53, %v1566_v23  ;;  %v1586_v23 = vstv %s1584_s27  ;;  %v4743_v53 = vsub.s32 0, %v1672_v11  ;;  %s5712_s27 = smov 97  }
 0x2a2   : > { %1570 = vadd.xlane.f32.xlu1 %v1569_v13 }
 0x2a3   : > { %v1572_v55 = vsel %vm511_vm3, %v1568_v58, 0.0  ;;  %5705 = vst [vmem:[#allocation32_spill] sm:$0xff] %v4743_v53 }
 0x2a5   : > { %1615 = vrot.lane.b32.xlu0 %v1557_v62, %s5644_s14 }
 0x2a9   : > { %1640 = vrot.lane.b32.xlu0 %v1557_v62, %s5590_s1  ;;  %v1638_v62 = vstv %s3146_s21  ;;  %s5713_s21 = smov 79  }
 0x2ad   : > { %1596 = vrot.lane.b32.xlu0 %v1568_v58, %s5594_s29  ;;  %s3147_s29 = sld [smem:[#allocation8 + $0x3]] }
 0x2b1   : > { %1621 = vrot.lane.b32.xlu0 %v1568_v58, %s5644_s14 }
 0x2b3   : > { %v1659_v24 = vstv %s3147_s29  ;;  %s5711_s29 = smov 95  }
 0x2b5   : > { %1646 = vrot.lane.b32.xlu0 %v1568_v58, %s5590_s1  ;;  %s3145_s1 = sld [smem:[#allocation8 + $0x2]] }
 0x2bb   : > { %v1634_v20 = vstv %s3145_s1  ;;  %s5706_s1 = smov 32  }
 0x2d4   : > { %1573 = vadd.xlane.f32.xlu0 %v1572_v55 }
 0x313   : > { %v1590_v52 = vpop.permute.xlu0 %1589 }
 0x314   : > { %v1592_v12 = vsel %vm511_vm3, %v1590_v52, 0.0 }
 0x315   : > { %1593 = vadd.xlane.f32.xlu1 %v1592_v12 }
 0x317   : > { %v1616_v41 = vpop.permute.xlu0 %1615 }
 0x318   : > { %v1618_v3 = vsel %vm511_vm3, %v1616_v41, 0.0 }
 0x319   : > { %1619 = vadd.xlane.f32.xlu1 %v1618_v3  ;;  %v1663_v3 = vstv %s3148_s16  ;;  %s5707_s16 = smov 48  }
 0x31b   : > { %v1641_v33 = vpop.permute.xlu0 %1640 }
 0x31c   : > { %v1643_v17 = vsel %vm511_vm3, %v1641_v33, 0.0 }
 0x31d   : > { %1644 = vadd.xlane.f32.xlu1 %v1643_v17 }
 0x31f   : > { %v1597_v1 = vpop.permute.xlu0 %1596 }
 0x320   : > { %v1599_v34 = vsel %vm511_vm3, %v1597_v1, 0.0 }
 0x321   : > { %1600 = vadd.xlane.f32.xlu1 %v1599_v34 }
 0x323   : > { %v1622_v47 = vpop.permute.xlu0 %1621 }
 0x324   : > { %v1624_v15 = vsel %vm511_vm3, %v1622_v47, 0.0 }
 0x325   : > { %1625 = vadd.xlane.f32.xlu1 %v1624_v15 }
 0x327   : > { %v1647_v51 = vpop.permute.xlu0 %1646 }
 0x328   : > { %v1649_v14 = vsel %vm511_vm3, %v1647_v51, 0.0 }
 0x329   : > { %1650 = vadd.xlane.f32.xlu1 %v1649_v14 }
 0x32f   : > { %v1571_v46 = vpop.xlane.xlu1 %1570 }
 0x330   : > { %v1575_v54 = vmul.f32 0.00390625, %v1571_v46 }
 0x332   : > { %v1577_v44 = vmul.f32 %v1575_v54, %v1575_v54 }
 0x361   : > { %v1574_v56 = vpop.xlane.xlu0 %1573 }
 0x362   : > { %v1576_v39 = vmul.f32 0.00390625, %v1574_v56 }
 0x364   : > { %v1578_v42 = vsub.f32 %v1576_v39, %v1577_v44 }
 0x366   : > { %v1580_v28 = vadd.f32 1e-05, %v1578_v42 }
 0x368   : > { %3320 = vrsqrt.f32 %v1580_v28 }
 0x372   : > { %v3321_v9 = vpop.eup %3320 }
 0x373   : > { %v1583_v60 = vmul.f32 %v3321_v9, %v1582_v63 }
 0x375   : > { %v1585_v5 = vmul.f32 %v1583_v60, %v1575_v54 }
 0x377   : > { %v1587_v33 = vsub.f32 %v1586_v23, %v1585_v5 }
 0x3a2   : > { %v1594_v57 = vpop.xlane.xlu1 %1593 }
 0x3a3   : > { %v1602_v18 = vmul.f32 0.00390625, %v1594_v57 }
 0x3a5   : > { %v1604_v43 = vmul.f32 %v1602_v18, %v1602_v18 }
 0x3a6   : > { %v1620_v38 = vpop.xlane.xlu1 %1619 }
 0x3a7   : > { %v1627_v61 = vmul.f32 0.00390625, %v1620_v38 }
 0x3a9   : > { %v1629_v32 = vmul.f32 %v1627_v61, %v1627_v61 }
 0x3aa   : > { %v1645_v7 = vpop.xlane.xlu1 %1644 }
 0x3ab   : > { %v1652_v31 = vmul.f32 0.00390625, %v1645_v7 }
 0x3ad   : > { %v1654_v6 = vmul.f32 %v1652_v31, %v1652_v31 }
 0x3ae   : > { %v1601_v29 = vpop.xlane.xlu1 %1600 }
 0x3af   : > { %v1603_v25 = vmul.f32 0.00390625, %v1601_v29 }
 0x3b1   : > { %v1605_v4 = vsub.f32 %v1603_v25, %v1604_v43 }
 0x3b2   : > { %v1626_v19 = vpop.xlane.xlu1 %1625 }
 0x3b3   : > { %v1607_v48 = vadd.f32 1e-05, %v1605_v4  ;;  %v1628_v49 = vmul.f32 0.00390625, %v1626_v19 }
 0x3b5   : > { %3322 = vrsqrt.f32 %v1607_v48  ;;  %v1630_v27 = vsub.f32 %v1628_v49, %v1629_v32 }
 0x3b6   : > { %v1651_v0 = vpop.xlane.xlu1 %1650 }
 0x3b7   : > { %v1632_v21 = vadd.f32 1e-05, %v1630_v27  ;;  %v1653_v36 = vmul.f32 0.00390625, %v1651_v0 }
 0x3b9   : > { %3324 = vrsqrt.f32 %v1632_v21  ;;  %v1655_v30 = vsub.f32 %v1653_v36, %v1654_v6 }
 0x3bb   : > { %v1657_v10 = vadd.f32 1e-05, %v1655_v30 }
 0x3bd   : > { %3326 = vrsqrt.f32 %v1657_v10 }
 0x3bf   : > { %v3323_v8 = vpop.eup %3322 }
 0x3c0   : > { %v1610_v16 = vmul.f32 %v3323_v8, %v1609_v2 }
 0x3c2   : > { %v1612_v22 = vmul.f32 %v1610_v16, %v1602_v18  ;;  %v1665_v55 = vsel %vm511_vm3, %v1583_v60, %v1610_v16 }
 0x3c3   : > { %v3325_v45 = vpop.eup %3324 }
 0x3c4   : > { %v1635_v50 = vmul.f32 %v3325_v45, %v1634_v20  ;;  %v1614_v58 = vsub.f32 %v1613_v35, %v1612_v22 }
 0x3c6   : > { %v1637_v26 = vmul.f32 %v1635_v50, %v1627_v61  ;;  %v1666_v41 = vsel %vm515_vm4, %v1665_v55, %v1635_v50  ;;  %v1668_v47 = vsel %vm511_vm3, %v1587_v33, %v1614_v58 }
 0x3c7   : > { %v3327_v13 = vpop.eup %3326 }
 0x3c8   : > { %v1660_v52 = vmul.f32 %v3327_v13, %v1659_v24  ;;  %v1639_v12 = vsub.f32 %v1638_v62, %v1637_v26 }
 0x3ca   : > { %v1662_v17 = vmul.f32 %v1660_v52, %v1652_v31  ;;  %v1667_v1 = vsel %vm519_vm5, %v1666_v41, %v1660_v52  ;;  %v1669_v51 = vsel %vm515_vm4, %v1668_v47, %v1639_v12 }
 0x3cb   : > { %v1674_v34 = vrot.slane %v1667_v1, %v4743_v53 }
 0x3cc   : > { %v1664_v15 = vsub.f32 %v1663_v3, %v1662_v17 }
 0x3cd   : > { %v1675_v46 = vmul.f32 %v1674_v34, %v4713_v40  ;;  %v1676_v57 = vmul.f32 %v1674_v34, %v4719_v59 }
 0x3ce   : > { %v1670_v14 = vsel %vm519_vm5, %v1669_v51, %v1664_v15 }
 0x3cf   : > { %v1680_v56 = vrot.slane %v1670_v14, %v4743_v53 }
 0x3d1   : > { %v1681_v54 = vadd.f32 %v1680_v56, %v1675_v46  ;;  %v1682_v38 = vadd.f32 %v1680_v56, %v1676_v57 }
 0x3d3   : > { %v1683_v39 = vmax.f32 %v1681_v54, 0.0  ;;  %v1684_v44 = vmax.f32 %v1682_v38, 0.0 }
 0x3d5   : > { %v1693_v7 = vrot.slane %v1683_v39, 1  ;;  %v1696_v18 = vrot.slane %v1683_v39, 7  ;;  %v1697_v42 = vrot.slane %v1684_v44, 7  ;;  %v1702_v43 = vrot.slane %v1684_v44, 5  ;;  %v3181_v44 = vld [vmem:[#allocation11 + $0x13] ss:$0 sm:$0xff] }
 0x3d7   : > { %v4756_v29 = vsel %vm442_vm0, %v1696_v18, %v1697_v42  ;;  %v4759_v61 = vsel %vm442_vm0, %v1693_v7, %v1696_v18  ;;  %v4766_v40 = vsel %vm442_vm0, %v1697_v42, %v1702_v43  ;;  %v3184_v18 = vld [vmem:[#allocation11 + $0x1f] ss:$0 sm:$0xff] }
 0x3d8   : > { %1710 = vrot.lane.b32.xlu1 %v4756_v29, %s3586_s19  ;;  %1708 = vrot.lane.b32.xlu0 %v4759_v61, %s3586_s19 }
 0x3dc   : > { %1712 = vrot.lane.b32.xlu1 %v4766_v40, %s3586_s19  ;;  %1717 = vrot.lane.b32.xlu0 %v4759_v61, %s3588_s20  ;;  %s5708_s19 = smov 111  }
 0x3e0   : > { %1719 = vrot.lane.b32.xlu1 %v4756_v29, %s3588_s20  ;;  %1721 = vrot.lane.b32.xlu0 %v4766_v40, %s3588_s20  ;;  %s5710_s20 = smov 112  }
 0x3e4   : > { %1773 = vrot.lane.b32.xlu1 %v4756_v29, %s3590_s18  ;;  %1771 = vrot.lane.b32.xlu0 %v4759_v61, %s3590_s18 }
 0x3e8   : > { %1780 = vrot.lane.b32.xlu1 %v4759_v61, %s5706_s1  ;;  %1775 = vrot.lane.b32.xlu0 %v4766_v40, %s3590_s18 }
 0x3ec   : > { %1784 = vrot.lane.b32.xlu1 %v4766_v40, %s5706_s1  ;;  %1782 = vrot.lane.b32.xlu0 %v4756_v29, %s5706_s1 }
 0x3f0   : > { %1791 = vrot.lane.b32.xlu1 %v4756_v29, %s5707_s16  ;;  %1789 = vrot.lane.b32.xlu0 %v4759_v61, %s5707_s16 }
 0x3f4   : > { %1995 = vrot.lane.b32.xlu1 %v4756_v29, %s5708_s19  ;;  %1793 = vrot.lane.b32.xlu0 %v4766_v40, %s5707_s16 }
 0x3f8   : > { %2002 = vrot.lane.b32.xlu1 %v4759_v61, %s5709_s17  ;;  %1993 = vrot.lane.b32.xlu0 %v4759_v61, %s5708_s19 }
 0x3fc   : > { %2006 = vrot.lane.b32.xlu1 %v4766_v40, %s5709_s17  ;;  %1997 = vrot.lane.b32.xlu0 %v4766_v40, %s5708_s19  ;;  %s2824_s19 = sld [smem:[#allocation12]] }
 0x400   : > { %2056 = vrot.lane.b32.xlu1 %v4759_v61, %s5710_s20  ;;  %2004 = vrot.lane.b32.xlu0 %v4756_v29, %s5709_s17  ;;  %s3188_s17 = sld [smem:[#allocation12 + $0x2]] }
 0x404   : > { %2060 = vrot.lane.b32.xlu1 %v4766_v40, %s5710_s20  ;;  %2058 = vrot.lane.b32.xlu0 %v4756_v29, %s5710_s20 }
 0x408   : > { %2260 = vrot.lane.b32.xlu1 %v4759_v61, %s5711_s29  ;;  %2262 = vrot.lane.b32.xlu0 %v4756_v29, %s5711_s29 }
 0x40c   : > { %2264 = vrot.lane.b32.xlu1 %v4766_v40, %s5711_s29  ;;  %2269 = vrot.lane.b32.xlu0 %v4759_v61, %s5712_s27  ;;  %s3190_s29 = sld [smem:[#allocation12 + $0x3]] }
 0x410   : > { %2271 = vrot.lane.b32.xlu1 %v4756_v29, %s5712_s27  ;;  %2273 = vrot.lane.b32.xlu0 %v4766_v40, %s5712_s27  ;;  %s3189_s27 = sld [smem:[#allocation13 + $0x2]] }
 0x414   : > { %2325 = vrot.lane.b32.xlu1 %v4756_v29, %s5644_s14  ;;  %2323 = vrot.lane.b32.xlu0 %v4759_v61, %s5644_s14 }
 0x418   : > { %2529 = vrot.lane.b32.xlu1 %v4756_v29, %s5713_s21  ;;  %2327 = vrot.lane.b32.xlu0 %v4766_v40, %s5644_s14 }
 0x41c   : > { %2538 = vrot.lane.b32.xlu1 %v4756_v29, %s5714_s23  ;;  %2527 = vrot.lane.b32.xlu0 %v4759_v61, %s5713_s21 }
 0x420   : > { %2540 = vrot.lane.b32.xlu1 %v4766_v40, %s5714_s23  ;;  %2536 = vrot.lane.b32.xlu0 %v4759_v61, %s5714_s23  ;;  %s3191_s23 = sld [smem:[#allocation13 + $0x3]] }
 0x424   : > { %2590 = vrot.lane.b32.xlu1 %v4759_v61, %s5715_s28  ;;  %2531 = vrot.lane.b32.xlu0 %v4766_v40, %s5713_s21  ;;  %s2829_s21 = sld [smem:[#allocation13]] }
 0x428   : > { %2594 = vrot.lane.b32.xlu1 %v4766_v40, %s5715_s28  ;;  %2592 = vrot.lane.b32.xlu0 %v4756_v29, %s5715_s28 }
 0x44a   : > { %v1711_v59 = vpop.permute.xlu1 %1710  ;;  %v1709_v25 = vpop.permute.xlu0 %1708 }
 0x44e   : > { %v1713_v28 = vpop.permute.xlu1 %1712  ;;  %v1718_v4 = vpop.permute.xlu0 %1717 }
 0x44f   : > { %v4849_v19 = vsel %vm473_vm1, %v1709_v25, %v1718_v4  ;;  %v4897_v8 = vsel %vm477_vm2, %v1709_v25, %v1718_v4 }
 0x450   : > { %1735 = vrot.lane.b32.xlu1 %v4849_v19, %s3590_s18 }
 0x452   : > { %v1720_v32 = vpop.permute.xlu1 %1719  ;;  %v1722_v31 = vpop.permute.xlu0 %1721 }
 0x453   : > { %v4854_v48 = vsel %vm473_vm1, %v1711_v59, %v1720_v32  ;;  %v4857_v49 = vsel %vm473_vm1, %v1713_v28, %v1722_v31  ;;  %v4892_v9 = vsel %vm477_vm2, %v1711_v59, %v1720_v32  ;;  %v4906_v16 = vsel %vm477_vm2, %v1713_v28, %v1722_v31 }
 0x454   : > { %1737 = vrot.lane.b32.xlu0 %v4854_v48, %s3590_s18  ;;  %1739 = vrot.lane.b32.xlu1 %v4857_v49, %s3590_s18 }
 0x456   : > { %v4863_v27 = vpop.permute.xlu1 %1773  ;;  %v4865_v0 = vpop.permute.xlu0 %1771 }
 0x458   : > { %1744 = vrot.lane.b32.xlu0 %v4849_v19, %s5706_s1  ;;  %1746 = vrot.lane.b32.xlu1 %v4854_v48, %s5706_s1 }
 0x45a   : > { %v4871_v6 = vpop.permute.xlu1 %1780  ;;  %v4873_v21 = vpop.permute.xlu0 %1775 }
 0x45c   : > { %1748 = vrot.lane.b32.xlu0 %v4857_v49, %s5706_s1  ;;  %1753 = vrot.lane.b32.xlu1 %v4849_v19, %s5707_s16 }
 0x45e   : > { %v4879_v36 = vpop.permute.xlu1 %1784  ;;  %v4881_v30 = vpop.permute.xlu0 %1782 }
 0x460   : > { %1755 = vrot.lane.b32.xlu0 %v4854_v48, %s5707_s16  ;;  %1757 = vrot.lane.b32.xlu1 %v4857_v49, %s5707_s16 }
 0x462   : > { %v4887_v10 = vpop.permute.xlu1 %1791  ;;  %v4889_v2 = vpop.permute.xlu0 %1789 }
 0x464   : > { %1812 = vrot.lane.b32.xlu0 %v4892_v9, %s3590_s18  ;;  %1810 = vrot.lane.b32.xlu1 %v4897_v8, %s3590_s18 }
 0x466   : > { %v1996_v63 = vpop.permute.xlu1 %1995  ;;  %v4901_v37 = vpop.permute.xlu0 %1793 }
 0x468   : > { %1819 = vrot.lane.b32.xlu0 %v4897_v8, %s5706_s1  ;;  %1814 = vrot.lane.b32.xlu1 %v4906_v16, %s3590_s18 }
 0x46a   : > { %v2003_v20 = vpop.permute.xlu1 %2002  ;;  %v1994_v60 = vpop.permute.xlu0 %1993 }
 0x46b   : > { %v4921_v35 = vsel %vm473_vm1, %v1994_v60, %v2003_v20  ;;  %v4970_v33 = vsel %vm477_vm2, %v1994_v60, %v2003_v20 }
 0x46c   : > { %1823 = vrot.lane.b32.xlu0 %v4906_v16, %s5706_s1  ;;  %1821 = vrot.lane.b32.xlu1 %v4892_v9, %s5706_s1 }
 0x46e   : > { %v2007_v45 = vpop.permute.xlu1 %2006  ;;  %v1998_v11 = vpop.permute.xlu0 %1997 }
 0x46f   : > { %v4932_v62 = vsel %vm473_vm1, %v1998_v11, %v2007_v45  ;;  %v4984_v47 = vsel %vm477_vm2, %v1998_v11, %v2007_v45 }
 0x470   : > { %1830 = vrot.lane.b32.xlu0 %v4892_v9, %s5707_s16  ;;  %1828 = vrot.lane.b32.xlu1 %v4897_v8, %s5707_s16 }
 0x472   : > { %v4918_v22 = vpop.permute.xlu1 %2056  ;;  %v2005_v50 = vpop.permute.xlu0 %2004 }
 0x473   : > { %v4937_v26 = vsel %vm473_vm1, %v1996_v63, %v2005_v50  ;;  %v4975_v17 = vsel %vm477_vm2, %v1996_v63, %v2005_v50 }
 0x474   : > { %2020 = vrot.lane.b32.xlu0 %v4921_v35, %s3590_s18  ;;  %1832 = vrot.lane.b32.xlu1 %v4906_v16, %s5707_s16 }
 0x476   : > { %v4927_v24 = vpop.permute.xlu1 %2060  ;;  %v4929_v5 = vpop.permute.xlu0 %2058 }
 0x478   : > { %2024 = vrot.lane.b32.xlu0 %v4932_v62, %s3590_s18  ;;  %2022 = vrot.lane.b32.xlu1 %v4937_v26, %s3590_s18 }
 0x47a   : > { %v4941_v13 = vpop.permute.xlu1 %2260  ;;  %v4943_v23 = vpop.permute.xlu0 %2262 }
 0x47c   : > { %2031 = vrot.lane.b32.xlu0 %v4937_v26, %s5706_s1  ;;  %2029 = vrot.lane.b32.xlu1 %v4921_v35, %s5706_s1 }
 0x47e   : > { %v4949_v58 = vpop.permute.xlu1 %2264  ;;  %v4951_v55 = vpop.permute.xlu0 %2269 }
 0x47f   : > { %v5017_v39 = vsel %vm473_vm1, %v4941_v13, %v4951_v55 }
 0x480   : > { %2038 = vrot.lane.b32.xlu0 %v4921_v35, %s5707_s16  ;;  %2033 = vrot.lane.b32.xlu1 %v4932_v62, %s5706_s1  ;;  %5716 = vst [vmem:[#allocation35_spill] sm:$0xff] %v5017_v39 }
 0x482   : > { %v4957_v52 = vpop.permute.xlu1 %2271  ;;  %v4959_v12 = vpop.permute.xlu0 %2273 }
 0x483   : > { %v5032_v28 = vsel %vm473_vm1, %v4943_v23, %v4957_v52  ;;  %v5044_v63 = vsel %vm473_vm1, %v4949_v58, %v4959_v12 }
 0x484   : > { %2042 = vrot.lane.b32.xlu0 %v4932_v62, %s5707_s16  ;;  %2040 = vrot.lane.b32.xlu1 %v4937_v26, %s5707_s16  ;;  %5718 = vst [vmem:[#allocation30_spill] sm:$0xff] %v5044_v63 }
 0x486   : > { %v4965_v41 = vpop.permute.xlu1 %2325  ;;  %v4967_v3 = vpop.permute.xlu0 %2323 }
 0x488   : > { %2077 = vrot.lane.b32.xlu0 %v4970_v33, %s3590_s18  ;;  %2079 = vrot.lane.b32.xlu1 %v4975_v17, %s3590_s18 }
 0x48a   : > { %v4979_v1 = vpop.permute.xlu1 %2529  ;;  %v4981_v34 = vpop.permute.xlu0 %2327 }
 0x48c   : > { %2081 = vrot.lane.b32.xlu0 %v4984_v47, %s3590_s18  ;;  %2086 = vrot.lane.b32.xlu1 %v4970_v33, %s5706_s1 }
 0x48e   : > { %v4990_v15 = vpop.permute.xlu1 %2538  ;;  %v4992_v51 = vpop.permute.xlu0 %2527 }
 0x490   : > { %2088 = vrot.lane.b32.xlu0 %v4975_v17, %s5706_s1  ;;  %2090 = vrot.lane.b32.xlu1 %v4984_v47, %s5706_s1 }
 0x492   : > { %v4998_v14 = vpop.permute.xlu1 %2540  ;;  %v5000_v46 = vpop.permute.xlu0 %2536 }
 0x494   : > { %2095 = vrot.lane.b32.xlu0 %v4970_v33, %s5707_s16  ;;  %2097 = vrot.lane.b32.xlu1 %v4975_v17, %s5707_s16 }
 0x496   : > { %v2591_v57 = vpop.permute.xlu1 %2590  ;;  %v5006_v56 = vpop.permute.xlu0 %2531 }
 0x497   : > { %v2599_v54 = vsel %vm511_vm3, %v2591_v57, %v4967_v3 }
 0x498   : > { %v2602_v38 = vsel %vm515_vm4, %v2599_v54, %v4918_v22  ;;  %2099 = vrot.lane.b32.xlu0 %v4984_v47, %s5707_s16  ;;  %2287 = vrot.lane.b32.xlu1 %v5017_v39, %s3590_s18 }
 0x499   : > { %v5021_v7 = vsel %vm519_vm5, %v2602_v38, %v4759_v61 }
 0x49a   : > { %5717 = vst [vmem:[#allocation24_spill] sm:$0xff] %v5021_v7  ;;  %v2595_v42 = vpop.permute.xlu1 %2594  ;;  %v2593_v43 = vpop.permute.xlu0 %2592  ;;  %v2699_v4 = vmul.f32 %v3181_v44, %v5021_v7  ;;  %v2759_v20 = vmul.f32 %v3184_v18, %v5021_v7 }
 0x49b   : > { %v2601_v59 = vsel %vm511_vm3, %v2595_v42, %v4981_v34  ;;  %v2600_v25 = vsel %vm511_vm3, %v2593_v43, %v4965_v41 }
 0x49c   : > { %v2604_v32 = vsel %vm515_vm4, %v2601_v59, %v4927_v24  ;;  %v2603_v31 = vsel %vm515_vm4, %v2600_v25, %v4929_v5  ;;  %2289 = vrot.lane.b32.xlu0 %v5032_v28, %s3590_s18  ;;  %2291 = vrot.lane.b32.xlu1 %v5044_v63, %s3590_s18  ;;  %v2705_v38 = vrot.slane %v2699_v4, 1  ;;  %v2765_v25 = vrot.slane %v2759_v20, 2 }
 0x49d   : > { %v2607_v60 = vsel %vm519_vm5, %v2604_v32, %v4766_v40  ;;  %v5051_v45 = vsel %vm519_vm5, %v2603_v31, %v4756_v29  ;;  %v5084_v4 = vsel %vm477_vm2, %v4943_v23, %v4957_v52  ;;  %v5091_v20 = vsel %vm477_vm2, %v4941_v13, %v4951_v55 }
 0x49e   : > { %5719 = vst [vmem:[#allocation37_spill] sm:$0xff] %v5051_v45  ;;  %v2701_v11 = vmul.f32 %v3181_v44, %v2607_v60  ;;  %v2761_v50 = vmul.f32 %v3184_v18, %v2607_v60  ;;  %v2700_v57 = vmul.f32 %v3181_v44, %v5051_v45  ;;  %v2760_v54 = vmul.f32 %v3184_v18, %v5051_v45  ;;  %v3155_v45 = vld [vmem:[#allocation11 + $0x14] ss:$0 sm:$0xff] }
 0x49f   : > { %5724 = vst [vmem:[#allocation33_spill] sm:$0xff] %v5084_v4  ;;  %5725 = vst [vmem:[#allocation45_spill] sm:$0xff] %v5091_v20  ;;  %v5115_v13 = vsel %vm473_vm1, %v4992_v51, %v5000_v46  ;;  %v5124_v23 = vsel %vm473_vm1, %v5006_v56, %v4998_v14 }
 0x4a0   : > { %v2708_v42 = vrot.slane %v2701_v11, 1  ;;  %v2768_v43 = vrot.slane %v2761_v50, 2  ;;  %v2706_v59 = vrot.slane %v2700_v57, 1  ;;  %2296 = vrot.lane.b32.xlu0 %v5017_v39, %s5706_s1  ;;  %v2766_v32 = vrot.slane %v2760_v54, 2  ;;  %2298 = vrot.lane.b32.xlu1 %v5032_v28, %s5706_s1  ;;  %5727 = vst [vmem:[#allocation34_spill] sm:$0xff] %v5115_v13  ;;  %5728 = vst [vmem:[#allocation36_spill] sm:$0xff] %v5124_v23 }
 0x4a1   : > { %v5100_v11 = vsel %vm477_vm2, %v4949_v58, %v4959_v12  ;;  %v5129_v58 = vsel %vm473_vm1, %v4979_v1, %v4990_v15 }
 0x4a2   : > { %v5062_v31 = vsel %vm636_vm6, %v2706_v59, %v2708_v42  ;;  %v5065_v60 = vsel %vm636_vm6, %v2705_v38, %v2706_v59  ;;  %v5068_v44 = vsel %vm697_vm7, %v2765_v25, %v2766_v32  ;;  %v5071_v18 = vsel %vm697_vm7, %v2766_v32, %v2768_v43  ;;  %5726 = vst [vmem:[#allocation48_spill] sm:$0xff] %v5100_v11  ;;  %v3153_v32 = vld [vmem:[#allocation11 + $0xc] ss:$0 sm:$0xff] }
 0x4a3   : > { %5720 = vst [vmem:[#allocation40_spill] sm:$0xff] %v5062_v31  ;;  %5721 = vst [vmem:[#allocation31_spill] sm:$0xff] %v5065_v60 }
 0x4a4   : > { %5722 = vst [vmem:[#allocation42_spill] sm:$0xff] %v5068_v44  ;;  %5723 = vst [vmem:[#allocation26_spill] sm:$0xff] %v5071_v18  ;;  %2300 = vrot.lane.b32.xlu0 %v5044_v63, %s5706_s1  ;;  %2305 = vrot.lane.b32.xlu1 %v5017_v39, %s5707_s16 }
 0x4a5   : > { %5729 = vst [vmem:[#allocation29_spill] sm:$0xff] %v5129_v58 }
 0x4a8   : > { %2307 = vrot.lane.b32.xlu0 %v5032_v28, %s5707_s16  ;;  %2309 = vrot.lane.b32.xlu1 %v5044_v63, %s5707_s16 }
 0x4ac   : > { %2346 = vrot.lane.b32.xlu0 %v5084_v4, %s3590_s18  ;;  %2344 = vrot.lane.b32.xlu1 %v5091_v20, %s3590_s18 }
 0x4b0   : > { %2353 = vrot.lane.b32.xlu0 %v5091_v20, %s5706_s1  ;;  %2348 = vrot.lane.b32.xlu1 %v5100_v11, %s3590_s18 }
 0x4b4   : > { %2357 = vrot.lane.b32.xlu0 %v5100_v11, %s5706_s1  ;;  %2355 = vrot.lane.b32.xlu1 %v5084_v4, %s5706_s1 }
 0x4b8   : > { %2364 = vrot.lane.b32.xlu0 %v5084_v4, %s5707_s16  ;;  %2362 = vrot.lane.b32.xlu1 %v5091_v20, %s5707_s16 }
 0x4bc   : > { %2554 = vrot.lane.b32.xlu0 %v5115_v13, %s3590_s18  ;;  %2366 = vrot.lane.b32.xlu1 %v5100_v11, %s5707_s16 }
 0x4c0   : > { %2558 = vrot.lane.b32.xlu0 %v5124_v23, %s3590_s18  ;;  %2556 = vrot.lane.b32.xlu1 %v5129_v58, %s3590_s18 }
 0x4c2   : > { %v1736_v55 = vpop.permute.xlu1 %1735 }
 0x4c3   : > { %v1762_v50 = vsel %vm511_vm3, %v4849_v19, %v1736_v55 }
 0x4c4   : > { %2565 = vrot.lane.b32.xlu0 %v5129_v58, %s5706_s1  ;;  %2563 = vrot.lane.b32.xlu1 %v5115_v13, %s5706_s1 }
 0x4c6   : > { %v1740_v52 = vpop.permute.xlu1 %1739  ;;  %v1738_v12 = vpop.permute.xlu0 %1737 }
 0x4c7   : > { %v1763_v57 = vsel %vm511_vm3, %v4854_v48, %v1738_v12  ;;  %v1764_v59 = vsel %vm511_vm3, %v4857_v49, %v1740_v52  ;;  %v5158_v48 = vsel %vm477_vm2, %v4992_v51, %v5000_v46  ;;  %v5174_v52 = vsel %vm477_vm2, %v5006_v56, %v4998_v14 }
 0x4c8   : > { %2572 = vrot.lane.b32.xlu0 %v5115_v13, %s5707_s16  ;;  %2567 = vrot.lane.b32.xlu1 %v5124_v23, %s5706_s1  ;;  %5730 = vst [vmem:[#allocation49_spill] sm:$0xff] %v5158_v48  ;;  %5732 = vst [vmem:[#allocation25_spill] sm:$0xff] %v5174_v52 }
 0x4ca   : > { %v1747_v54 = vpop.permute.xlu1 %1746  ;;  %v1745_v38 = vpop.permute.xlu0 %1744 }
 0x4cb   : > { %v1766_v42 = vsel %vm515_vm4, %v1763_v57, %v1747_v54  ;;  %v1765_v43 = vsel %vm515_vm4, %v1762_v50, %v1745_v38  ;;  %v5165_v50 = vsel %vm477_vm2, %v4979_v1, %v4990_v15  ;;  %v3156_v57 = vld [vmem:[#allocation11 + $0x18] ss:$0 sm:$0xff] }
 0x4cc   : > { %2576 = vrot.lane.b32.xlu0 %v5124_v23, %s5707_s16  ;;  %2574 = vrot.lane.b32.xlu1 %v5129_v58, %s5707_s16  ;;  %5731 = vst [vmem:[#allocation41_spill] sm:$0xff] %v5165_v50  ;;  %v3158_v58 = vld [vmem:[#allocation11 + $0x20] ss:$0 sm:$0xff] }
 0x4ce   : > { %v1754_v25 = vpop.permute.xlu1 %1753  ;;  %v1749_v19 = vpop.permute.xlu0 %1748 }
 0x4cf   : > { %v1768_v55 = vsel %vm519_vm5, %v1765_v43, %v1754_v25  ;;  %v1767_v12 = vsel %vm515_vm4, %v1764_v59, %v1749_v19 }
 0x4d0   : > { %2611 = vrot.lane.b32.xlu0 %v5158_v48, %s3590_s18  ;;  %2613 = vrot.lane.b32.xlu1 %v5165_v50, %s3590_s18  ;;  %v1878_v49 = vmul.f32 %v3153_v32, %v1768_v55  ;;  %v1938_v54 = vmul.f32 %v3156_v57, %v1768_v55 }
 0x4d2   : > { %v1758_v51 = vpop.permute.xlu1 %1757  ;;  %v1756_v46 = vpop.permute.xlu0 %1755  ;;  %v1884_v19 = vrot.slane %v1878_v49, 1  ;;  %v1944_v44 = vrot.slane %v1938_v54, 2  ;;  %v1799_v49 = vsel %vm511_vm3, %v4756_v29, %v4863_v27  ;;  %v1800_v54 = vsel %vm511_vm3, %v4766_v40, %v4873_v21 }
 0x4d3   : > { %v1770_v38 = vsel %vm519_vm5, %v1767_v12, %v1758_v51  ;;  %v1769_v1 = vsel %vm519_vm5, %v1766_v42, %v1756_v46 }
 0x4d4   : > { %v1880_v15 = vmul.f32 %v3153_v32, %v1770_v38  ;;  %v1940_v43 = vmul.f32 %v3156_v57, %v1770_v38  ;;  %v1879_v59 = vmul.f32 %v3153_v32, %v1769_v1  ;;  %2615 = vrot.lane.b32.xlu0 %v5174_v52, %s3590_s18  ;;  %v1939_v25 = vmul.f32 %v3156_v57, %v1769_v1 }
 0x4d5   : > { %2620 = vrot.lane.b32.xlu1 %v5158_v48, %s5706_s1  ;;  %v1798_v57 = vsel %vm511_vm3, %v4759_v61, %v4865_v0  ;;  %v1802_v38 = vsel %vm515_vm4, %v1799_v49, %v4881_v30 }
 0x4d6   : > { %v1887_v53 = vrot.slane %v1880_v15, 1  ;;  %v1947_v18 = vrot.slane %v1940_v43, 2  ;;  %v1885_v14 = vrot.slane %v1879_v59, 1  ;;  %v1813_v56 = vpop.permute.xlu0 %1812  ;;  %v1945_v31 = vrot.slane %v1939_v25, 2  ;;  %v1811_v12 = vpop.permute.xlu1 %1810  ;;  %v3150_v15 = vld [vmem:[#allocation11] ss:$0 sm:$0xff] }
 0x4d7   : > { %v1852_v25 = vmul.f32 %v3150_v15, %v1769_v1  ;;  %v1851_v49 = vmul.f32 %v3150_v15, %v1768_v55 }
 0x4d8   : > { %2622 = vrot.lane.b32.xlu0 %v5165_v50, %s5706_s1  ;;  %v5185_v42 = vsel %vm636_vm6, %v1884_v19, %v1885_v14  ;;  %v5188_v32 = vsel %vm636_vm6, %v1885_v14, %v1887_v53  ;;  %v5197_v51 = vsel %vm697_vm7, %v1944_v44, %v1945_v31  ;;  %v5200_v46 = vsel %vm697_vm7, %v1945_v31, %v1947_v18  ;;  %v3154_v31 = vld [vmem:[#allocation11 + $0x10] ss:$0 sm:$0xff] }
 0x4d9   : > { %2624 = vrot.lane.b32.xlu1 %v5174_v52, %s5706_s1  ;;  %v1801_v53 = vsel %vm515_vm4, %v1798_v57, %v4871_v6  ;;  %v1803_v44 = vsel %vm515_vm4, %v1800_v54, %v4879_v36  ;;  %v1805_v18 = vsel %vm519_vm5, %v1802_v38, %v4887_v10  ;;  %v3151_v57 = vld [vmem:[#allocation11 + $0x4] ss:$0 sm:$0xff]  ;;  %v3157_v54 = vld [vmem:[#allocation11 + $0x1c] ss:$0 sm:$0xff]  ;;  %v3149_v10 = vld [vmem:[%s5553_s6] ss:$0 sm:$0xff] }
 0x4da   : > { %v1820_v43 = vpop.permute.xlu0 %1819  ;;  %v1804_v59 = vsel %vm519_vm5, %v1801_v53, %v4889_v2  ;;  %v1815_v19 = vpop.permute.xlu1 %1814  ;;  %v1806_v14 = vsel %vm519_vm5, %v1803_v44, %v4901_v37  ;;  %v1899_v60 = vmul.f32 %v3154_v31, %v1805_v18  ;;  %v1854_v53 = vadd.f32 %v3149_v10, %v1852_v25  ;;  %s3193_s1 = sshll.u32 %s3671_s15, 7  ;;  %s3599_s15 = smov [#allocation15]  }
 0x4db   : > { %v1898_v23 = vmul.f32 %v3154_v31, %v1804_v59  ;;  %v1900_v1 = vmul.f32 %v3154_v31, %v1806_v14  ;;  %v1861_v37 = vmul.f32 %v3151_v57, %v1805_v18  ;;  %v5228_v44 = vmul.f32 %v3157_v54, %v1805_v18 }
 0x4dc   : > { %2629 = vrot.lane.b32.xlu0 %v5158_v48, %s5707_s16  ;;  %v1860_v55 = vmul.f32 %v3151_v57, %v1804_v59  ;;  %v1853_v15 = vadd.f32 %v3149_v10, %v1851_v49  ;;  %v3152_v48 = vld [vmem:[#allocation11 + $0x8] ss:$0 sm:$0xff]  ;;  %v1905_v7 = vrot.slane %v1899_v60, 1  ;;  %v1837_v31 = vsel %vm511_vm3, %v4897_v8, %v1811_v12 }
 0x4dd   : > { %2631 = vrot.lane.b32.xlu1 %v5165_v50, %s5707_s16  ;;  %v1838_v50 = vsel %vm511_vm3, %v4892_v9, %v1813_v56  ;;  %v1904_v13 = vrot.slane %v1898_v23, 1  ;;  %v1907_v20 = vrot.slane %v1900_v1, 1  ;;  %v1840_v18 = vsel %vm515_vm4, %v1837_v31, %v1820_v43 }
 0x4de   : > { %v1824_v2 = vpop.permute.xlu0 %1823  ;;  %v1822_v38 = vpop.permute.xlu1 %1821  ;;  %v1863_v57 = vadd.f32 %v1861_v37, %v1854_v53  ;;  %v1862_v60 = vadd.f32 %v1860_v55, %v1853_v15  ;;  %v1839_v8 = vsel %vm511_vm3, %v4906_v16, %v1815_v19  ;;  %v1958_v31 = vmul.f32 %v3157_v54, %v1804_v59 }
 0x4df   : > { %v1841_v25 = vsel %vm515_vm4, %v1838_v50, %v1822_v38  ;;  %v1842_v53 = vsel %vm515_vm4, %v1839_v8, %v1824_v2  ;;  %v1908_v15 = vsel %vm636_vm6, %v1905_v7, %v1907_v20 }
 0x4e0   : > { %2633 = vrot.lane.b32.xlu0 %v5174_v52, %s5707_s16  ;;  %s3186_s16 = sld [smem:[#allocation12 + $0x1]] }
 0x4e2   : > { %v1831_v11 = vpop.permute.xlu0 %1830  ;;  %v1829_v52 = vpop.permute.xlu1 %1828 }
 0x4e3   : > { %v1844_v49 = vsel %vm519_vm5, %v1841_v25, %v1831_v11  ;;  %v1843_v9 = vsel %vm519_vm5, %v1840_v18, %v1829_v52  ;;  %v1960_v25 = vmul.f32 %v3157_v54, %v1806_v14  ;;  %v1906_v18 = vsel %vm636_vm6, %v1904_v13, %v1905_v7 }
 0x4e4   : > { %v1870_v56 = vmul.f32 %v3152_v48, %v1844_v49  ;;  %v1919_v10 = vmul.f32 %v3155_v45, %v1844_v49  ;;  %v1979_v4 = vmul.f32 %v3158_v58, %v1844_v49  ;;  %v1869_v23 = vmul.f32 %v3152_v48, %v1843_v9 }
 0x4e5   : > { %v1918_v63 = vmul.f32 %v3155_v45, %v1843_v9  ;;  %v1978_v39 = vmul.f32 %v3158_v58, %v1843_v9  ;;  %v1964_v54 = vrot.slane %v1958_v31, 2  ;;  %v1967_v9 = vrot.slane %v1960_v25, 2 }
 0x4e6   : > { %v1872_v50 = vadd.f32 %v1870_v56, %v1863_v57  ;;  %v1925_v12 = vrot.slane %v1919_v10, 1  ;;  %v1985_v1 = vrot.slane %v1979_v4, 2  ;;  %v2021_v43 = vpop.permute.xlu0 %2020  ;;  %v1871_v38 = vadd.f32 %v1869_v23, %v1862_v60  ;;  %v1833_v52 = vpop.permute.xlu1 %1832 }
 0x4e7   : > { %v1924_v11 = vrot.slane %v1918_v63, 1  ;;  %v1984_v37 = vrot.slane %v1978_v39, 2  ;;  %v1845_v48 = vsel %vm519_vm5, %v1842_v53, %v1833_v52 }
 0x4e8   : > { %v1892_v55 = vadd.f32 %v5188_v32, %v1872_v50  ;;  %v1891_v16 = vadd.f32 %v5185_v42, %v1871_v38  ;;  %v1920_v4 = vmul.f32 %v3155_v45, %v1845_v48  ;;  %v1965_v32 = vrot.slane %v5228_v44, 2 }
 0x4e9   : > { %v1926_v19 = vsel %vm636_vm6, %v1924_v11, %v1925_v12  ;;  %v1986_v39 = vsel %vm697_vm7, %v1984_v37, %v1985_v1  ;;  %v1980_v49 = vmul.f32 %v3158_v58, %v1845_v48  ;;  %v2047_v48 = vsel %vm511_vm3, %v4921_v35, %v2021_v43 }
 0x4ea   : > { %v1912_v2 = vadd.f32 %v1908_v15, %v1892_v55  ;;  %v2025_v57 = vpop.permute.xlu0 %2024  ;;  %v1911_v63 = vadd.f32 %v1906_v18, %v1891_v16  ;;  %v1927_v59 = vrot.slane %v1920_v4, 1  ;;  %v2023_v14 = vpop.permute.xlu1 %2022  ;;  %v1966_v13 = vsel %vm697_vm7, %v1964_v54, %v1965_v32 }
 0x4eb   : > { %v1987_v23 = vrot.slane %v1980_v49, 2  ;;  %v1968_v8 = vsel %vm697_vm7, %v1965_v32, %v1967_v9  ;;  %v2048_v55 = vsel %vm511_vm3, %v4937_v26, %v2023_v14  ;;  %v2066_v16 = vsel %vm511_vm3, %v4929_v5, %v4756_v29  ;;  %v3159_v26 = vld [vmem:[#allocation11 + $0x1] ss:$0 sm:$0xff] }
 0x4ec   : > { %v1931_v20 = vadd.f32 %v1926_v19, %v1911_v63  ;;  %v1928_v42 = vsel %vm636_vm6, %v1925_v12, %v1927_v59  ;;  %v2065_v4 = vsel %vm511_vm3, %v4918_v22, %v4759_v61  ;;  %v2067_v43 = vsel %vm511_vm3, %v4927_v24, %v4766_v40 }
 0x4ed   : > { %v1932_v56 = vadd.f32 %v1928_v42, %v1912_v2  ;;  %v1988_v11 = vsel %vm697_vm7, %v1985_v1, %v1987_v23  ;;  %v2049_v63 = vsel %vm511_vm3, %v4932_v62, %v2025_v57  ;;  %v2068_v14 = vsel %vm515_vm4, %v2065_v4, %v4865_v0 }
 0x4ee   : > { %v2032_v10 = vpop.permute.xlu0 %2031  ;;  %v2030_v45 = vpop.permute.xlu1 %2029  ;;  %v1951_v7 = vadd.f32 %v5197_v51, %v1931_v20  ;;  %v2070_v49 = vsel %vm515_vm4, %v2067_v43, %v4873_v21 }
 0x4ef   : > { %v1952_v60 = vadd.f32 %v5200_v46, %v1932_v56  ;;  %v2051_v15 = vsel %vm515_vm4, %v2048_v55, %v2032_v10  ;;  %v2050_v1 = vsel %vm515_vm4, %v2047_v48, %v2030_v45  ;;  %v3161_v45 = vld [vmem:[#allocation11 + $0x9] ss:$0 sm:$0xff] }
 0x4f0   : > { %v1971_v50 = vadd.f32 %v1966_v13, %v1951_v7  ;;  %v2071_v13 = vsel %vm519_vm5, %v2068_v14, %v4871_v6 }
 0x4f1   : > { %v1972_v53 = vadd.f32 %v1968_v8, %v1952_v60  ;;  %v3162_v60 = vld [vmem:[#allocation11 + $0xd] ss:$0 sm:$0xff]  ;;  %v3160_v8 = vld [vmem:[#allocation11 + $0x5] ss:$0 sm:$0xff] }
 0x4f2   : > { %v2039_v44 = vpop.permute.xlu0 %2038  ;;  %v2034_v58 = vpop.permute.xlu1 %2033  ;;  %v1991_v38 = vadd.f32 %v1986_v39, %v1971_v50  ;;  %v2069_v39 = vsel %vm515_vm4, %v2066_v16, %v4863_v27 }
 0x4f3   : > { %v1992_v12 = vadd.f32 %v1988_v11, %v1972_v53  ;;  %v5271_v18 = vsel %vm519_vm5, %v2050_v1, %v2039_v44  ;;  %v2052_v32 = vsel %vm515_vm4, %v2049_v63, %v2034_v58  ;;  %v2072_v42 = vsel %vm519_vm5, %v2069_v39, %v4881_v30  ;;  %v3164_v1 = vld [vmem:[#allocation11 + $0x15] ss:$0 sm:$0xff] }
 0x4f4   : > { %v2118_v54 = vmul.f32 %v3159_v26, %v5271_v18  ;;  %v2073_v30 = vsel %vm519_vm5, %v2070_v49, %v4879_v36  ;;  %v2128_v6 = vmul.f32 %v3160_v8, %v2072_v42 }
 0x4f6   : > { %v2043_v37 = vpop.permute.xlu0 %2042  ;;  %v2041_v52 = vpop.permute.xlu1 %2040  ;;  %v2120_v50 = vadd.f32 %v2118_v54, %v1991_v38  ;;  %v2145_v38 = vmul.f32 %v3162_v60, %v5271_v18 }
 0x4f7   : > { %v5265_v19 = vsel %vm519_vm5, %v2051_v15, %v2041_v52  ;;  %v2055_v9 = vsel %vm519_vm5, %v2052_v32, %v2043_v37  ;;  %v3163_v37 = vld [vmem:[#allocation11 + $0x11] ss:$0 sm:$0xff] }
 0x4f8   : > { %v2119_v59 = vmul.f32 %v3159_v26, %v5265_v19  ;;  %v2146_v44 = vmul.f32 %v3162_v60, %v5265_v19  ;;  %v2147_v53 = vmul.f32 %v3162_v60, %v2055_v9  ;;  %v2167_v36 = vmul.f32 %v3163_v37, %v2073_v30  ;;  %v3165_v60 = vld [vmem:[#allocation11 + $0x19] ss:$0 sm:$0xff] }
 0x4f9   : > { %v2166_v15 = vmul.f32 %v3163_v37, %v2072_v42  ;;  %v2165_v39 = vmul.f32 %v3163_v37, %v2071_v13  ;;  %v2151_v63 = vrot.slane %v2145_v38, 1 }
 0x4fa   : > { %v2078_v31 = vpop.permute.xlu0 %2077  ;;  %v2080_v25 = vpop.permute.xlu1 %2079  ;;  %v2121_v23 = vadd.f32 %v2119_v59, %v1992_v12  ;;  %v2174_v59 = vrot.slane %v2167_v36, 1 }
 0x4fb   : > { %v2105_v20 = vsel %vm511_vm3, %v4975_v17, %v2080_v25  ;;  %v2104_v62 = vsel %vm511_vm3, %v4970_v33, %v2078_v31  ;;  %v2127_v31 = vmul.f32 %v3160_v8, %v2071_v13  ;;  %v2172_v14 = vrot.slane %v2166_v15, 1 }
 0x4fc   : > { %v2206_v8 = vmul.f32 %v3165_v60, %v5265_v19  ;;  %v2333_v19 = vsel %vm511_vm3, %v4965_v41, %v4929_v5 }
 0x4fd   : > { %v2129_v16 = vadd.f32 %v2127_v31, %v2120_v50  ;;  %v2207_v50 = vmul.f32 %v3165_v60, %v2055_v9  ;;  %v2332_v9 = vsel %vm511_vm3, %v4967_v3, %v4918_v22  ;;  %v2334_v22 = vsel %vm511_vm3, %v4981_v34, %v4927_v24 }
 0x4fe   : > { %v2082_v51 = vpop.permute.xlu0 %2081  ;;  %v2087_v46 = vpop.permute.xlu1 %2086  ;;  %v2335_v5 = vsel %vm515_vm4, %v2332_v9, %v4759_v61 }
 0x4ff   : > { %v2107_v56 = vsel %vm515_vm4, %v2104_v62, %v2087_v46  ;;  %v2106_v58 = vsel %vm511_vm3, %v4984_v47, %v2082_v51  ;;  %v2130_v46 = vadd.f32 %v2128_v6, %v2121_v23  ;;  %v2152_v47 = vrot.slane %v2146_v44, 1  ;;  %v3166_v23 = vld [vmem:[#allocation11 + $0x1d] ss:$0 sm:$0xff] }
 0x500   : > { %v2154_v51 = vrot.slane %v2147_v53, 1  ;;  %v2175_v44 = vsel %vm636_vm6, %v2172_v14, %v2174_v59  ;;  %v2225_v38 = vmul.f32 %v3166_v23, %v2071_v13  ;;  %v2214_v15 = vrot.slane %v2207_v50, 2 }
 0x502   : > { %v2089_v35 = vpop.permute.xlu0 %2088  ;;  %v2091_v2 = vpop.permute.xlu1 %2090  ;;  %v2155_v32 = vsel %vm636_vm6, %v2152_v47, %v2154_v51  ;;  %v3167_v51 = vld [vmem:[#allocation11 + $0x21] ss:$0 sm:$0xff] }
 0x503   : > { %v2108_v10 = vsel %vm515_vm4, %v2105_v20, %v2089_v35  ;;  %v2109_v52 = vsel %vm515_vm4, %v2106_v58, %v2091_v2  ;;  %v2153_v20 = vsel %vm636_vm6, %v2151_v63, %v2152_v47  ;;  %v2226_v58 = vmul.f32 %v3166_v23, %v2072_v42 }
 0x504   : > { %v2212_v42 = vrot.slane %v2206_v8, 2  ;;  %v3168_v8 = vld [vmem:[#allocation11 + $0x2] ss:$0 sm:$0xff] }
 0x505   : > { %v2232_v47 = vrot.slane %v2226_v58, 2 }
 0x506   : > { %v2096_v57 = vpop.permute.xlu0 %2095  ;;  %v2098_v7 = vpop.permute.xlu1 %2097  ;;  %v2215_v3 = vsel %vm697_vm7, %v2212_v42, %v2214_v15 }
 0x507   : > { %v5299_v17 = vsel %vm519_vm5, %v2108_v10, %v2098_v7  ;;  %v5302_v33 = vsel %vm519_vm5, %v2107_v56, %v2096_v57  ;;  %v2171_v7 = vrot.slane %v2165_v39, 1 }
 0x508   : > { %v2137_v11 = vmul.f32 %v3161_v45, %v5299_v17  ;;  %v2136_v25 = vmul.f32 %v3161_v45, %v5302_v33  ;;  %v2186_v54 = vmul.f32 %v3164_v1, %v5299_v17  ;;  %v2185_v62 = vmul.f32 %v3164_v1, %v5302_v33 }
 0x509   : > { %v2245_v39 = vmul.f32 %v3167_v51, %v5302_v33  ;;  %v2338_v33 = vsel %vm519_vm5, %v2335_v5, %v4865_v0  ;;  %v5735_v5 = vld [vmem:[#allocation33_spill] sm:$0xff] }
 0x50a   : > { %v2100_v12 = vpop.permute.xlu0 %2099  ;;  %v5312_v55 = vpop.permute.xlu1 %2287  ;;  %v2139_v4 = vadd.f32 %v2137_v11, %v2130_v46  ;;  %v2138_v35 = vadd.f32 %v2136_v25, %v2129_v16  ;;  %v2192_v53 = vrot.slane %v2186_v54, 1  ;;  %v2173_v11 = vsel %vm636_vm6, %v2171_v7, %v2172_v14 }
 0x50b   : > { %v2112_v48 = vsel %vm519_vm5, %v2109_v52, %v2100_v12  ;;  %v2191_v12 = vrot.slane %v2185_v62, 1  ;;  %v2227_v52 = vmul.f32 %v3166_v23, %v2073_v30  ;;  %v2205_v46 = vmul.f32 %v3165_v60, %v5271_v18  ;;  %v5734_v23 = vld [vmem:[#allocation30_spill] sm:$0xff] }
 0x50c   : > { %v2187_v43 = vmul.f32 %v3164_v1, %v2112_v48  ;;  %v2159_v49 = vadd.f32 %v2155_v32, %v2139_v4  ;;  %v2158_v56 = vadd.f32 %v2153_v20, %v2138_v35  ;;  %v2231_v18 = vrot.slane %v2225_v38, 2  ;;  %v3171_v38 = vld [vmem:[#allocation11 + $0xe] ss:$0 sm:$0xff] }
 0x50d   : > { %v2193_v30 = vsel %vm636_vm6, %v2191_v12, %v2192_v53  ;;  %v2234_v4 = vrot.slane %v2227_v52, 2  ;;  %v2211_v41 = vrot.slane %v2205_v46, 2  ;;  %v2247_v63 = vmul.f32 %v3167_v51, %v2112_v48  ;;  %v5733_v48 = vld [vmem:[#allocation35_spill] sm:$0xff] }
 0x50e   : > { %v2290_v26 = vpop.permute.xlu0 %2289  ;;  %v5316_v2 = vpop.permute.xlu1 %2291  ;;  %v2194_v10 = vrot.slane %v2187_v43, 1  ;;  %v2179_v6 = vadd.f32 %v2175_v44, %v2159_v49  ;;  %v2178_v31 = vadd.f32 %v2173_v11, %v2158_v56  ;;  %v2336_v43 = vsel %vm515_vm4, %v2333_v19, %v4756_v29 }
 0x50f   : > { %v2213_v59 = vsel %vm697_vm7, %v2211_v41, %v2212_v42  ;;  %v2246_v14 = vmul.f32 %v3167_v51, %v5299_v17  ;;  %v2233_v29 = vsel %vm697_vm7, %v2231_v18, %v2232_v47  ;;  %v2339_v61 = vsel %vm519_vm5, %v2336_v43, %v4863_v27  ;;  %v3172_v27 = vld [vmem:[#allocation11 + $0x12] ss:$0 sm:$0xff]  ;;  %v3174_v42 = vld [vmem:[#allocation11 + $0x1a] ss:$0 sm:$0xff] }
 0x510   : > { %v2195_v25 = vsel %vm636_vm6, %v2192_v53, %v2194_v10  ;;  %v2198_v13 = vadd.f32 %v2193_v30, %v2178_v31  ;;  %v2315_v49 = vsel %vm511_vm3, %v5032_v28, %v2290_v26  ;;  %v2235_v34 = vsel %vm697_vm7, %v2232_v47, %v2234_v4 }
 0x511   : > { %v2199_v16 = vadd.f32 %v2195_v25, %v2179_v6  ;;  %v2337_v17 = vsel %vm515_vm4, %v2334_v22, %v4766_v40  ;;  %v2314_v62 = vsel %vm511_vm3, %v5733_v48, %v5312_v55  ;;  %v2251_v10 = vrot.slane %v2245_v39, 2  ;;  %v5365_v55 = vld [vmem:[#allocation11 + $0x1e] ss:$0 sm:$0xff]  ;;  %v3169_v25 = vld [vmem:[#allocation11 + $0x6] ss:$0 sm:$0xff] }
 0x512   : > { %v2297_v57 = vpop.permute.xlu0 %2296  ;;  %v2299_v45 = vpop.permute.xlu1 %2298  ;;  %v2218_v24 = vadd.f32 %v2213_v59, %v2198_v13  ;;  %v2254_v7 = vrot.slane %v2247_v63, 2  ;;  %v2252_v60 = vrot.slane %v2246_v14, 2  ;;  %v2316_v0 = vsel %vm511_vm3, %v5734_v23, %v5316_v2  ;;  %v3170_v22 = vld [vmem:[#allocation11 + $0xa] ss:$0 sm:$0xff]  ;;  %v5736_v59 = vld [vmem:[#allocation45_spill] sm:$0xff] }
 0x513   : > { %v2219_v32 = vadd.f32 %v2215_v3, %v2199_v16  ;;  %v2318_v56 = vsel %vm515_vm4, %v2315_v49, %v2299_v45  ;;  %v2317_v28 = vsel %vm515_vm4, %v2314_v62, %v2297_v57  ;;  %v5369_v45 = vsel %vm519_vm5, %v2337_v17, %v4873_v21  ;;  %v3173_v3 = vld [vmem:[#allocation11 + $0x16] ss:$0 sm:$0xff] }
 0x514   : > { %v2238_v53 = vadd.f32 %v2233_v29, %v2218_v24  ;;  %v5372_v6 = vmul.f32 %v3172_v27, %v2338_v33  ;;  %v5375_v12 = vmul.f32 %v3172_v27, %v2339_v61  ;;  %v2255_v52 = vsel %vm697_vm7, %v2252_v60, %v2254_v7 }
 0x515   : > { %v2239_v50 = vadd.f32 %v2235_v34, %v2219_v32  ;;  %v2434_v21 = vmul.f32 %v3172_v27, %v5369_v45  ;;  %v5384_v9 = vmul.f32 %v5365_v55, %v2339_v61  ;;  %v2394_v4 = vmul.f32 %v3169_v25, %v2338_v33 }
 0x516   : > { %v2301_v37 = vpop.permute.xlu0 %2300  ;;  %v2306_v36 = vpop.permute.xlu1 %2305  ;;  %v2438_v16 = vrot.slane %v5372_v6, 1  ;;  %v2395_v13 = vmul.f32 %v3169_v25, %v2339_v61  ;;  %v3176_v6 = vld [vmem:[#allocation11 + $0x22] ss:$0 sm:$0xff] }
 0x517   : > { %v2320_v40 = vsel %vm519_vm5, %v2317_v28, %v2306_v36  ;;  %v2319_v57 = vsel %vm515_vm4, %v2316_v0, %v2301_v37  ;;  %v5379_v36 = vmul.f32 %v5365_v55, %v2338_v33  ;;  %v2253_v37 = vsel %vm697_vm7, %v2251_v10, %v2252_v60  ;;  %v5737_v60 = vld [vmem:[#allocation48_spill] sm:$0xff] }
 0x518   : > { %v2385_v31 = vmul.f32 %v3168_v8, %v2320_v40  ;;  %v2259_v46 = vadd.f32 %v2255_v52, %v2239_v50  ;;  %v2258_v15 = vadd.f32 %v2253_v37, %v2238_v53  ;;  %v2412_v43 = vmul.f32 %v3171_v38, %v2320_v40 }
 0x519   : > { %v2441_v39 = vrot.slane %v2434_v21, 1  ;;  %v2472_v63 = vmul.f32 %v3174_v42, %v2320_v40 }
 0x51a   : > { %v2308_v1 = vpop.permute.xlu0 %2307  ;;  %v2310_v35 = vpop.permute.xlu1 %2309  ;;  %v2387_v18 = vadd.f32 %v2385_v31, %v2258_v15 }
 0x51b   : > { %v2321_v26 = vsel %vm519_vm5, %v2318_v56, %v2308_v1  ;;  %v2322_v11 = vsel %vm519_vm5, %v2319_v57, %v2310_v35  ;;  %v2439_v35 = vrot.slane %v5375_v12, 1  ;;  %v2418_v56 = vrot.slane %v2412_v43, 1 }
 0x51c   : > { %v2386_v2 = vmul.f32 %v3168_v8, %v2321_v26  ;;  %v2414_v47 = vmul.f32 %v3171_v38, %v2322_v11  ;;  %v2413_v51 = vmul.f32 %v3171_v38, %v2321_v26  ;;  %v2396_v27 = vadd.f32 %v2394_v4, %v2387_v18 }
 0x51d   : > { %v2473_v28 = vmul.f32 %v3174_v42, %v2321_v26  ;;  %v2494_v26 = vmul.f32 %v5365_v55, %v5369_v45  ;;  %v2442_v31 = vsel %vm636_vm6, %v2439_v35, %v2441_v39  ;;  %v2440_v37 = vsel %vm636_vm6, %v2438_v16, %v2439_v35 }
 0x51e   : > { %v2347_v54 = vpop.permute.xlu0 %2346  ;;  %v2345_v20 = vpop.permute.xlu1 %2344  ;;  %v2388_v1 = vadd.f32 %v2386_v2, %v2259_v46  ;;  %v2421_v49 = vrot.slane %v2414_v47, 1  ;;  %v2419_v24 = vrot.slane %v2413_v51, 1  ;;  %v2499_v4 = vrot.slane %v5384_v9, 2 }
 0x51f   : > { %v2372_v41 = vsel %vm511_vm3, %v5735_v5, %v2347_v54  ;;  %v2371_v14 = vsel %vm511_vm3, %v5736_v59, %v2345_v20  ;;  %v2474_v20 = vmul.f32 %v3174_v42, %v2322_v11  ;;  %v2479_v38 = vrot.slane %v2473_v28, 2  ;;  %v5740_v28 = vld [vmem:[#allocation29_spill] sm:$0xff] }
 0x520   : > { %v2397_v54 = vadd.f32 %v2395_v13, %v2388_v1  ;;  %v2422_v53 = vsel %vm636_vm6, %v2419_v24, %v2421_v49  ;;  %v2498_v1 = vrot.slane %v5379_v36, 2  ;;  %v2478_v55 = vrot.slane %v2472_v63, 2  ;;  %v5738_v63 = vld [vmem:[#allocation34_spill] sm:$0xff]  ;;  %v3177_v49 = vld [vmem:[#allocation11 + $0x3] ss:$0 sm:$0xff] }
 0x521   : > { %v2481_v21 = vrot.slane %v2474_v20, 2  ;;  %v2501_v13 = vrot.slane %v2494_v26, 2 }
 0x522   : > { %v2354_v44 = vpop.permute.xlu0 %2353  ;;  %v2349_v58 = vpop.permute.xlu1 %2348  ;;  %v2480_v16 = vsel %vm697_vm7, %v2478_v55, %v2479_v38  ;;  %v2500_v9 = vsel %vm697_vm7, %v2498_v1, %v2499_v4  ;;  %v3183_v1 = vld [vmem:[#allocation11 + $0x1b] ss:$0 sm:$0xff]  ;;  %v5743_v55 = vld [vmem:[#allocation49_spill] sm:$0xff] }
 0x523   : > { %v2374_v61 = vsel %vm515_vm4, %v2371_v14, %v2354_v44  ;;  %v2373_v23 = vsel %vm511_vm3, %v5737_v60, %v2349_v58  ;;  %v2420_v44 = vsel %vm636_vm6, %v2418_v56, %v2419_v24  ;;  %v2502_v24 = vsel %vm697_vm7, %v2499_v4, %v2501_v13  ;;  %v3179_v13 = vld [vmem:[#allocation11 + $0xb] ss:$0 sm:$0xff] }
 0x526   : > { %v2358_v19 = vpop.permute.xlu0 %2357  ;;  %v2356_v30 = vpop.permute.xlu1 %2355 }
 0x527   : > { %v2375_v32 = vsel %vm515_vm4, %v2372_v41, %v2356_v30  ;;  %v2376_v40 = vsel %vm515_vm4, %v2373_v23, %v2358_v19  ;;  %v2482_v41 = vsel %vm697_vm7, %v2479_v38, %v2481_v21 }
 0x52a   : > { %v2365_v29 = vpop.permute.xlu0 %2364  ;;  %v2363_v34 = vpop.permute.xlu1 %2362 }
 0x52b   : > { %v2378_v33 = vsel %vm519_vm5, %v2375_v32, %v2365_v29  ;;  %v2377_v17 = vsel %vm519_vm5, %v2374_v61, %v2363_v34 }
 0x52c   : > { %v2404_v48 = vmul.f32 %v3170_v22, %v2378_v33  ;;  %v2453_v62 = vmul.f32 %v3173_v3, %v2378_v33  ;;  %v2403_v10 = vmul.f32 %v3170_v22, %v2377_v17  ;;  %v2452_v7 = vmul.f32 %v3173_v3, %v2377_v17 }
 0x52d   : > { %v2512_v15 = vmul.f32 %v3176_v6, %v2377_v17  ;;  %v2513_v47 = vmul.f32 %v3176_v6, %v2378_v33  ;;  %v3178_v17 = vld [vmem:[#allocation11 + $0x7] ss:$0 sm:$0xff] }
 0x52e   : > { %v2406_v0 = vadd.f32 %v2404_v48, %v2397_v54  ;;  %v2555_v8 = vpop.permute.xlu0 %2554  ;;  %v2405_v50 = vadd.f32 %v2403_v10, %v2396_v27  ;;  %v2367_v57 = vpop.permute.xlu1 %2366  ;;  %v2458_v2 = vrot.slane %v2452_v7, 1  ;;  %v2459_v52 = vrot.slane %v2453_v62, 1  ;;  %v5739_v7 = vld [vmem:[#allocation24_spill] sm:$0xff] }
 0x52f   : > { %v2379_v11 = vsel %vm519_vm5, %v2376_v40, %v2367_v57  ;;  %v2518_v22 = vrot.slane %v2512_v15, 2  ;;  %v2581_v32 = vsel %vm511_vm3, %v5738_v63, %v2555_v8  ;;  %v2661_v20 = vmul.f32 %v3178_v17, %v5739_v7 }
 0x530   : > { %v2426_v12 = vadd.f32 %v2422_v53, %v2406_v0  ;;  %v2425_v58 = vadd.f32 %v2420_v44, %v2405_v50  ;;  %v2454_v25 = vmul.f32 %v3173_v3, %v2379_v11  ;;  %v2460_v45 = vsel %vm636_vm6, %v2458_v2, %v2459_v52 }
 0x531   : > { %v2519_v3 = vrot.slane %v2513_v47, 2  ;;  %v2514_v14 = vmul.f32 %v3176_v6, %v2379_v11 }
 0x532   : > { %v2446_v46 = vadd.f32 %v2442_v31, %v2426_v12  ;;  %v2559_v19 = vpop.permute.xlu0 %2558  ;;  %v2445_v42 = vadd.f32 %v2440_v37, %v2425_v58  ;;  %v2461_v51 = vrot.slane %v2454_v25, 1  ;;  %v2557_v30 = vpop.permute.xlu1 %2556  ;;  %v5741_v12 = vld [vmem:[#allocation37_spill] sm:$0xff]  ;;  %v5742_v25 = vld [vmem:[#allocation36_spill] sm:$0xff] }
 0x533   : > { %v2520_v48 = vsel %vm697_vm7, %v2518_v22, %v2519_v3  ;;  %v2521_v56 = vrot.slane %v2514_v14, 2  ;;  %v2582_v60 = vsel %vm511_vm3, %v5740_v28, %v2557_v30  ;;  %v2583_v21 = vsel %vm511_vm3, %v5742_v25, %v2559_v19 }
 0x534   : > { %v2465_v18 = vadd.f32 %v2460_v45, %v2445_v42  ;;  %v2462_v43 = vsel %vm636_vm6, %v2459_v52, %v2461_v51  ;;  %v2662_v52 = vmul.f32 %v3178_v17, %v5741_v12  ;;  %v3185_v17 = vld [vmem:[#allocation11 + $0x23] ss:$0 sm:$0xff]  ;;  %v5747_v12 = vld [vmem:[#allocation40_spill] sm:$0xff] }
 0x535   : > { %v2466_v35 = vadd.f32 %v2462_v43, %v2446_v46  ;;  %v2522_v50 = vsel %vm697_vm7, %v2519_v3, %v2521_v56  ;;  %v3180_v46 = vld [vmem:[#allocation11 + $0xf] ss:$0 sm:$0xff] }
 0x536   : > { %v2566_v5 = vpop.permute.xlu0 %2565  ;;  %v2564_v39 = vpop.permute.xlu1 %2563  ;;  %v2485_v59 = vadd.f32 %v2480_v16, %v2465_v18  ;;  %v3182_v18 = vld [vmem:[#allocation11 + $0x17] ss:$0 sm:$0xff]  ;;  %v5744_v16 = vld [vmem:[#allocation41_spill] sm:$0xff] }
 0x537   : > { %v2486_v36 = vadd.f32 %v2482_v41, %v2466_v35  ;;  %v2584_v61 = vsel %vm515_vm4, %v2581_v32, %v2564_v39  ;;  %v2585_v8 = vsel %vm515_vm4, %v2582_v60, %v2566_v5 }
 0x538   : > { %v2505_v29 = vadd.f32 %v2500_v9, %v2485_v59 }
 0x539   : > { %v2506_v33 = vadd.f32 %v2502_v24, %v2486_v36 }
 0x53a   : > { %v2573_v34 = vpop.permute.xlu0 %2572  ;;  %v2568_v54 = vpop.permute.xlu1 %2567  ;;  %v2525_v27 = vadd.f32 %v2520_v48, %v2505_v29  ;;  %v5745_v29 = vld [vmem:[#allocation25_spill] sm:$0xff] }
 0x53b   : > { %v2587_v62 = vsel %vm519_vm5, %v2584_v61, %v2573_v34  ;;  %v2526_v57 = vadd.f32 %v2522_v50, %v2506_v33  ;;  %v2586_v37 = vsel %vm515_vm4, %v2583_v21, %v2568_v54 }
 0x53c   : > { %v2652_v10 = vmul.f32 %v3177_v49, %v2587_v62  ;;  %v2679_v51 = vmul.f32 %v3180_v46, %v2587_v62  ;;  %v2739_v22 = vmul.f32 %v3183_v1, %v2587_v62 }
 0x53e   : > { %v2654_v23 = vadd.f32 %v2652_v10, %v2525_v27  ;;  %v2577_v0 = vpop.permute.xlu0 %2576  ;;  %v2575_v40 = vpop.permute.xlu1 %2574  ;;  %v2685_v41 = vrot.slane %v2679_v51, 1 }
 0x53f   : > { %v2588_v44 = vsel %vm519_vm5, %v2585_v8, %v2575_v40  ;;  %v2589_v42 = vsel %vm519_vm5, %v2586_v37, %v2577_v0 }
 0x540   : > { %v2663_v53 = vadd.f32 %v2661_v20, %v2654_v23  ;;  %v2653_v6 = vmul.f32 %v3177_v49, %v2588_v44  ;;  %v2680_v15 = vmul.f32 %v3180_v46, %v2588_v44  ;;  %v2681_v4 = vmul.f32 %v3180_v46, %v2589_v42 }
 0x541   : > { %v2740_v32 = vmul.f32 %v3183_v1, %v2588_v44  ;;  %v2741_v34 = vmul.f32 %v3183_v1, %v2589_v42  ;;  %v5746_v44 = vld [vmem:[#allocation31_spill] sm:$0xff]  ;;  %v5749_v1 = vld [vmem:[#allocation26_spill] sm:$0xff] }
 0x542   : > { %v2612_v2 = vpop.permute.xlu0 %2611  ;;  %v2655_v11 = vadd.f32 %v2653_v6, %v2526_v57  ;;  %v2614_v26 = vpop.permute.xlu1 %2613  ;;  %v2686_v43 = vrot.slane %v2680_v15, 1  ;;  %v2688_v36 = vrot.slane %v2681_v4, 1 }
 0x543   : > { %v2638_v45 = vsel %vm511_vm3, %v5743_v55, %v2612_v2  ;;  %v2639_v19 = vsel %vm511_vm3, %v5744_v16, %v2614_v26  ;;  %v2746_v23 = vrot.slane %v2740_v32, 2  ;;  %v2748_v50 = vrot.slane %v2741_v34, 2 }
 0x544   : > { %v2664_v58 = vadd.f32 %v2662_v52, %v2655_v11  ;;  %v2687_v54 = vsel %vm636_vm6, %v2685_v41, %v2686_v43  ;;  %v2689_v20 = vsel %vm636_vm6, %v2686_v43, %v2688_v36 }
 0x545   : > { %v2749_v37 = vsel %vm697_vm7, %v2746_v23, %v2748_v50 }
 0x546   : > { %v2616_v31 = vpop.permute.xlu0 %2615 }
 0x547   : > { %v2621_v38 = vpop.permute.xlu1 %2620  ;;  %v2640_v49 = vsel %vm511_vm3, %v5745_v29, %v2616_v31 }
 0x548   : > { %v2641_v35 = vsel %vm515_vm4, %v2638_v45, %v2621_v38 }
 0x54a   : > { %v2623_v47 = vpop.permute.xlu0 %2622 }
 0x54b   : > { %v2625_v30 = vpop.permute.xlu1 %2624  ;;  %v2642_v3 = vsel %vm515_vm4, %v2639_v19, %v2623_v47  ;;  %v5748_v47 = vld [vmem:[#allocation42_spill] sm:$0xff] }
 0x54c   : > { %v2643_v33 = vsel %vm515_vm4, %v2640_v49, %v2625_v30 }
 0x54e   : > { %v2630_v5 = vpop.permute.xlu0 %2629 }
 0x54f   : > { %v2632_v39 = vpop.permute.xlu1 %2631  ;;  %v2644_v59 = vsel %vm519_vm5, %v2641_v35, %v2630_v5 }
 0x550   : > { %v2645_v14 = vsel %vm519_vm5, %v2642_v3, %v2632_v39  ;;  %v2670_v9 = vmul.f32 %v3179_v13, %v2644_v59  ;;  %v2719_v63 = vmul.f32 %v3182_v18, %v2644_v59  ;;  %v2779_v40 = vmul.f32 %v3185_v17, %v2644_v59 }
 0x551   : > { %v2671_v24 = vmul.f32 %v3179_v13, %v2645_v14  ;;  %v2720_v61 = vmul.f32 %v3182_v18, %v2645_v14  ;;  %v2780_v8 = vmul.f32 %v3185_v17, %v2645_v14 }
 0x552   : > { %v2672_v48 = vadd.f32 %v2670_v9, %v2663_v53  ;;  %v2634_v62 = vpop.permute.xlu0 %2633  ;;  %v2725_v10 = vrot.slane %v2719_v63, 1  ;;  %v2745_v53 = vrot.slane %v2739_v22, 2  ;;  %v2785_v21 = vrot.slane %v2779_v40, 2 }
 0x553   : > { %v2673_v56 = vadd.f32 %v2671_v24, %v2664_v58  ;;  %v2726_v27 = vrot.slane %v2720_v61, 1  ;;  %v2646_v7 = vsel %vm519_vm5, %v2643_v33, %v2634_v62  ;;  %v2786_v25 = vrot.slane %v2780_v8, 2  ;;  %v2930_v8 = vld [vmem:[%s3877_s22] sm:$0xff] }
 0x554   : > { %v2692_v28 = vadd.f32 %v2687_v54, %v2672_v48  ;;  %v2721_v60 = vmul.f32 %v3182_v18, %v2646_v7  ;;  %v2781_v2 = vmul.f32 %v3185_v17, %v2646_v7  ;;  %v2747_v31 = vsel %vm697_vm7, %v2745_v53, %v2746_v23 }
 0x555   : > { %v2693_v0 = vadd.f32 %v2689_v20, %v2673_v56  ;;  %v2727_v11 = vsel %vm636_vm6, %v2725_v10, %v2726_v27  ;;  %v2787_v30 = vsel %vm697_vm7, %v2785_v21, %v2786_v25 }
 0x556   : > { %v2712_v57 = vadd.f32 %v5746_v44, %v2692_v28  ;;  %v2728_v6 = vrot.slane %v2721_v60, 1  ;;  %v2788_v42 = vrot.slane %v2781_v2, 2 }
 0x557   : > { %v2713_v52 = vadd.f32 %v5747_v12, %v2693_v0 }
 0x558   : > { %v2732_v26 = vadd.f32 %v2727_v11, %v2712_v57  ;;  %v2729_v58 = vsel %vm636_vm6, %v2726_v27, %v2728_v6  ;;  %v2789_v45 = vsel %vm697_vm7, %v2786_v25, %v2788_v42 }
 0x559   : > { %v2733_v38 = vadd.f32 %v2729_v58, %v2713_v52 }
 0x55a   : > { %v2752_v46 = vadd.f32 %v2747_v31, %v2732_v26 }
 0x55b   : > { %v2753_v15 = vadd.f32 %v2749_v37, %v2733_v38 }
 0x55c   : > { %v2772_v51 = vadd.f32 %v5748_v47, %v2752_v46 }
 0x55d   : > { %v2773_v4 = vadd.f32 %v5749_v1, %v2753_v15 }
 0x55e   : > { %v5453_v55 = vadd.f32 %v2787_v30, %v2772_v51 }
 0x55f   : > { %v5456_v13 = vadd.f32 %v2789_v45, %v2773_v4 }
 0x560   : > { %v2803_v18 = vmul.f32 %v5453_v55, %v5453_v55  ;;  %v2794_v43 = vsel %vm1548_vm8, %v5453_v55, 0.0 }
 0x561   : > { %v2795_v16 = vsel %vm1548_vm8, %v5456_v13, 0.0  ;;  %v2804_v19 = vmul.f32 %v5456_v13, %v5456_v13 }
 0x562   : > { %v2796_v35 = vadd.f32 %v2795_v16, %v2794_v43  ;;  %v2805_v5 = vsel %vm1548_vm8, %v2803_v18, 0.0  ;;  %v2854_v43 = vstv %s3186_s16 }
 0x563   : > { %v2806_v41 = vsel %vm1548_vm8, %v2804_v19, 0.0 }
 0x564   : > { %v2797_v22 = vrot.slane %v2796_v35, 4  ;;  %v2807_v3 = vadd.f32 %v2806_v41, %v2805_v5  ;;  %v2879_v41 = vstv %s3188_s17 }
 0x566   : > { %v2798_v39 = vadd.f32 %v2797_v22, %v2796_v35  ;;  %v2808_v59 = vrot.slane %v2807_v3, 4  ;;  %v2827_v35 = vstv %s2824_s19 }
 0x568   : > { %v2799_v36 = vrot.slane %v2798_v39, 2  ;;  %v2809_v14 = vadd.f32 %v2808_v59, %v2807_v3 }
 0x56a   : > { %v2800_v9 = vadd.f32 %v2799_v36, %v2798_v39  ;;  %v2810_v63 = vrot.slane %v2809_v14, 2 }
 0x56c   : > { %v2801_v32 = vrot.slane %v2800_v9, 1  ;;  %v2811_v49 = vadd.f32 %v2810_v63, %v2809_v14  ;;  %v2904_v14 = vstv %s3190_s29  ;;  %v2883_v63 = vstv %s3189_s27  ;;  %s3487_s29 = sshll.u32 %s3599_s15, 4  ;;  %s3488_s29 = int_to_ptr.vmem [resolvable:$false] %s3487_s29 }
 0x56d   : > { %s3489_s27 = scalar_lea.vmem %s3488_s29, 256 }
 0x56e   : > { %v2802_v29 = vadd.f32 %v2801_v32, %v2800_v9  ;;  %v2812_v24 = vrot.slane %v2811_v49, 1 }
 0x570   : > { %2860 = vrot.lane.b32.xlu1 %v2802_v29, %s5644_s14  ;;  %2834 = vrot.lane.b32.xlu0 %v2802_v29, %s5710_s20  ;;  %v2813_v61 = vadd.f32 %v2812_v24, %v2811_v49  ;;  %v2814_v34 = vsel %vm511_vm3, %v2802_v29, 0.0  ;;  %v2831_v49 = vstv %s2829_s21 }
 0x572   : > { %v2817_v33 = vsel %vm511_vm3, %v2813_v61, 0.0 }
 0x574   : > { %2885 = vrot.lane.b32.xlu0 %v2802_v29, %s5715_s28 }
 0x578   : > { %2891 = vrot.lane.b32.xlu0 %v2813_v61, %s5715_s28  ;;  %s5752_s28 = sshll.u32 %s3871_s3, 3 }
 0x579   : > { %s428_s18 = scalar_lea.vmem [#allocation15], %s5752_s28 }
 0x57a   : > { %s2956_s16 = sshll.u32 %s428_s18, 4  ;;  %s5505_s16 = int_to_ptr.vmem [resolvable:$true] %s2956_s16 }
 0x57b   : > { %p3490_p1 = scmp.lt.s32.totalorder %s5505_s16, %s3488_s29 }
 0x594   : > { %2815 = vadd.xlane.f32.xlu1 %v2814_v34 }
 0x597   : > { %2818 = vadd.xlane.f32.xlu0 %v2817_v33  ;;  %v2908_v33 = vstv %s3191_s23 }
 0x5a5   : > { %2841 = vrot.lane.b32.xlu1 %v2813_v61, %s5710_s20  ;;  %s3187_s20 = sld [smem:[#allocation13 + $0x1]] }
 0x5a9   : > { %2866 = vrot.lane.b32.xlu1 %v2813_v61, %s5644_s14  ;;  %s5750_s14 = smov 64  }
 0x5ab   : > { %v2858_v36 = vstv %s3187_s20  ;;  %s5503_s20 = scalar_lea.hbm %s5556_s9, %s3193_s1 }
 0x5e2   : > { %v2835_v17 = vpop.permute.xlu0 %2834  ;;  %v2861_v48 = vpop.permute.xlu1 %2860 }
 0x5e3   : > { %v2837_v54 = vsel %vm511_vm3, %v2835_v17, 0.0  ;;  %v2863_v62 = vsel %vm511_vm3, %v2861_v48, 0.0 }
 0x5e4   : > { %2838 = vadd.xlane.f32.xlu1 %v2837_v54 }
 0x5e6   : > { %v2886_v56 = vpop.permute.xlu0 %2885 }
 0x5e7   : > { %v2888_v27 = vsel %vm511_vm3, %v2886_v56, 0.0 }
 0x5e8   : > { %2864 = vadd.xlane.f32.xlu1 %v2863_v62 }
 0x5ea   : > { %v2892_v23 = vpop.permute.xlu0 %2891 }
 0x5eb   : > { %v2894_v0 = vsel %vm511_vm3, %v2892_v23, 0.0 }
 0x5ec   : > { %2889 = vadd.xlane.f32.xlu1 %v2888_v27  ;;  %v5751_v27 = vld [vmem:[#allocation32_spill] sm:$0xff] }
 0x621   : > { %v2816_v10 = vpop.xlane.xlu1 %2815 }
 0x622   : > { %v2820_v40 = vmul.f32 0.00390625, %v2816_v10 }
 0x624   : > { %v2819_v44 = vpop.xlane.xlu0 %2818  ;;  %v2822_v57 = vmul.f32 %v2820_v40, %v2820_v40 }
 0x625   : > { %v2842_v7 = vpop.permute.xlu1 %2841  ;;  %v2821_v6 = vmul.f32 0.00390625, %v2819_v44 }
 0x626   : > { %v2844_v20 = vsel %vm511_vm3, %v2842_v7, 0.0 }
 0x627   : > { %2845 = vadd.xlane.f32.xlu0 %v2844_v20  ;;  %v2823_v12 = vsub.f32 %v2821_v6, %v2822_v57  ;;  %v3336_v57 = vld [vmem:[%s3877_s22] sm:$0xff]  ;;  %s2943_s22 = scalar_lea.sflag [#allocation4], %s3871_s3 }
 0x629   : > { %v2867_v28 = vpop.permute.xlu1 %2866  ;;  %v2825_v31 = vadd.f32 1e-05, %v2823_v12 }
 0x62a   : > { %v2869_v60 = vsel %vm511_vm3, %v2867_v28, 0.0 }
 0x62b   : > { %2870 = vadd.xlane.f32.xlu0 %v2869_v60  ;;  %3328 = vrsqrt.f32 %v2825_v31 }
 0x62f   : > { %2895 = vadd.xlane.f32.xlu0 %v2894_v0 }
 0x635   : > { %v3329_v16 = vpop.eup %3328 }
 0x636   : > { %v2828_v22 = vmul.f32 %v3329_v16, %v2827_v35 }
 0x638   : > { %v2830_v9 = vmul.f32 %v2828_v22, %v2820_v40 }
 0x63a   : > { %v2832_v48 = vsub.f32 %v2831_v49, %v2830_v9 }
 0x645   : > { %2932 = vrot.lane.b32.xlu0 %v2930_v8, %s5750_s14 }
 0x671   : > { %v2839_v50 = vpop.xlane.xlu1 %2838 }
 0x672   : > { %v2847_v53 = vmul.f32 0.00390625, %v2839_v50 }
 0x674   : > { %v2849_v11 = vmul.f32 %v2847_v53, %v2847_v53 }
 0x675   : > { %v2865_v2 = vpop.xlane.xlu1 %2864 }
 0x676   : > { %v2872_v26 = vmul.f32 0.00390625, %v2865_v2 }
 0x678   : > { %v2874_v37 = vmul.f32 %v2872_v26, %v2872_v26 }
 0x679   : > { %v2890_v25 = vpop.xlane.xlu1 %2889 }
 0x67a   : > { %v2897_v46 = vmul.f32 0.00390625, %v2890_v25 }
 0x67c   : > { %v2899_v30 = vmul.f32 %v2897_v46, %v2897_v46 }
 0x6b4   : > { %v2846_v52 = vpop.xlane.xlu0 %2845 }
 0x6b5   : > { %v2848_v58 = vmul.f32 0.00390625, %v2846_v52 }
 0x6b7   : > { %v2850_v21 = vsub.f32 %v2848_v58, %v2849_v11 }
 0x6b8   : > { %v2871_v38 = vpop.xlane.xlu0 %2870 }
 0x6b9   : > { %v2852_v42 = vadd.f32 1e-05, %v2850_v21  ;;  %v2873_v15 = vmul.f32 0.00390625, %v2871_v38 }
 0x6bb   : > { %3330 = vrsqrt.f32 %v2852_v42  ;;  %v2875_v47 = vsub.f32 %v2873_v15, %v2874_v37 }
 0x6bc   : > { %v2896_v51 = vpop.xlane.xlu0 %2895 }
 0x6bd   : > { %v2877_v1 = vadd.f32 1e-05, %v2875_v47  ;;  %v2898_v4 = vmul.f32 0.00390625, %v2896_v51 }
 0x6bf   : > { %3332 = vrsqrt.f32 %v2877_v1  ;;  %v2900_v45 = vsub.f32 %v2898_v4, %v2899_v30 }
 0x6c0   : > { %v2933_v40 = vpop.permute.xlu0 %2932 }
 0x6c1   : > { %v2902_v18 = vadd.f32 1e-05, %v2900_v45 }
 0x6c3   : > { %3334 = vrsqrt.f32 %v2902_v18 }
 0x6c5   : > { %v3331_v19 = vpop.eup %3330 }
 0x6c6   : > { %v2855_v5 = vmul.f32 %v3331_v19, %v2854_v43 }
 0x6c8   : > { %v2857_v39 = vmul.f32 %v2855_v5, %v2847_v53  ;;  %v2910_v34 = vsel %vm511_vm3, %v2828_v22, %v2855_v5 }
 0x6c9   : > { %v3333_v3 = vpop.eup %3332 }
 0x6ca   : > { %v2880_v59 = vmul.f32 %v3333_v3, %v2879_v41  ;;  %v2859_v24 = vsub.f32 %v2858_v36, %v2857_v39 }
 0x6cc   : > { %v2882_v32 = vmul.f32 %v2880_v59, %v2872_v26  ;;  %v2911_v54 = vsel %vm515_vm4, %v2910_v34, %v2880_v59  ;;  %v2913_v20 = vsel %vm511_vm3, %v2832_v48, %v2859_v24 }
 0x6cd   : > { %v3335_v29 = vpop.eup %3334 }
 0x6ce   : > { %v2905_v61 = vmul.f32 %v3335_v29, %v2904_v14  ;;  %v2884_v17 = vsub.f32 %v2883_v63, %v2882_v32 }
 0x6d0   : > { %v2907_v62 = vmul.f32 %v2905_v61, %v2897_v46  ;;  %v2912_v56 = vsel %vm519_vm5, %v2911_v54, %v2905_v61  ;;  %v2914_v28 = vsel %vm515_vm4, %v2913_v20, %v2884_v17 }
 0x6d1   : > { %v2919_v10 = vrot.slane %v2912_v56, %v5751_v27 }
 0x6d2   : > { %v2909_v7 = vsub.f32 %v2908_v33, %v2907_v62 }
 0x6d3   : > { %v2920_v23 = vmul.f32 %v2919_v10, %v5453_v55  ;;  %v2921_v0 = vmul.f32 %v2919_v10, %v5456_v13 }
 0x6d4   : > { %v2915_v60 = vsel %vm519_vm5, %v2914_v28, %v2909_v7 }
 0x6d5   : > { %v2925_v8 = vrot.slane %v2915_v60, %v5751_v27 }
 0x6d7   : > { %v2926_v50 = vadd.f32 %v2925_v8, %v2920_v23  ;;  %v2927_v44 = vadd.f32 %v2925_v8, %v2921_v0 }
 0x6d9   : > { %v2928_v6 = vadd.f32 %v3336_v57, %v2926_v50  ;;  %v2935_v2 = vadd.f32 %v2933_v40, %v2927_v44 }
 0x6db   : > { %2937 = vrot.lane.b32.xlu1 %v2935_v2, %s5750_s14  ;;  %2929 = vst.msk [vmem:[%s428_s18] sm:$0xff] %vm1548_vm8, %v2928_v6  ;;  %s3483_s14 = scalar_lea.vmem %s5505_s16, 128 }
 0x6dc   : > { %p3484_p7 = scmp.ne.s32.totalorder %s5505_s16, %s3483_s14  ;;  %p3491_p8 = scmp.lt.s32.totalorder %s3489_s27, %s3483_s14 }
 0x6de   : > { %p3485_p12 = pnand %p3484_p7, %p5753_p0  ;;  %p3492_p9 = por %p3491_p8, %p3490_p1 }
 0x6e0   : > { %p3486_p11 = pneg %p3485_p12 }
 0x6e2   : > { %p3493_p4 = pnand %p3492_p9, %p3486_p11 }
 0x74d   : > { %v2938_v55 = vpop.permute.xlu1 %2937 }
 0x74e   : > { %2941 = vst.msk [vmem:[%s428_s18] sm:$0xff] %vm2940_vm9, %v2938_v55 }
 0x74f   : > { %3496 = shalt.err (!%p3493_p4)
}
 0x750   : > { %s3497_s3 = scalar_lea.hbm %s5503_s20, 128  ;;  %s3501_s28 = scalar_lea.hbm %s5556_s9, 256 }
 0x751   : > { %p3498_p6 = scmp.ne.s32.totalorder %s5503_s20, %s3497_s3  ;;  %p3502_p13 = scmp.lt.u32.totalorder %s5503_s20, %s5556_s9 }
 0x752   : > { %p3503_p2 = scmp.lt.u32.totalorder %s3501_s28, %s3497_s3  ;;  %p3505_p7 = scmp.lt.u32.totalorder %s3497_s3, %s5503_s20 }
 0x753   : > { %p3499_p10 = pnand %p3498_p6, %p5753_p0 }
 0x754   : > { %p3504_p5 = por %p3503_p2, %p3502_p13 }
 0x755   : > { %p3500_p3 = pneg %p3499_p10 }
 0x756   : > { %p3506_p12 = por %p3505_p7, %p3504_p5 }
 0x758   : > { %p3507_p11 = pnand %p3506_p12, %p3500_p3 }
 0x75a   : > { %3510 = shalt.err (!%p3507_p11)
}
 0x75b   : > { %3222 = dma.vmem_to_hbm [thread:$0]  (%p5753_p0), %s5505_s16, 128, %s5503_s20, %s2943_s22  }
 0x75c PF: > { %s2968_s19 = sand.u32 1, %s3561_s30   ;;  %p5754_p1 = scmp.ne.s32.totalorder %s5629_s26, 0 }
 0x75d   : > { %p5755_p8 = scmp.ge.s32.totalorder %s3573_s12, 2  ;;  %s2969_s17 = scalar_lea.sflag [#allocation4], %s2968_s19 }
 0x75f   : > { %p3248_p9 = pnand %p5755_p8, %p5754_p1 }
 0x761   : > { %3556 = dma.done.wait (!%p3248_p9), %s2969_s17, 128  }
 0x762   : > { %3558 = vsyncadd (!%p3248_p9), %s2969_s17, 4294967168  ;;  %p26_p4 = scmp.ge.s32.totalorder %s3795_s24, 4   ;;  %s5756_s30 = smov %s3565_s10 }
 0x763   : > { %s5757_s10 = smov %s3569_s11  ;;  %s5758_s11 = smov %s3806_s13 }
 0x764   : > { %s5759_s12 = smov %s3795_s24  ;;  %28 = sbr.rel (!%p26_p4) target bundleno = 12 (0xc), region = 126 }
 0x76b   :  { %2974 = vsyncpa [#allocation3], 1 }
 0x76c   :  { %2976 = vsyncpa [#allocation3 + $0x1], 1 }
 0x76d   :  { %2977 = vsyncpa [#allocation7], 1 }
 0x76e   :  { %2978 = vsyncpa [#allocation4], 1 }
 0x76f   :  { %2980 = vsyncpa [#allocation4 + $0x1], 1 }
 0x770   :  { %2981 = vsyncpa [#allocation5], 1 }
 0x771   :  { %2983 = vsyncpa [#allocation5 + $0x1], 1 }
 0x772   :  { %2984 = vsyncpa [#allocation10], 1 }
 0x773   :  { %2985 = vsyncpa [#allocation14], 1 }

</bundles_post_ra>
